<compile_context>
chip_gen: v7x
topology: tpu7x:2x2x1
jax: 0.10.0
libtpu: 0.0.40
codegen_flags: <defaults>
</compile_context>

<pallas_src>
import functools

import jax
import jax.numpy as jnp
from jax.experimental import pallas as pl
from jax.experimental.pallas import tpu as pltpu


def _round_up(v, m):
    return (v + m - 1) // m * m


def _bias_tuning_mlp_kernel(x_ref, w1_ref, b1_ref, w2_ref, b2_ref, o_ref,
                            acc_ref, *, hid_chunk):
    """One (batch tile, hidden tile) grid step of y = gelu(x@W1+b1)@W2 + b2."""
    k = pl.program_id(1)

    @pl.when(k == 0)
    def _init():
        acc_ref[...] = jnp.zeros_like(acc_ref)

    # Cast activations f32 -> bf16 in-kernel (VPU, hides under the MXU). Avoids
    # a separate wrapper-side cast that would round-trip x through HBM.
    x = x_ref[...].astype(jnp.bfloat16)

    # Sub-chunk the hidden tile so the f32 intermediate never exceeds
    # (tile_b, hid_chunk): bounds live ranges / VMEM round-trips. Static slices
    # on the refs -> no dynamic-slice lowering, no extra copies.
    tile_hid = w1_ref.shape[1]
    for c in range(tile_hid // hid_chunk):
        lo = c * hid_chunk
        h = jnp.dot(x, w1_ref[:, lo:lo + hid_chunk],
                    preferred_element_type=jnp.float32)
        h = h + b1_ref[:, lo:lo + hid_chunk]          # bias broadcast over batch
        # TODO(synk): PyTorch nn.GELU defaults to the exact erf form; the tanh
        # approximation (EUP slot) is used here and in the reference.
        h = jax.nn.gelu(h, approximate=True)
        acc_ref[...] += jnp.dot(h.astype(w2_ref.dtype),
                                w2_ref[lo:lo + hid_chunk, :],
                                preferred_element_type=jnp.float32)

    @pl.when(k == pl.num_programs(1) - 1)
    def _finalize():
        o_ref[...] = (acc_ref[...] + b2_ref[...]).astype(o_ref.dtype)


def _plan_vmem_bytes(tile_b, d_in, tile_hid, d_out, n_hid_tiles, out_itemsize):
    """Rough VMEM footprint of the chosen tiling (for budget + vmem_limit)."""
    wbuf = 1 if n_hid_tiles == 1 else 2               # resident weights single-buffered
    x_b = 2 * tile_b * d_in * 4                       # f32 x tile, double-buffered
    w1_b = wbuf * d_in * tile_hid * 2                 # bf16
    b1_b = wbuf * 8 * tile_hid * 4                    # (1, tile_hid) pads to 8 sublanes
    w2_b = wbuf * tile_hid * d_out * 2
    b2_b = 8 * d_out * 4
    o_b = 2 * tile_b * d_out * out_itemsize
    acc_b = tile_b * d_out * 4
    h_b = tile_b * min(tile_hid, 512) * 4             # in-kernel f32 intermediate
    return x_b + w1_b + b1_b + w2_b + b2_b + o_b + acc_b + h_b


def bias_tuning_forward(x, w1, b1, w2, b2, *, tile_b=512, out_dtype=None,
                        vmem_budget_bytes=44 << 20):
    """Forward of BiasTuning(base_model) == base_model(x).

    x:  [B, D_in]
    w1: [D_in, D_hidden]   b1: [D_hidden]
    w2: [D_hidden, D_out]  b2: [D_out]
    returns [B, D_out] in out_dtype (default x.dtype; pass bf16 to halve
    output HBM writeback when downstream consumers accept it).
    """
    B, D_in = x.shape
    D_hid = w1.shape[1]
    D_out = w2.shape[1]
    out_dtype = x.dtype if out_dtype is None else out_dtype
    out_itemsize = jnp.dtype(out_dtype).itemsize

    # --- Batch tiling: large tiles for pipeline efficiency, but keep >= 2
    # batch tiles whenever B allows so v7x's second TensorCore gets work from
    # the "parallel" axis.
    if B > 8:
        tile_b = min(tile_b, _round_up(pl.cdiv(B, 2), 8))
    tile_b = max(8, min(tile_b, _round_up(B, 8)))

    # --- Hidden-dim tiling: keep full W1/W2 VMEM-resident when they fit the
    # budget (leaves headroom on v7x's 64 MiB physical VMEM); otherwise stream
    # hidden tiles over an "arbitrary" grid axis and accumulate into scratch.
    def _pick_tile_hid(tb):
        cands = [D_hid] + [c for c in (4096, 2048, 1024, 512, 256, 128)
                           if c < D_hid and D_hid % c == 0]
        for th in cands:
            if _plan_vmem_bytes(tb, D_in, th, D_out, D_hid // th,
                                out_itemsize) <= vmem_budget_bytes:
                return th
        return None

    tile_hid = _pick_tile_hid(tile_b)
    while tile_hid is None and tile_b > 8:
        tile_b = max(8, _round_up(tile_b // 2, 8))
        tile_hid = _pick_tile_hid(tile_b)
    if tile_hid is None:
        tile_hid = D_hid if D_hid <= 128 else 128     # best effort for huge dims
    n_hid_tiles = D_hid // tile_hid
    weights_resident = n_hid_tiles == 1

    # In-kernel hidden sub-chunk (bounds the f32 intermediate's live range).
    if tile_hid > 512:
        hid_chunk = next((c for c in (512, 256, 128) if tile_hid % c == 0),
                         tile_hid)
    else:
        hid_chunk = tile_hid

    n_b_tiles = pl.cdiv(B, tile_b)
    b_pad = n_b_tiles * tile_b
    # TODO(synk): handle a ragged last batch tile with a masked store instead
    # of a pad copy; only triggers when B is not tile-aligned.
    x_in = x if b_pad == B else jnp.pad(x, ((0, b_pad - B), (0, 0)))

    # Weights cast to bf16 ONCE (parameters); biases stay f32 as (1, D) rows.
    w1_bf = w1.astype(jnp.bfloat16)
    w2_bf = w2.astype(jnp.bfloat16)
    b1_2d = b1.reshape(1, D_hid).astype(jnp.float32)
    b2_2d = b2.reshape(1, D_out).astype(jnp.float32)

    plan = _plan_vmem_bytes(tile_b, D_in, tile_hid, D_out, n_hid_tiles,
                            out_itemsize)
    vmem_limit = min(max(int(plan * 1.25) + (4 << 20), 32 << 20), 64 << 20)

    cost = pl.CostEstimate(
        flops=2 * b_pad * (D_in * D_hid + D_hid * D_out),
        transcendentals=b_pad * D_hid,
        bytes_accessed=(x_in.size * 4 + w1_bf.size * 2 + w2_bf.size * 2
                        + b1_2d.size * 4 + b2_2d.size * 4
                        + b_pad * D_out * out_itemsize),
    )

    kernel = functools.partial(_bias_tuning_mlp_kernel, hid_chunk=hid_chunk)

    def _run(single_buffer_consts):
        def _spec(shape, index_map, *, const=False):
            if const and single_buffer_consts:
                # Grid-constant operands don't need double buffering.
                return pl.BlockSpec(shape, index_map,
                                    pipeline_mode=pl.Buffered(1))
            return pl.BlockSpec(shape, index_map)

        return pl.pallas_call(
            kernel,
            out_shape=jax.ShapeDtypeStruct((b_pad, D_out), out_dtype),
            grid=(n_b_tiles, n_hid_tiles),
            in_specs=[
                # f32 activations stream per batch tile; constant across k.
                pl.BlockSpec((tile_b, D_in), lambda i, k: (i, 0)),
                _spec((D_in, tile_hid), lambda i, k: (0, k),
                      const=weights_resident),
                _spec((1, tile_hid), lambda i, k: (0, k),
                      const=weights_resident),
                _spec((tile_hid, D_out), lambda i, k: (k, 0),
                      const=weights_resident),
                _spec((1, D_out), lambda i, k: (0, 0), const=True),
            ],
            out_specs=pl.BlockSpec((tile_b, D_out), lambda i, k: (i, 0)),
            scratch_shapes=[pltpu.VMEM((tile_b, D_out), jnp.float32)],
            compiler_params=pltpu.CompilerParams(
                dimension_semantics=("parallel", "arbitrary"),
                vmem_limit_bytes=vmem_limit,
            ),
            cost_estimate=cost,
        )(x_in, w1_bf, b1_2d, w2_bf, b2_2d)

    try:
        out = _run(True)
    except Exception:
        # Fallback for JAX builds without Buffered(1) single-buffering support.
        out = _run(False)

    return out if b_pad == B else out[:B]


def reference_forward(x, w1, b1, w2, b2):
    # Same bf16-operand / f32-accumulation recipe as the kernel.
    xb = x.astype(jnp.bfloat16)
    w1b = w1.astype(jnp.bfloat16)
    w2b = w2.astype(jnp.bfloat16)
    h = jnp.dot(xb, w1b, preferred_element_type=jnp.float32) + b1
    h = jax.nn.gelu(h, approximate=True)
    y = jnp.dot(h.astype(jnp.bfloat16), w2b,
                preferred_element_type=jnp.float32) + b2
    return y.astype(x.dtype)


if __name__ == "__main__":
    # Lane-dense feature dims (multiples of 128/256); B=512 so the adaptive
    # wrapper picks tile_b=256 -> 2 parallel batch tiles (megacore on v7x).
    B, D_IN, D_HID, D_OUT = 512, 256, 256, 256

    key = jax.random.PRNGKey(0)
    kx, kw1, kb1, kw2, kb2 = jax.random.split(key, 5)

    x = jax.random.normal(kx, (B, D_IN), dtype=jnp.float32)
    # Deterministic synthetic parameters (BiasTuning's __init__ takes a base model).
    w1 = jax.random.normal(kw1, (D_IN, D_HID), dtype=jnp.float32) * 0.1
    b1 = jax.random.normal(kb1, (D_HID,), dtype=jnp.float32) * 0.1
    w2 = jax.random.normal(kw2, (D_HID, D_OUT), dtype=jnp.float32) * 0.1
    b2 = jax.random.normal(kb2, (D_OUT,), dtype=jnp.float32) * 0.1

    out = bias_tuning_forward(x, w1, b1, w2, b2)
    out = jax.block_until_ready(out)

    ref = reference_forward(x, w1, b1, w2, b2)
    assert out.shape == (B, D_OUT)
    assert jnp.allclose(out, ref, atol=2e-2, rtol=2e-2), "mismatch vs reference"

    print("KERNEL_OK")
</pallas_src>

<mosaic_0001>
module attributes {stable_mosaic.version = 11 : i64} {
  func.func @_bias_tuning_mlp_kernel(%arg0: i32, %arg1: i32, %arg2: memref<256x256xf32, #tpu.memory_space<vmem>>, %arg3: memref<256x256xbf16, #tpu.memory_space<vmem>>, %arg4: memref<1x256xf32, #tpu.memory_space<vmem>>, %arg5: memref<256x256xbf16, #tpu.memory_space<vmem>>, %arg6: memref<1x256xf32, #tpu.memory_space<vmem>>, %arg7: memref<256x256xf32, #tpu.memory_space<vmem>>, %arg8: memref<256x256xf32, #tpu.memory_space<vmem>>) attributes {dimension_semantics = [#tpu.dimension_semantics<parallel>, #tpu.dimension_semantics<arbitrary>], iteration_bounds = array<i64: 2, 1>, scalar_prefetch = 0 : i64, scratch_operands = 1 : i64, tpu.core_type = #tpu.core_type<tc>, window_params = [{transform_indices = @transform_0, window_bounds = array<i64: 256, 256>}, {pipeline_mode = #tpu.pipeline_mode<synchronous>, transform_indices = @transform_1, window_bounds = array<i64: 256, 256>}, {pipeline_mode = #tpu.pipeline_mode<synchronous>, transform_indices = @transform_2, window_bounds = array<i64: 1, 256>}, {pipeline_mode = #tpu.pipeline_mode<synchronous>, transform_indices = @transform_3, window_bounds = array<i64: 256, 256>}, {pipeline_mode = #tpu.pipeline_mode<synchronous>, transform_indices = @transform_4, window_bounds = array<i64: 1, 256>}, {transform_indices = @transform_5, window_bounds = array<i64: 256, 256>}]} {
    %c0_i32 = arith.constant 0 : i32
    %0 = arith.cmpi eq, %arg1, %c0_i32 : i32
    %1 = arith.extui %0 : i1 to i32
    %c0_i32_0 = arith.constant 0 : i32
    %2 = arith.cmpi ne, %1, %c0_i32_0 : i32
    scf.if %2 {
      %cst_19 = arith.constant 0.000000e+00 : f32
      %32 = vector.broadcast %cst_19 : f32 to vector<256x256xf32>
      %c0_20 = arith.constant 0 : index
      %c0_21 = arith.constant 0 : index
      %33 = vector.load %arg8[%c0_20, %c0_21] : memref<256x256xf32, #tpu.memory_space<vmem>>, vector<256x256xf32>
      tpu.vector_store %arg8[%c0_20, %c0_21], %32 {strides = array<i32>} : memref<256x256xf32, #tpu.memory_space<vmem>>, vector<256x256xf32>,
    } else {
    }
    %c0 = arith.constant 0 : index
    %c0_1 = arith.constant 0 : index
    %3 = vector.load %arg2[%c0, %c0_1] : memref<256x256xf32, #tpu.memory_space<vmem>>, vector<256x256xf32>
    %4 = arith.truncf %3 : vector<256x256xf32> to vector<256x256xbf16>
    %c0_2 = arith.constant 0 : index
    %c0_3 = arith.constant 0 : index
    %5 = vector.load %arg3[%c0_2, %c0_3] : memref<256x256xbf16, #tpu.memory_space<vmem>>, vector<256x256xbf16>
    %cst = arith.constant dense<0.000000e+00> : vector<256x256xf32>
    %6 = tpu.matmul %4, %5, %cst {dimension_numbers = #tpu.dot_dimension_numbers<[1], [0], [0], [1], [0, 0, 1, 1], [], []>} : vector<256x256xbf16>, vector<256x256xbf16>, vector<256x256xf32> -> vector<256x256xf32>
    %c0_4 = arith.constant 0 : index
    %c0_5 = arith.constant 0 : index
    %7 = vector.load %arg4[%c0_4, %c0_5] : memref<1x256xf32, #tpu.memory_space<vmem>>, vector<1x256xf32>
    %8 = vector.broadcast %7 : vector<1x256xf32> to vector<256x256xf32>
    %9 = arith.addf %6, %8 : vector<256x256xf32>
    %10 = arith.mulf %9, %9 : vector<256x256xf32>
    %11 = arith.mulf %9, %10 : vector<256x256xf32>
    %cst_6 = arith.constant 4.471500e-02 : f32
    %12 = vector.broadcast %cst_6 : f32 to vector<256x256xf32>
    %13 = arith.mulf %12, %11 : vector<256x256xf32>
    %14 = arith.addf %9, %13 : vector<256x256xf32>
    %cst_7 = arith.constant 0.797884583 : f32
    %15 = vector.broadcast %cst_7 : f32 to vector<256x256xf32>
    %16 = arith.mulf %15, %14 : vector<256x256xf32>
    %17 = math.tanh %16 : vector<256x256xf32>
    %cst_8 = arith.constant 1.000000e+00 : f32
    %18 = vector.broadcast %cst_8 : f32 to vector<256x256xf32>
    %19 = arith.addf %18, %17 : vector<256x256xf32>
    %cst_9 = arith.constant 5.000000e-01 : f32
    %20 = vector.broadcast %cst_9 : f32 to vector<256x256xf32>
    %21 = arith.mulf %20, %19 : vector<256x256xf32>
    %22 = arith.mulf %9, %21 : vector<256x256xf32>
    %c0_10 = arith.constant 0 : index
    %c0_11 = arith.constant 0 : index
    %23 = vector.load %arg8[%c0_10, %c0_11] : memref<256x256xf32, #tpu.memory_space<vmem>>, vector<256x256xf32>
    %24 = arith.truncf %22 : vector<256x256xf32> to vector<256x256xbf16>
    %c0_12 = arith.constant 0 : index
    %c0_13 = arith.constant 0 : index
    %25 = vector.load %arg5[%c0_12, %c0_13] : memref<256x256xbf16, #tpu.memory_space<vmem>>, vector<256x256xbf16>
    %cst_14 = arith.constant dense<0.000000e+00> : vector<256x256xf32>
    %26 = tpu.matmul %24, %25, %cst_14 {dimension_numbers = #tpu.dot_dimension_numbers<[1], [0], [0], [1], [0, 0, 1, 1], [], []>} : vector<256x256xbf16>, vector<256x256xbf16>, vector<256x256xf32> -> vector<256x256xf32>
    %27 = arith.addf %23, %26 : vector<256x256xf32>
    %c0_15 = arith.constant 0 : index
    %c0_16 = arith.constant 0 : index
    %28 = vector.load %arg8[%c0_15, %c0_16] : memref<256x256xf32, #tpu.memory_space<vmem>>, vector<256x256xf32>
    tpu.vector_store %arg8[%c0_15, %c0_16], %27 {strides = array<i32>} : memref<256x256xf32, #tpu.memory_space<vmem>>, vector<256x256xf32>,
    %c0_i32_17 = arith.constant 0 : i32
    %29 = arith.cmpi eq, %arg1, %c0_i32_17 : i32
    %30 = arith.extui %29 : i1 to i32
    %c0_i32_18 = arith.constant 0 : i32
    %31 = arith.cmpi ne, %30, %c0_i32_18 : i32
    scf.if %31 {
      %c0_19 = arith.constant 0 : index
      %c0_20 = arith.constant 0 : index
      %32 = vector.load %arg8[%c0_19, %c0_20] : memref<256x256xf32, #tpu.memory_space<vmem>>, vector<256x256xf32>
      %c0_21 = arith.constant 0 : index
      %c0_22 = arith.constant 0 : index
      %33 = vector.load %arg6[%c0_21, %c0_22] : memref<1x256xf32, #tpu.memory_space<vmem>>, vector<1x256xf32>
      %34 = vector.broadcast %33 : vector<1x256xf32> to vector<256x256xf32>
      %35 = arith.addf %32, %34 : vector<256x256xf32>
      %c0_23 = arith.constant 0 : index
      %c0_24 = arith.constant 0 : index
      %36 = vector.load %arg7[%c0_23, %c0_24] : memref<256x256xf32, #tpu.memory_space<vmem>>, vector<256x256xf32>
      tpu.vector_store %arg7[%c0_23, %c0_24], %35 {strides = array<i32>} : memref<256x256xf32, #tpu.memory_space<vmem>>, vector<256x256xf32>,
    } else {
    }
    return
  }
  func.func @transform_0(%arg0: i32, %arg1: i32) -> (i32, i32) {
    %c0_i32 = arith.constant 0 : i32
    %c0_i32_0 = arith.constant 0 : i32
    return %arg0, %c0_i32 : i32, i32
  }
  func.func @transform_1(%arg0: i32, %arg1: i32) -> (i32, i32) {
    %c0_i32 = arith.constant 0 : i32
    %c0_i32_0 = arith.constant 0 : i32
    return %c0_i32, %arg1 : i32, i32
  }
  func.func @transform_2(%arg0: i32, %arg1: i32) -> (i32, i32) {
    %c0_i32 = arith.constant 0 : i32
    %c0_i32_0 = arith.constant 0 : i32
    return %c0_i32, %arg1 : i32, i32
  }
  func.func @transform_3(%arg0: i32, %arg1: i32) -> (i32, i32) {
    %c0_i32 = arith.constant 0 : i32
    %c0_i32_0 = arith.constant 0 : i32
    return %arg1, %c0_i32 : i32, i32
  }
  func.func @transform_4(%arg0: i32, %arg1: i32) -> (i32, i32) {
    %c0_i32 = arith.constant 0 : i32
    %c0_i32_0 = arith.constant 0 : i32
    %c0_i32_1 = arith.constant 0 : i32
    return %c0_i32, %c0_i32_0 : i32, i32
  }
  func.func @transform_5(%arg0: i32, %arg1: i32) -> (i32, i32) {
    %c0_i32 = arith.constant 0 : i32
    %c0_i32_0 = arith.constant 0 : i32
    return %arg0, %c0_i32 : i32, i32
  }
}

module attributes {stable_mosaic.version = 11 : i64} {
  func.func @_bias_tuning_mlp_kernel(%arg0: i32, %arg1: i32, %arg2: memref<256x256xf32, #tpu.memory_space<vmem>>, %arg3: memref<256x256xbf16, #tpu.memory_space<vmem>>, %arg4: memref<1x256xf32, #tpu.memory_space<vmem>>, %arg5: memref<256x256xbf16, #tpu.memory_space<vmem>>, %arg6: memref<1x256xf32, #tpu.memory_space<vmem>>, %arg7: memref<256x256xf32, #tpu.memory_space<vmem>>, %arg8: memref<256x256xf32, #tpu.memory_space<vmem>>) attributes {dimension_semantics = [#tpu.dimension_semantics<parallel>, #tpu.dimension_semantics<arbitrary>], iteration_bounds = array<i64: 2, 1>, scalar_prefetch = 0 : i64, scratch_operands = 1 : i64, tpu.core_type = #tpu.core_type<tc>, window_params = [{transform_indices = @transform_0, window_bounds = array<i64: 256, 256>}, {transform_indices = @transform_1, window_bounds = array<i64: 256, 256>}, {transform_indices = @transform_2, window_bounds = array<i64: 1, 256>}, {transform_indices = @transform_3, window_bounds = array<i64: 256, 256>}, {pipeline_mode = #tpu.pipeline_mode<synchronous>, transform_indices = @transform_4, window_bounds = array<i64: 1, 256>}, {transform_indices = @transform_5, window_bounds = array<i64: 256, 256>}]} {
    %c0_i32 = arith.constant 0 : i32
    %0 = arith.cmpi eq, %arg1, %c0_i32 : i32
    %1 = arith.extui %0 : i1 to i32
    %c0_i32_0 = arith.constant 0 : i32
    %2 = arith.cmpi ne, %1, %c0_i32_0 : i32
    scf.if %2 {
      %cst_19 = arith.constant 0.000000e+00 : f32
      %32 = vector.broadcast %cst_19 : f32 to vector<256x256xf32>
      %c0_20 = arith.constant 0 : index
      %c0_21 = arith.constant 0 : index
      %33 = vector.load %arg8[%c0_20, %c0_21] : memref<256x256xf32, #tpu.memory_space<vmem>>, vector<256x256xf32>
      tpu.vector_store %arg8[%c0_20, %c0_21], %32 {strides = array<i32>} : memref<256x256xf32, #tpu.memory_space<vmem>>, vector<256x256xf32>,
    } else {
    }
    %c0 = arith.constant 0 : index
    %c0_1 = arith.constant 0 : index
    %3 = vector.load %arg2[%c0, %c0_1] : memref<256x256xf32, #tpu.memory_space<vmem>>, vector<256x256xf32>
    %4 = arith.truncf %3 : vector<256x256xf32> to vector<256x256xbf16>
    %c0_2 = arith.constant 0 : index
    %c0_3 = arith.constant 0 : index
    %5 = vector.load %arg3[%c0_2, %c0_3] : memref<256x256xbf16, #tpu.memory_space<vmem>>, vector<256x256xbf16>
    %cst = arith.constant dense<0.000000e+00> : vector<256x256xf32>
    %6 = tpu.matmul %4, %5, %cst {dimension_numbers = #tpu.dot_dimension_numbers<[1], [0], [0], [1], [0, 0, 1, 1], [], []>} : vector<256x256xbf16>, vector<256x256xbf16>, vector<256x256xf32> -> vector<256x256xf32>
    %c0_4 = arith.constant 0 : index
    %c0_5 = arith.constant 0 : index
    %7 = vector.load %arg4[%c0_4, %c0_5] : memref<1x256xf32, #tpu.memory_space<vmem>>, vector<1x256xf32>
    %8 = vector.broadcast %7 : vector<1x256xf32> to vector<256x256xf32>
    %9 = arith.addf %6, %8 : vector<256x256xf32>
    %10 = arith.mulf %9, %9 : vector<256x256xf32>
    %11 = arith.mulf %9, %10 : vector<256x256xf32>
    %cst_6 = arith.constant 4.471500e-02 : f32
    %12 = vector.broadcast %cst_6 : f32 to vector<256x256xf32>
    %13 = arith.mulf %12, %11 : vector<256x256xf32>
    %14 = arith.addf %9, %13 : vector<256x256xf32>
    %cst_7 = arith.constant 0.797884583 : f32
    %15 = vector.broadcast %cst_7 : f32 to vector<256x256xf32>
    %16 = arith.mulf %15, %14 : vector<256x256xf32>
    %17 = math.tanh %16 : vector<256x256xf32>
    %cst_8 = arith.constant 1.000000e+00 : f32
    %18 = vector.broadcast %cst_8 : f32 to vector<256x256xf32>
    %19 = arith.addf %18, %17 : vector<256x256xf32>
    %cst_9 = arith.constant 5.000000e-01 : f32
    %20 = vector.broadcast %cst_9 : f32 to vector<256x256xf32>
    %21 = arith.mulf %20, %19 : vector<256x256xf32>
    %22 = arith.mulf %9, %21 : vector<256x256xf32>
    %c0_10 = arith.constant 0 : index
    %c0_11 = arith.constant 0 : index
    %23 = vector.load %arg8[%c0_10, %c0_11] : memref<256x256xf32, #tpu.memory_space<vmem>>, vector<256x256xf32>
    %24 = arith.truncf %22 : vector<256x256xf32> to vector<256x256xbf16>
    %c0_12 = arith.constant 0 : index
    %c0_13 = arith.constant 0 : index
    %25 = vector.load %arg5[%c0_12, %c0_13] : memref<256x256xbf16, #tpu.memory_space<vmem>>, vector<256x256xbf16>
    %cst_14 = arith.constant dense<0.000000e+00> : vector<256x256xf32>
    %26 = tpu.matmul %24, %25, %cst_14 {dimension_numbers = #tpu.dot_dimension_numbers<[1], [0], [0], [1], [0, 0, 1, 1], [], []>} : vector<256x256xbf16>, vector<256x256xbf16>, vector<256x256xf32> -> vector<256x256xf32>
    %27 = arith.addf %23, %26 : vector<256x256xf32>
    %c0_15 = arith.constant 0 : index
    %c0_16 = arith.constant 0 : index
    %28 = vector.load %arg8[%c0_15, %c0_16] : memref<256x256xf32, #tpu.memory_space<vmem>>, vector<256x256xf32>
    tpu.vector_store %arg8[%c0_15, %c0_16], %27 {strides = array<i32>} : memref<256x256xf32, #tpu.memory_space<vmem>>, vector<256x256xf32>,
    %c0_i32_17 = arith.constant 0 : i32
    %29 = arith.cmpi eq, %arg1, %c0_i32_17 : i32
    %30 = arith.extui %29 : i1 to i32
    %c0_i32_18 = arith.constant 0 : i32
    %31 = arith.cmpi ne, %30, %c0_i32_18 : i32
    scf.if %31 {
      %c0_19 = arith.constant 0 : index
      %c0_20 = arith.constant 0 : index
      %32 = vector.load %arg8[%c0_19, %c0_20] : memref<256x256xf32, #tpu.memory_space<vmem>>, vector<256x256xf32>
      %c0_21 = arith.constant 0 : index
      %c0_22 = arith.constant 0 : index
      %33 = vector.load %arg6[%c0_21, %c0_22] : memref<1x256xf32, #tpu.memory_space<vmem>>, vector<1x256xf32>
      %34 = vector.broadcast %33 : vector<1x256xf32> to vector<256x256xf32>
      %35 = arith.addf %32, %34 : vector<256x256xf32>
      %c0_23 = arith.constant 0 : index
      %c0_24 = arith.constant 0 : index
      %36 = vector.load %arg7[%c0_23, %c0_24] : memref<256x256xf32, #tpu.memory_space<vmem>>, vector<256x256xf32>
      tpu.vector_store %arg7[%c0_23, %c0_24], %35 {strides = array<i32>} : memref<256x256xf32, #tpu.memory_space<vmem>>, vector<256x256xf32>,
    } else {
    }
    return
  }
  func.func @transform_0(%arg0: i32, %arg1: i32) -> (i32, i32) {
    %c0_i32 = arith.constant 0 : i32
    %c0_i32_0 = arith.constant 0 : i32
    return %arg0, %c0_i32 : i32, i32
  }
  func.func @transform_1(%arg0: i32, %arg1: i32) -> (i32, i32) {
    %c0_i32 = arith.constant 0 : i32
    %c0_i32_0 = arith.constant 0 : i32
    return %c0_i32, %arg1 : i32, i32
  }
  func.func @transform_2(%arg0: i32, %arg1: i32) -> (i32, i32) {
    %c0_i32 = arith.constant 0 : i32
    %c0_i32_0 = arith.constant 0 : i32
    return %c0_i32, %arg1 : i32, i32
  }
  func.func @transform_3(%arg0: i32, %arg1: i32) -> (i32, i32) {
    %c0_i32 = arith.constant 0 : i32
    %c0_i32_0 = arith.constant 0 : i32
    return %arg1, %c0_i32 : i32, i32
  }
  func.func @transform_4(%arg0: i32, %arg1: i32) -> (i32, i32) {
    %c0_i32 = arith.constant 0 : i32
    %c0_i32_0 = arith.constant 0 : i32
    %c0_i32_1 = arith.constant 0 : i32
    return %c0_i32, %c0_i32_0 : i32, i32
  }
  func.func @transform_5(%arg0: i32, %arg1: i32) -> (i32, i32) {
    %c0_i32 = arith.constant 0 : i32
    %c0_i32_0 = arith.constant 0 : i32
    return %arg0, %c0_i32 : i32, i32
  }
}

</mosaic_0001>

<bundles_post_ra>
// kernel: tpu_custom_call.1
= control target key start
LH: loop header
LB: loop body
LE: loop exit
PB: predicated region body
PF: predicated region fallthrough
CT: control target
= control target key end

     0   :  { %10 = vsyncpa [#allocation4], 0  ;;  %s4263_s0 = inlined_call_operand.hbm [shape: f32[512,256], index: 0, kind: input, shape index: {}]   ;;  %s4264_s1 = inlined_call_operand.hbm [shape: bf16[256,256], index: 1, kind: input, shape index: {}]   ;;  %s4265_s2 = inlined_call_operand.vmem [shape: f32[1,256], index: 2, kind: input, shape index: {}]   ;;  %s4266_s3 = inlined_call_operand.hbm [shape: bf16[256,256], index: 3, kind: input, shape index: {}]   ;;  %s4267_s4 = inlined_call_operand.vmem [shape: f32[1,256], index: 4, kind: input, shape index: {}]   ;;  %s4268_s5 = inlined_call_operand.hbm [shape: f32[512,256], index: 5, kind: output, shape index: {}]  }
   0x1   :  { %12 = vsyncpa [#allocation4 + $0x1], 0 }
   0x2   :  { %13 = vsyncpa [#allocation7], 0 }
   0x3   :  { %14 = vsyncpa [#allocation5], 0 }
   0x4   :  { %16 = vsyncpa [#allocation5 + $0x1], 0  ;;  %s3026_s18 = smov 0   ;;  %s3028_s19 = smov 0  }
   0x5   :  { %s3030_s20 = smov 0   ;;  %s3032_s21 = smov 0  }
   0x6   :  { %s3034_s22 = smov 0   ;;  %s3036_s23 = smov 0  }
   0x7 LB: > { %s2409_s24 = sadd.s32 4294967295, %s2984_s23   ;;  %s2410_s25 = sadd.s32 4294967294, %s2984_s23   ;;  %s2984_s23 = sphi %s3036_s23, %s22_s23   ;;  %s2980_s22 = sphi %s3034_s22, %s4294_s22   ;;  %s2976_s21 = sphi %s3032_s21, %s4293_s21   ;;  %s2972_s20 = sphi %s3030_s20, %s4292_s20   ;;  %s2968_s19 = sphi %s3028_s19, %s4291_s19   ;;  %s2964_s18 = sphi %s3026_s18, %s4290_s18  }
   0x8   : > { %p54_p0 = scmp.ne.s32.totalorder %s2968_s19, %s2964_s18  ;;  %p3060_p1 = scmp.eq.s32.totalorder %s2409_s24, 0 }
   0x9   : > { %p3064_p2 = scmp.eq.s32.totalorder %s2409_s24, 1  ;;  %p183_p3 = scmp.eq.s32.totalorder %s2410_s25, 1 }
   0xa   : > { %s4275_s26 = scalar_select %p3060_p1, 1, 0 }
   0xb   : > { %p3070_p4 = por %p3060_p1, %p54_p0  ;;  %p2411_p5 = scmp.ge.s32.totalorder %s2984_s23, 1 }
   0xc   : > { %p3075_p6 = por %p183_p3, %p54_p0  ;;  %p190_p7 = scmp.lt.s32.totalorder %s2984_s23, 3 }
   0xd   : > { %s4277_s28 = scalar_select %p3070_p4, 1, 0 }
   0xe   : > { %s4278_s29 = scalar_select %p3075_p6, 1, 0 }
   0xf   : > { %p3080_p8 = pnand %p2411_p5, %p190_p7  ;;  %s2986_s6 = smov [#allocation6]  }
  0x10   : > { %s205_s7 = sshll.u32 %s2986_s6, 4  ;;  %s2987_s9 = smov [#allocation8]   ;;  %s3084_s7 = int_to_ptr.vmem [resolvable:$true] %s205_s7 }
  0x11   : > { %p2511_p9 = pneg %p3080_p8  ;;  %s230_s10 = sshll.u32 %s2987_s9, 4  ;;  %s3095_s10 = int_to_ptr.vmem [resolvable:$true] %s230_s10 }
  0x12   : > { %s2812_s13 = scalar_lea.hbm %s4264_s1, 4096 }
  0x13   : > { %p3091_p11 = pnand %p2511_p9, %p3060_p1  ;;  %p2813_p12 = scmp.ne.s32.totalorder %s4264_s1, %s2812_s13 }
  0x14   : > { %p2819_p5 = scmp.lt.u32.totalorder %s2812_s13, %s4264_s1 }
  0x15   : > { %p2814_p13 = pneg %p3091_p11 }
  0x17   : > { %p2815_p0 = pnand %p2814_p13, %p2813_p12 }
  0x19   : > { %p2816_p3 = pneg %p2815_p0 }
  0x1b   : > { %p2821_p7 = pnand %p2819_p5, %p2816_p3 }
  0x1d   : > { %2824 = shalt.err (!%p2821_p7)
}
  0x1e   : > { %s2825_s24 = scalar_lea.vmem %s3084_s7, 4096  ;;  %p2833_p1 = scmp.lt.s32.totalorder %s3084_s7, %s3084_s7 }
  0x1f   : > { %p2826_p9 = scmp.ne.s32.totalorder %s3084_s7, %s2825_s24  ;;  %p2834_p12 = scmp.lt.s32.totalorder %s2825_s24, %s2825_s24 }
  0x21   : > { %p2828_p10 = pnand %p2826_p9, %p2814_p13  ;;  %p2835_p0 = por %p2834_p12, %p2833_p1 }
  0x23   : > { %p2829_p6 = pneg %p2828_p10 }
  0x25   : > { %p2836_p4 = pnand %p2835_p0, %p2829_p6 }
  0x27   : > { %2839 = shalt.err (!%p2836_p4)
}
  0x28   : > { %s2988_s25 = smov 128   ;;  %s2989_s6 = smov 8  }
  0x29   : > { %2514 = dma.hbm_to_vmem [thread:$0]  (!%p3091_p11), %s4264_s1, 4096, %s3084_s7, [#allocation7], %s2988_s25, %s2988_s25, %s2989_s6  }
  0x2a   : > { %s2840_s14 = scalar_lea.hbm %s4266_s3, 4096 }
  0x2b   : > { %p2841_p1 = scmp.ne.s32.totalorder %s4266_s3, %s2840_s14  ;;  %p2847_p10 = scmp.lt.u32.totalorder %s2840_s14, %s4266_s3 }
  0x2d   : > { %p2843_p4 = pnand %p2841_p1, %p2814_p13 }
  0x2f   : > { %p2844_p6 = pneg %p2843_p4 }
  0x31   : > { %p2849_p3 = pnand %p2847_p10, %p2844_p6 }
  0x33   : > { %2852 = shalt.err (!%p2849_p3)
}
  0x34   : > { %s2853_s7 = scalar_lea.vmem %s3095_s10, 4096  ;;  %p2861_p12 = scmp.lt.s32.totalorder %s3095_s10, %s3095_s10 }
  0x35   : > { %p2854_p5 = scmp.ne.s32.totalorder %s3095_s10, %s2853_s7  ;;  %p2862_p0 = scmp.lt.s32.totalorder %s2853_s7, %s2853_s7 }
  0x37   : > { %p2856_p7 = pnand %p2854_p5, %p2814_p13  ;;  %p2863_p1 = por %p2862_p0, %p2861_p12 }
  0x39   : > { %p2857_p9 = pneg %p2856_p7 }
  0x3b   : > { %p2864_p4 = pnand %p2863_p1, %p2857_p9 }
  0x3d   : > { %2867 = shalt.err (!%p2864_p4)
}
  0x3e   : > { %2517 = dma.hbm_to_vmem [thread:$0]  (!%p3091_p11), %s4266_s3, 4096, %s3095_s10, [#allocation7], %s2988_s25, %s2988_s25, %s2989_s6  }
  0x3f   : > { %s34_s12 = sadd.s32 1, %s2980_s22  ;;  %s41_s13 = sadd.s32 1, %s2972_s20 }
  0x40   : > { %p36_p13 = scmp.ge.s32.totalorder %s34_s12, 2  ;;  %p48_p6 = scmp.ne.s32.totalorder %s2972_s20, %s2968_s19 }
  0x41   : > { %p49_p10 = scmp.eq.s32.totalorder %s2984_s23, 0  ;;  %p2528_p3 = scmp.lt.s32.totalorder %s2984_s23, 2 }
  0x42   : > { %s4296_s12 = smov (%p36_p13, %s34_s12), 0  ;;  %p3159_p7 = por %p3064_p2, %p48_p6 }
  0x43   : > { %p50_p5 = por %p49_p10, %p48_p6  ;;  %s38_s14 = ssub.s32 %s2980_s22, %s4296_s12 }
  0x44   : > { %s4281_s8 = scalar_select %p3159_p7, 1, 0 }
  0x45   : > { %s247_s15 = sand.u32 1, %s2972_s20   ;;  %p39_p9 = scmp.eq.s32.totalorder %s38_s14, 0 }
  0x46   : > { %s2416_s10 = sshll.u32 %s247_s15, 9  ;;  %s2496_s25 = sshll.u32 %s2980_s22, 13 }
  0x47   : > { %s3168_s6 = scalar_select %p39_p9, %s2972_s20, %s41_s13  }
  0x48   : > { %s3173_s24 = scalar_lea.hbm %s4263_s0, %s2496_s25  ;;  %s251_s27 = scalar_lea.vmem [#allocation3], %s2416_s10 }
  0x49   : > { %s259_s7 = sshll.u32 %s251_s27, 4  ;;  %p3177_p2 = pnand %p2528_p3, %p50_p5  ;;  %s3181_s7 = int_to_ptr.vmem [resolvable:$true] %s259_s7 }
  0x4a   : > { %s3183_s11 = scalar_lea.sflag [#allocation4], %s247_s15  ;;  %s2868_s13 = scalar_lea.hbm %s3173_s24, 8192 }
  0x4b   : > { %p2869_p11 = scmp.ne.s32.totalorder %s3173_s24, %s2868_s13  ;;  %p2870_p12 = pneg %p3177_p2 }
  0x4c   : > { %s2873_s25 = scalar_lea.hbm %s4263_s0, 16384  ;;  %p2874_p4 = scmp.lt.u32.totalorder %s3173_s24, %s4263_s0 }
  0x4d   : > { %p2871_p0 = pnand %p2870_p12, %p2869_p11  ;;  %p2875_p13 = scmp.lt.u32.totalorder %s2873_s25, %s2868_s13 }
  0x4e   : > { %p2877_p10 = scmp.lt.u32.totalorder %s2868_s13, %s3173_s24 }
  0x4f   : > { %p2872_p1 = pneg %p2871_p0  ;;  %p2876_p6 = por %p2875_p13, %p2874_p4 }
  0x51   : > { %p2878_p3 = por %p2877_p10, %p2876_p6 }
  0x53   : > { %p2879_p5 = pnand %p2878_p3, %p2872_p1 }
  0x55   : > { %2882 = shalt.err (!%p2879_p5)
}
  0x56   : > { %s2883_s15 = scalar_lea.vmem %s3181_s7, 8192  ;;  %s2990_s27 = smov [#allocation3]  }
  0x57   : > { %p2884_p9 = scmp.ne.s32.totalorder %s3181_s7, %s2883_s15  ;;  %s2888_s14 = sshll.u32 %s2990_s27, 4  ;;  %s2889_s14 = int_to_ptr.vmem [resolvable:$false] %s2888_s14 }
  0x58   : > { %s2890_s10 = scalar_lea.vmem %s2889_s14, 16384  ;;  %p2891_p7 = scmp.lt.s32.totalorder %s3181_s7, %s2889_s14 }
  0x59   : > { %p2886_p11 = pnand %p2884_p9, %p2870_p12  ;;  %p2892_p4 = scmp.lt.s32.totalorder %s2890_s10, %s2883_s15 }
  0x5b   : > { %p2887_p0 = pneg %p2886_p11  ;;  %p2893_p13 = por %p2892_p4, %p2891_p7 }
  0x5d   : > { %p2894_p6 = pnand %p2893_p13, %p2887_p0 }
  0x5f   : > { %2897 = shalt.err (!%p2894_p6)
}
  0x60   : > { %s2991_s13 = smov 256   ;;  %s2992_s25 = smov 16  }
  0x61   : > { %2521 = dma.hbm_to_vmem [thread:$0]  (!%p3177_p2), %s3173_s24, 8192, %s3181_s7, %s3183_s11, %s2991_s13, %s2991_s13, %s2992_s25  }
  0x62   : > { %271 = sbr.rel (%p3080_p8) target bundleno = 812 (0x32c), region = 40  ;;  %s3214_s16 = sand.u32 (!%p3080_p8), 1, %s2968_s19  }
  0x63   : > { %s2421_s17 = sshll.u32 (!%p3080_p8), %s3214_s16, 9  ;;  %s274_s15 = scalar_lea.sflag (!%p3080_p8), [#allocation4], %s3214_s16 }
  0x64   : > { %s3220_s27 = scalar_lea.vmem (!%p3080_p8), [#allocation3], %s2421_s17  ;;  %p4283_p7 = scmp.ne.s32.totalorder (!%p3080_p8), %s4277_s28, 0 }
  0x69   : > { %2951 = dma.done.wait (%p4283_p7), %s274_s15, 8192  }
  0x6a   : > { %2953 = vsyncadd (%p4283_p7), %s274_s15, 4294959104  ;;  %p4284_p2 = scmp.ne.s32.totalorder %s4275_s26, 0 }
  0x6c   : > { %2955 = dma.done.wait (%p4284_p2), [#allocation7], 8192  }
  0x6d   : > { %2957 = vsyncadd (%p4284_p2), [#allocation7], 4294959104  ;;  %v2588_v0 = vld [vmem:[#allocation6 + $0x4] ss:$8 sps:$4 sm:$0xff]   ;;  %v2590_v1 = vld [vmem:[#allocation6] ss:$8 sps:$4 sm:$0xff]  }
  0x6e   : > { %693 = vmatprep.subr.bf16.mxu0 %v2588_v0  ;;  %v2591_v2 = vld [vmem:[#allocation6 + $0x14] ss:$8 sps:$4 sm:$0xff]   ;;  %v2593_v3 = vld [vmem:[#allocation6 + $0x10] ss:$8 sps:$4 sm:$0xff]   ;;  %v2594_v4 = vld [vmem:[#allocation6 + $0x24] ss:$8 sps:$4 sm:$0xff]  }
  0x6f   : > { %694 = vmatpush1.bf16.msra.mxu0 %v2590_v1  ;;  %v2596_v5 = vld [vmem:[#allocation6 + $0x20] ss:$8 sps:$4 sm:$0xff]   ;;  %v2597_v6 = vld [vmem:[#allocation6 + $0x34] ss:$8 sps:$4 sm:$0xff]   ;;  %v2599_v7 = vld [vmem:[#allocation6 + $0x30] ss:$8 sps:$4 sm:$0xff]  }
  0x70   : > { %695 = vmatprep.subr.bf16.mxu0 %v2591_v2  ;;  %v2600_v8 = vld [vmem:[#allocation6 + $0x44] ss:$8 sps:$4 sm:$0xff]   ;;  %v2602_v9 = vld [vmem:[#allocation6 + $0x40] ss:$8 sps:$4 sm:$0xff]   ;;  %v2603_v10 = vld [vmem:[#allocation6 + $0x54] ss:$8 sps:$4 sm:$0xff]  }
  0x71   : > { %v2605_v11 = vld [vmem:[#allocation6 + $0x50] ss:$8 sps:$4 sm:$0xff]   ;;  %v2606_v12 = vld [vmem:[#allocation6 + $0x64] ss:$8 sps:$4 sm:$0xff]   ;;  %v2608_v16 = vld [vmem:[#allocation6 + $0x60] ss:$8 sps:$4 sm:$0xff]  }
  0x72   : > { %v394_v13 = vld [vmem:[%s3220_s27 + $0x8] sm:$0xff]  ;;  %v396_v14 = vld [vmem:[%s3220_s27 + $0x18] sm:$0xff]  ;;  %v393_v38 = vld [vmem:[%s3220_s27] sm:$0xff]  ;;  %s4079_s7 = scalar_lea.vmem [#allocation9], %s2421_s17  ;;  %s2498_s9 = sshll.u32 %s2976_s21, 13 }
  0x73   : > { %696 = vmatpush1.bf16.msra.mxu0 %v2593_v3  ;;  %v458_v15 = vpack.c.bf16 %v396_v14, %v394_v13  ;;  %v2609_v17 = vld [vmem:[#allocation6 + $0x74] ss:$8 sps:$4 sm:$0xff]   ;;  %v2611_v18 = vld [vmem:[#allocation6 + $0x70] ss:$8 sps:$4 sm:$0xff]   ;;  %v2612_v19 = vld [vmem:[#allocation6 + $0x84] ss:$8 sps:$4 sm:$0xff]   ;;  %s4208_s13 = scalar_lea.hbm %s4268_s5, %s2498_s9 }
  0x74   : > { %697 = vmatprep.subr.bf16.mxu0 %v2594_v4  ;;  %v2614_v20 = vld [vmem:[#allocation6 + $0x80] ss:$8 sps:$4 sm:$0xff]   ;;  %v2615_v21 = vld [vmem:[#allocation6 + $0x94] ss:$8 sps:$4 sm:$0xff]   ;;  %v2617_v22 = vld [vmem:[#allocation6 + $0x90] ss:$8 sps:$4 sm:$0xff]  }
  0x75   : > { %725 = vmatprep.mubr.bf16.mxu0 %v458_v15  ;;  %v2618_v23 = vld [vmem:[#allocation6 + $0xa4] ss:$8 sps:$4 sm:$0xff]   ;;  %v2620_v24 = vld [vmem:[#allocation6 + $0xa0] ss:$8 sps:$4 sm:$0xff]   ;;  %v2621_v25 = vld [vmem:[#allocation6 + $0xb4] ss:$8 sps:$4 sm:$0xff]  }
  0x76   : > { %v2623_v26 = vld [vmem:[#allocation6 + $0xb0] ss:$8 sps:$4 sm:$0xff]   ;;  %v2624_v27 = vld [vmem:[#allocation6 + $0xc4] ss:$8 sps:$4 sm:$0xff]   ;;  %v2626_v28 = vld [vmem:[#allocation6 + $0xc0] ss:$8 sps:$4 sm:$0xff]  }
  0x77   : > { %698 = vmatpush1.bf16.msra.mxu0 %v2596_v5  ;;  %v2627_v29 = vld [vmem:[#allocation6 + $0xd4] ss:$8 sps:$4 sm:$0xff]   ;;  %v2629_v30 = vld [vmem:[#allocation6 + $0xd0] ss:$8 sps:$4 sm:$0xff]   ;;  %v2630_v31 = vld [vmem:[#allocation6 + $0xe4] ss:$8 sps:$4 sm:$0xff]  }
  0x78   : > { %699 = vmatprep.subr.bf16.mxu0 %v2597_v6  ;;  %v2632_v32 = vld [vmem:[#allocation6 + $0xe0] ss:$8 sps:$4 sm:$0xff]   ;;  %v2633_v33 = vld [vmem:[#allocation6 + $0xf4] ss:$8 sps:$4 sm:$0xff]   ;;  %v2636_v34 = vld [vmem:[#allocation8 + $0x4] ss:$8 sps:$4 sm:$0xff]  }
  0x79   : > { %v2638_v35 = vld [vmem:[#allocation8] ss:$8 sps:$4 sm:$0xff]   ;;  %v2639_v36 = vld [vmem:[#allocation8 + $0x14] ss:$8 sps:$4 sm:$0xff]   ;;  %v2635_v37 = vld [vmem:[#allocation6 + $0xf0] ss:$8 sps:$4 sm:$0xff]   ;;  %1750 = vmatprep.subr.bf16.mxu1 %v2636_v34 }
  0x7a   : > { %v395_v39 = vld [vmem:[%s3220_s27 + $0x10] sm:$0xff]  ;;  %v398_v40 = vld [vmem:[%s3220_s27 + $0x28] sm:$0xff]  ;;  %v400_v41 = vld [vmem:[%s3220_s27 + $0x38] sm:$0xff]  ;;  %1751 = vmatpush1.bf16.msra.mxu1 %v2638_v35  ;;  %s2293_s11 = sshll.u32 %s4079_s7, 4  ;;  %s2279_s21 = scalar_lea.sflag [#allocation5], %s3214_s16  ;;  %s4210_s11 = int_to_ptr.vmem [resolvable:$true] %s2293_s11 }
  0x7b   : > { %700 = vmatpush1.bf16.msra.mxu0 %v2599_v7  ;;  %v2641_v42 = vld [vmem:[#allocation8 + $0x10] ss:$8 sps:$4 sm:$0xff]   ;;  %v457_v43 = vpack.c.bf16 %v395_v39, %v393_v38  ;;  %1752 = vmatprep.subr.bf16.mxu1 %v2639_v36  ;;  %v2642_v44 = vld [vmem:[#allocation8 + $0x24] ss:$8 sps:$4 sm:$0xff]   ;;  %v460_v45 = vpack.c.bf16 %v400_v41, %v398_v40  ;;  %v2644_v46 = vld [vmem:[#allocation8 + $0x20] ss:$8 sps:$4 sm:$0xff]  }
  0x7c   : > { %701 = vmatprep.subr.bf16.mxu0 %v2600_v8  ;;  %v2645_v47 = vld [vmem:[#allocation8 + $0x34] ss:$8 sps:$4 sm:$0xff]   ;;  %v397_v48 = vld [vmem:[%s3220_s27 + $0x20] sm:$0xff]  ;;  %v402_v50 = vld [vmem:[%s3220_s27 + $0x48] sm:$0xff]  ;;  %s2898_s25 = scalar_lea.vmem %s4210_s11, 8192  ;;  %p4287_p12 = scmp.ne.s32.totalorder %s4281_s8, 0 }
  0x7d   : > { %v399_v49 = vld [vmem:[%s3220_s27 + $0x30] sm:$0xff]  ;;  %v404_v51 = vld [vmem:[%s3220_s27 + $0x58] sm:$0xff]  ;;  %v2648_v54 = vld [vmem:[#allocation8 + $0x44] ss:$8 sps:$4 sm:$0xff]   ;;  %p2899_p8 = scmp.ne.s32.totalorder %s4210_s11, %s2898_s25  ;;  %s2993_s17 = smov [#allocation9]  }
  0x7e   : > { %1753 = vmatpush1.bf16.msra.mxu1 %v2641_v42  ;;  %v2647_v52 = vld [vmem:[#allocation8 + $0x30] ss:$8 sps:$4 sm:$0xff]   ;;  %v459_v53 = vpack.c.bf16 %v399_v49, %v397_v48  ;;  %v462_v55 = vpack.c.bf16 %v404_v51, %v402_v50  ;;  %v2650_v56 = vld [vmem:[#allocation8 + $0x40] ss:$8 sps:$4 sm:$0xff]   ;;  %v2651_v57 = vld [vmem:[#allocation8 + $0x54] ss:$8 sps:$4 sm:$0xff]  }
  0x7f   : > { %702 = vmatpush1.bf16.msra.mxu0 %v2602_v9  ;;  %1754 = vmatprep.subr.bf16.mxu1 %v2642_v44  ;;  %v401_v58 = vld [vmem:[%s3220_s27 + $0x40] sm:$0xff]  ;;  %v403_v59 = vld [vmem:[%s3220_s27 + $0x50] sm:$0xff]  ;;  %v406_v60 = vld [vmem:[%s3220_s27 + $0x68] sm:$0xff]  ;;  %p2900_p1 = pnand %p2899_p8, %p4287_p12  ;;  %s2902_s15 = sshll.u32 %s2993_s17, 4  ;;  %s2903_s15 = int_to_ptr.vmem [resolvable:$false] %s2902_s15 }
  0x80   : > { %703 = vmatprep.subr.bf16.mxu0 %v2603_v10  ;;  %v408_v61 = vld [vmem:[%s3220_s27 + $0x78] sm:$0xff]  ;;  %v461_v63 = vpack.c.bf16 %v403_v59, %v401_v58  ;;  %v2654_v0 = vld [vmem:[#allocation8 + $0x64] ss:$8 sps:$4 sm:$0xff]   ;;  %v2656_v2 = vld [vmem:[#allocation8 + $0x60] ss:$8 sps:$4 sm:$0xff]   ;;  %p2905_p3 = scmp.lt.s32.totalorder %s4210_s11, %s2903_s15 }
  0x81   : > { %v2653_v62 = vld [vmem:[#allocation8 + $0x50] ss:$8 sps:$4 sm:$0xff]   ;;  %v464_v1 = vpack.c.bf16 %v408_v61, %v406_v60  ;;  %v405_v3 = vld [vmem:[%s3220_s27 + $0x60] sm:$0xff]  ;;  %v410_v5 = vld [vmem:[%s3220_s27 + $0x88] sm:$0xff]  ;;  %p2901_p10 = pneg %p2900_p1 }
  0x82   : > { %1755 = vmatpush1.bf16.msra.mxu1 %v2644_v46  ;;  %v407_v4 = vld [vmem:[%s3220_s27 + $0x70] sm:$0xff]  ;;  %v412_v6 = vld [vmem:[%s3220_s27 + $0x98] sm:$0xff]  ;;  %v409_v9 = vld [vmem:[%s3220_s27 + $0x80] sm:$0xff] }
  0x83   : > { %704 = vmatpush1.bf16.msra.mxu0 %v2605_v11  ;;  %1756 = vmatprep.subr.bf16.mxu1 %v2645_v47  ;;  %v463_v7 = vpack.c.bf16 %v407_v4, %v405_v3  ;;  %v466_v8 = vpack.c.bf16 %v412_v6, %v410_v5  ;;  %v411_v10 = vld [vmem:[%s3220_s27 + $0x90] sm:$0xff]  ;;  %v414_v11 = vld [vmem:[%s3220_s27 + $0xa8] sm:$0xff]  ;;  %v413_v15 = vld [vmem:[%s3220_s27 + $0xa0] sm:$0xff] }
  0x84   : > { %705 = vmatprep.subr.bf16.mxu0 %v2606_v12  ;;  %v416_v12 = vld [vmem:[%s3220_s27 + $0xb8] sm:$0xff]  ;;  %v465_v13 = vpack.c.bf16 %v411_v10, %v409_v9  ;;  %v427_v34 = vld [vmem:[%s3220_s27 + $0x110] sm:$0xff]  ;;  %v430_v35 = vld [vmem:[%s3220_s27 + $0x128] sm:$0xff] }
  0x85   : > { %v468_v14 = vpack.c.bf16 %v416_v12, %v414_v11  ;;  %v432_v36 = vld [vmem:[%s3220_s27 + $0x138] sm:$0xff]  ;;  %v429_v39 = vld [vmem:[%s3220_s27 + $0x120] sm:$0xff]  ;;  %v431_v40 = vld [vmem:[%s3220_s27 + $0x130] sm:$0xff] }
  0x86   : > { %1757 = vmatpush1.bf16.msra.mxu1 %v2647_v52  ;;  %v476_v38 = vpack.c.bf16 %v432_v36, %v430_v35  ;;  %v434_v41 = vld [vmem:[%s3220_s27 + $0x148] sm:$0xff]  ;;  %v436_v42 = vld [vmem:[%s3220_s27 + $0x158] sm:$0xff]  ;;  %v435_v46 = vld [vmem:[%s3220_s27 + $0x150] sm:$0xff] }
  0x87   : > { %706 = vmatpush1.bf16.msra.mxu0 %v2608_v16  ;;  %1758 = vmatprep.subr.bf16.mxu1 %v2648_v54  ;;  %v415_v16 = vld [vmem:[%s3220_s27 + $0xb0] sm:$0xff]  ;;  %v478_v44 = vpack.c.bf16 %v436_v42, %v434_v41  ;;  %v438_v47 = vld [vmem:[%s3220_s27 + $0x168] sm:$0xff]  ;;  %v440_v48 = vld [vmem:[%s3220_s27 + $0x178] sm:$0xff] }
  0x88   : > { %707 = vmatprep.subr.bf16.mxu0 %v2609_v17  ;;  %v418_v17 = vld [vmem:[%s3220_s27 + $0xc8] sm:$0xff]  ;;  %v480_v50 = vpack.c.bf16 %v440_v48, %v438_v47  ;;  %v437_v51 = vld [vmem:[%s3220_s27 + $0x160] sm:$0xff]  ;;  %v439_v52 = vld [vmem:[%s3220_s27 + $0x170] sm:$0xff] }
  0x89   : > { %v442_v54 = vld [vmem:[%s3220_s27 + $0x188] sm:$0xff]  ;;  %v441_v61 = vld [vmem:[%s3220_s27 + $0x180] sm:$0xff]  ;;  %v2669_v9 = vld [vmem:[#allocation8 + $0xb4] ss:$8 sps:$4 sm:$0xff]  }
  0x8a   : > { %1759 = vmatpush1.bf16.msra.mxu1 %v2650_v56  ;;  %v2659_v56 = vld [vmem:[#allocation8 + $0x70] ss:$8 sps:$4 sm:$0xff]   ;;  %v2660_v59 = vld [vmem:[#allocation8 + $0x84] ss:$8 sps:$4 sm:$0xff]   ;;  %v2662_v60 = vld [vmem:[#allocation8 + $0x80] ss:$8 sps:$4 sm:$0xff]  }
  0x8b   : > { %708 = vmatpush1.bf16.msra.mxu0 %v2611_v18  ;;  %1760 = vmatprep.subr.bf16.mxu1 %v2651_v57  ;;  %v420_v18 = vld [vmem:[%s3220_s27 + $0xd8] sm:$0xff]  ;;  %v479_v57 = vpack.c.bf16 %v439_v52, %v437_v51  ;;  %v2666_v5 = vld [vmem:[#allocation8 + $0xa4] ss:$8 sps:$4 sm:$0xff]   ;;  %v2668_v6 = vld [vmem:[#allocation8 + $0xa0] ss:$8 sps:$4 sm:$0xff]  }
  0x8c   : > { %709 = vmatprep.subr.bf16.mxu0 %v2612_v19  ;;  %v467_v19 = vpack.c.bf16 %v415_v16, %v413_v15  ;;  %v450_v10 = vld [vmem:[%s3220_s27 + $0x1c8] sm:$0xff]  ;;  %v452_v11 = vld [vmem:[%s3220_s27 + $0x1d8] sm:$0xff]  ;;  %v521_v35 = vld [vmem:[%s4265_s2] sm:$0x3] }
  0x8d   : > { %v2671_v12 = vld [vmem:[#allocation8 + $0xb0] ss:$8 sps:$4 sm:$0xff]   ;;  %v2672_v15 = vld [vmem:[#allocation8 + $0xc4] ss:$8 sps:$4 sm:$0xff]   ;;  %v2674_v16 = vld [vmem:[#allocation8 + $0xc0] ss:$8 sps:$4 sm:$0xff]  }
  0x8e   : > { %1761 = vmatpush1.bf16.msra.mxu1 %v2653_v62  ;;  %v443_v62 = vld [vmem:[%s3220_s27 + $0x190] sm:$0xff] }
  0x8f   : > { %710 = vmatpush1.bf16.msra.mxu0 %v2614_v20  ;;  %1762 = vmatprep.subr.bf16.mxu1 %v2654_v0  ;;  %v470_v20 = vpack.c.bf16 %v420_v18, %v418_v17  ;;  %v446_v0 = vld [vmem:[%s3220_s27 + $0x1a8] sm:$0xff]  ;;  %v481_v3 = vpack.c.bf16 %v443_v62, %v441_v61  ;;  %v449_v17 = vld [vmem:[%s3220_s27 + $0x1c0] sm:$0xff]  ;;  %v451_v18 = vld [vmem:[%s3220_s27 + $0x1d0] sm:$0xff] }
  0x90   : > { %711 = vmatprep.subr.bf16.mxu0 %v2615_v21  ;;  %v417_v21 = vld [vmem:[%s3220_s27 + $0xc0] sm:$0xff] }
  0x92   : > { %1763 = vmatpush1.bf16.msra.mxu1 %v2656_v2  ;;  %v2665_v2 = vld [vmem:[#allocation8 + $0x90] ss:$8 sps:$4 sm:$0xff]  }
  0x93   : > { %712 = vmatpush1.bf16.msra.mxu0 %v2617_v22  ;;  %v419_v22 = vld [vmem:[%s3220_s27 + $0xd0] sm:$0xff] }
  0x94   : > { %713 = vmatprep.subr.bf16.mxu0 %v2618_v23  ;;  %v422_v23 = vld [vmem:[%s3220_s27 + $0xe8] sm:$0xff] }
  0x97   : > { %714 = vmatpush1.bf16.msra.mxu0 %v2620_v24  ;;  %v424_v24 = vld [vmem:[%s3220_s27 + $0xf8] sm:$0xff] }
  0x98   : > { %715 = vmatprep.subr.bf16.mxu0 %v2621_v25  ;;  %v469_v25 = vpack.c.bf16 %v419_v22, %v417_v21  ;;  %v456_v21 = vld [vmem:[%s3220_s27 + $0x1f8] sm:$0xff] }
  0x99   : > { %v2677_v22 = vld [vmem:[#allocation8 + $0xd0] ss:$8 sps:$4 sm:$0xff]  }
  0x9b   : > { %716 = vmatpush1.bf16.msra.mxu0 %v2623_v26  ;;  %v472_v26 = vpack.c.bf16 %v424_v24, %v422_v23  ;;  %v485_v23 = vpack.c.bf16 %v451_v18, %v449_v17 }
  0x9c   : > { %717 = vmatprep.subr.bf16.mxu0 %v2624_v27  ;;  %v421_v27 = vld [vmem:[%s3220_s27 + $0xe0] sm:$0xff] }
  0x9f   : > { %718 = vmatpush1.bf16.msra.mxu0 %v2626_v28  ;;  %v423_v28 = vld [vmem:[%s3220_s27 + $0xf0] sm:$0xff] }
  0xa0   : > { %719 = vmatprep.subr.bf16.mxu0 %v2627_v29  ;;  %v426_v29 = vld [vmem:[%s3220_s27 + $0x108] sm:$0xff] }
  0xa3   : > { %720 = vmatpush1.bf16.msra.mxu0 %v2629_v30  ;;  %v428_v30 = vld [vmem:[%s3220_s27 + $0x118] sm:$0xff] }
  0xa4   : > { %721 = vmatprep.subr.bf16.mxu0 %v2630_v31  ;;  %v471_v31 = vpack.c.bf16 %v423_v28, %v421_v27  ;;  %v453_v27 = vld [vmem:[%s3220_s27 + $0x1e0] sm:$0xff]  ;;  %v455_v28 = vld [vmem:[%s3220_s27 + $0x1f0] sm:$0xff] }
  0xa7   : > { %722 = vmatpush1.bf16.msra.mxu0 %v2632_v32  ;;  %v474_v32 = vpack.c.bf16 %v428_v30, %v426_v29  ;;  %v2681_v29 = vld [vmem:[#allocation8 + $0xf4] ss:$8 sps:$4 sm:$0xff]   ;;  %v2683_v30 = vld [vmem:[#allocation8 + $0xf0] ss:$8 sps:$4 sm:$0xff]  }
  0xa8   : > { %723 = vmatprep.subr.bf16.mxu0 %v2633_v33  ;;  %v425_v33 = vld [vmem:[%s3220_s27 + $0x100] sm:$0xff] }
  0xab   : > { %724 = vmatpush1.bf16.msra.mxu0 %v2635_v37  ;;  %v473_v37 = vpack.c.bf16 %v427_v34, %v425_v33 }
  0xae   : > { %726 = vmatmul.mubr.bf16.vlgmr.msra.gmra.mrb[0].mxu0 %v457_v43  ;;  %v475_v43 = vpack.c.bf16 %v431_v40, %v429_v39 }
  0xaf   : > { %735 = vmatprep.mubr.bf16.mxu0 %v460_v45  ;;  %v433_v45 = vld [vmem:[%s3220_s27 + $0x140] sm:$0xff] }
  0xb0   : > { %v477_v49 = vpack.c.bf16 %v435_v46, %v433_v45 }
  0xb6   : > { %736 = vmatmul.mubr.bf16.gmra.mrb[4].mxu0 %v459_v53  ;;  %v2657_v53 = vld [vmem:[#allocation8 + $0x74] ss:$8 sps:$4 sm:$0xff]  }
  0xb7   : > { %745 = vmatprep.mubr.bf16.mxu0 %v462_v55  ;;  %v444_v55 = vld [vmem:[%s3220_s27 + $0x198] sm:$0xff]  ;;  %1764 = vmatprep.subr.bf16.mxu1 %v2657_v53 }
  0xb8   : > { %1765 = vmatpush1.bf16.msra.mxu1 %v2659_v56  ;;  %v482_v58 = vpack.c.bf16 %v444_v55, %v442_v54 }
  0xb9   : > { %1766 = vmatprep.subr.bf16.mxu1 %v2660_v59 }
  0xbc   : > { %1767 = vmatpush1.bf16.msra.mxu1 %v2662_v60 }
  0xbe   : > { %746 = vmatmul.mubr.bf16.gmra.mrb[8].mxu0 %v461_v63  ;;  %v2663_v63 = vld [vmem:[#allocation8 + $0x94] ss:$8 sps:$4 sm:$0xff]  }
  0xbf   : > { %755 = vmatprep.mubr.bf16.mxu0 %v464_v1  ;;  %v448_v1 = vld [vmem:[%s3220_s27 + $0x1b8] sm:$0xff]  ;;  %1768 = vmatprep.subr.bf16.mxu1 %v2663_v63 }
  0xc0   : > { %1769 = vmatpush1.bf16.msra.mxu1 %v2665_v2  ;;  %v484_v4 = vpack.c.bf16 %v448_v1, %v446_v0 }
  0xc1   : > { %1770 = vmatprep.subr.bf16.mxu1 %v2666_v5 }
  0xc4   : > { %1771 = vmatpush1.bf16.msra.mxu1 %v2668_v6 }
  0xc5   : > { %1772 = vmatprep.subr.bf16.mxu1 %v2669_v9 }
  0xc6   : > { %756 = vmatmul.mubr.bf16.gmra.mrb[12].mxu0 %v463_v7  ;;  %v445_v7 = vld [vmem:[%s3220_s27 + $0x1a0] sm:$0xff] }
  0xc7   : > { %765 = vmatprep.mubr.bf16.mxu0 %v466_v8  ;;  %v447_v8 = vld [vmem:[%s3220_s27 + $0x1b0] sm:$0xff] }
  0xc8   : > { %1773 = vmatpush1.bf16.msra.mxu1 %v2671_v12 }
  0xc9   : > { %1774 = vmatprep.subr.bf16.mxu1 %v2672_v15 }
  0xcc   : > { %1775 = vmatpush1.bf16.msra.mxu1 %v2674_v16 }
  0xce   : > { %766 = vmatmul.mubr.bf16.gmra.mrb[16].mxu0 %v465_v13  ;;  %v483_v13 = vpack.c.bf16 %v447_v8, %v445_v7 }
  0xcf   : > { %775 = vmatprep.mubr.bf16.mxu0 %v468_v14  ;;  %v486_v14 = vpack.c.bf16 %v452_v11, %v450_v10 }
  0xd6   : > { %776 = vmatmul.mubr.bf16.gmra.mrb[20].mxu0 %v467_v19  ;;  %v2675_v19 = vld [vmem:[#allocation8 + $0xd4] ss:$8 sps:$4 sm:$0xff]  }
  0xd7   : > { %785 = vmatprep.mubr.bf16.mxu0 %v470_v20  ;;  %v454_v20 = vld [vmem:[%s3220_s27 + $0x1e8] sm:$0xff]  ;;  %1776 = vmatprep.subr.bf16.mxu1 %v2675_v19  ;;  %s2904_s27 = scalar_lea.vmem %s2903_s15, 16384 }
  0xd8   : > { %1777 = vmatpush1.bf16.msra.mxu1 %v2677_v22  ;;  %v488_v24 = vpack.c.bf16 %v456_v21, %v454_v20  ;;  %p2906_p5 = scmp.lt.s32.totalorder %s2904_s27, %s2898_s25 }
  0xda   : > { %p2907_p9 = por %p2906_p5, %p2905_p3 }
  0xdc   : > { %p2908_p11 = pnand %p2907_p9, %p2901_p10 }
  0xde   : > { %786 = vmatmul.mubr.bf16.gmra.mrb[24].mxu0 %v469_v25  ;;  %v2678_v25 = vld [vmem:[#allocation8 + $0xe4] ss:$8 sps:$4 sm:$0xff]  }
  0xdf   : > { %795 = vmatprep.mubr.bf16.mxu0 %v472_v26  ;;  %v2680_v26 = vld [vmem:[#allocation8 + $0xe0] ss:$8 sps:$4 sm:$0xff]   ;;  %1778 = vmatprep.subr.bf16.mxu1 %v2678_v25 }
  0xe0   : > { %1779 = vmatpush1.bf16.msra.mxu1 %v2680_v26 }
  0xe1   : > { %1780 = vmatprep.subr.bf16.mxu1 %v2681_v29 }
  0xe4   : > { %1781 = vmatpush1.bf16.msra.mxu1 %v2683_v30 }
  0xe6   : > { %796 = vmatmul.mubr.bf16.gmra.mrb[28].mxu0 %v471_v31  ;;  %v487_v31 = vpack.c.bf16 %v455_v28, %v453_v27 }
  0xe7   : > { %805 = vmatprep.mubr.bf16.mxu0 %v474_v32  ;;  %v523_v32 = vlaneseq }
  0xe9   : > { %v3294_v33 = vshrl.u32 %v523_v32, 7 }
  0xeb   : > { %v4274_v34 = vsub.s32 0, %v3294_v33  ;;  %v4273_v36 = vsub.s32 1, %v3294_v33 }
  0xee   : > { %806 = vmatmul.mubr.bf16.gmra.mrb[32].mxu0 %v473_v37  ;;  %v3303_v37 = vrot.slane %v521_v35, %v4274_v34 }
  0xef   : > { %815 = vmatprep.mubr.bf16.mxu0 %v476_v38  ;;  %v3307_v38 = vrot.slane %v521_v35, %v4273_v36 }
  0xf6   : > { %816 = vmatmul.mubr.bf16.gmra.mrb[36].mxu0 %v475_v43 }
  0xf7   : > { %825 = vmatprep.mubr.bf16.mxu0 %v478_v44 }
  0xfe   : > { %826 = vmatmul.mubr.bf16.gmra.mrb[40].mxu0 %v477_v49 }
  0xff   : > { %835 = vmatprep.mubr.bf16.mxu0 %v480_v50 }
 0x106   : > { %836 = vmatmul.mubr.bf16.gmra.mrb[44].mxu0 %v479_v57 }
 0x107   : > { %845 = vmatprep.mubr.bf16.mxu0 %v482_v58 }
 0x10e   : > { %846 = vmatmul.mubr.bf16.gmra.mrb[48].mxu0 %v481_v3 }
 0x10f   : > { %855 = vmatprep.mubr.bf16.mxu0 %v484_v4 }
 0x116   : > { %856 = vmatmul.mubr.bf16.gmra.mrb[52].mxu0 %v483_v13 }
 0x117   : > { %865 = vmatprep.mubr.bf16.mxu0 %v486_v14 }
 0x11e   : > { %866 = vmatmul.mubr.bf16.gmra.mrb[56].mxu0 %v485_v23 }
 0x11f   : > { %875 = vmatprep.mubr.bf16.mxu0 %v488_v24 }
 0x126   : > { %876 = vmatmul.mubr.bf16.gmra.mrb[60].mxu0 %v487_v31 }
 0x181   : > { %v727_v39 = vpop.f32.mrb[0].mxu0 }
 0x182   : > { %v3310_v40 = vadd.f32 %v727_v39, %v3303_v37  ;;  %v729_v41 = vpop.f32.mrb[1].mxu0 }
 0x183   : > { %v3313_v42 = vadd.f32 %v729_v41, %v3307_v38  ;;  %v731_v43 = vpop.f32.mrb[2].mxu0 }
 0x184   : > { %v886_v44 = vmul.f32 %v3310_v40, %v3310_v40  ;;  %v3318_v45 = vadd.f32 %v731_v43, %v3303_v37  ;;  %v733_v46 = vpop.f32.mrb[3].mxu0 }
 0x185   : > { %v887_v47 = vmul.f32 %v3313_v42, %v3313_v42  ;;  %v3323_v48 = vadd.f32 %v733_v46, %v3307_v38 }
 0x186   : > { %v950_v49 = vmul.f32 %v886_v44, %v3310_v40  ;;  %v888_v50 = vmul.f32 %v3318_v45, %v3318_v45 }
 0x187   : > { %v951_v51 = vmul.f32 %v887_v47, %v3313_v42  ;;  %v889_v52 = vmul.f32 %v3323_v48, %v3323_v48 }
 0x188   : > { %v1014_v53 = vmul.f32 0.044715, %v950_v49  ;;  %v952_v54 = vmul.f32 %v888_v50, %v3318_v45 }
 0x189   : > { %v1015_v55 = vmul.f32 0.044715, %v951_v51  ;;  %v953_v56 = vmul.f32 %v889_v52, %v3323_v48  ;;  %v737_v57 = vpop.f32.mrb[4].mxu0 }
 0x18a   : > { %v1078_v58 = vadd.f32 %v1014_v53, %v3310_v40  ;;  %v1016_v59 = vmul.f32 0.044715, %v952_v54  ;;  %v3335_v60 = vadd.f32 %v737_v57, %v3303_v37  ;;  %v739_v61 = vpop.f32.mrb[5].mxu0 }
 0x18b   : > { %v1017_v62 = vmul.f32 0.044715, %v953_v56  ;;  %v3338_v63 = vadd.f32 %v739_v61, %v3307_v38  ;;  %v741_v0 = vpop.f32.mrb[6].mxu0  ;;  %v1079_v1 = vadd.f32 %v1015_v55, %v3313_v42 }
 0x18c   : > { %v1142_v2 = vmul.f32 0.7978846, %v1078_v58  ;;  %v1080_v3 = vadd.f32 %v1016_v59, %v3318_v45  ;;  %v890_v4 = vmul.f32 %v3335_v60, %v3335_v60  ;;  %v3345_v5 = vadd.f32 %v741_v0, %v3303_v37  ;;  %v743_v6 = vpop.f32.mrb[7].mxu0 }
 0x18d   : > { %v891_v7 = vmul.f32 %v3338_v63, %v3338_v63  ;;  %v3350_v8 = vadd.f32 %v743_v6, %v3307_v38  ;;  %v1081_v9 = vadd.f32 %v1017_v62, %v3323_v48  ;;  %v1143_v10 = vmul.f32 0.7978846, %v1079_v1 }
 0x18e   : > { %2684 = vtanh.f32 %v1142_v2  ;;  %v1144_v11 = vmul.f32 0.7978846, %v1080_v3  ;;  %v954_v12 = vmul.f32 %v890_v4, %v3335_v60  ;;  %v892_v13 = vmul.f32 %v3345_v5, %v3345_v5 }
 0x18f   : > { %v955_v14 = vmul.f32 %v891_v7, %v3338_v63  ;;  %v893_v15 = vmul.f32 %v3350_v8, %v3350_v8  ;;  %v1145_v16 = vmul.f32 0.7978846, %v1081_v9  ;;  %2686 = vtanh.f32 %v1143_v10 }
 0x190   : > { %2688 = vtanh.f32 %v1144_v11  ;;  %v1018_v17 = vmul.f32 0.044715, %v954_v12  ;;  %v956_v18 = vmul.f32 %v892_v13, %v3345_v5 }
 0x191   : > { %v1019_v19 = vmul.f32 0.044715, %v955_v14  ;;  %v957_v20 = vmul.f32 %v893_v15, %v3350_v8  ;;  %v747_v21 = vpop.f32.mrb[8].mxu0  ;;  %2690 = vtanh.f32 %v1145_v16 }
 0x192   : > { %v1082_v22 = vadd.f32 %v1018_v17, %v3335_v60  ;;  %v1020_v23 = vmul.f32 0.044715, %v956_v18  ;;  %v3363_v24 = vadd.f32 %v747_v21, %v3303_v37  ;;  %v749_v25 = vpop.f32.mrb[9].mxu0 }
 0x193   : > { %v1083_v26 = vadd.f32 %v1019_v19, %v3338_v63  ;;  %v1021_v27 = vmul.f32 0.044715, %v957_v20  ;;  %v3367_v28 = vadd.f32 %v749_v25, %v3307_v38  ;;  %v751_v29 = vpop.f32.mrb[10].mxu0 }
 0x194   : > { %v1146_v30 = vmul.f32 0.7978846, %v1082_v22  ;;  %v1084_v31 = vadd.f32 %v1020_v23, %v3345_v5  ;;  %v894_v32 = vmul.f32 %v3363_v24, %v3363_v24  ;;  %v3373_v35 = vadd.f32 %v751_v29, %v3303_v37  ;;  %v753_v39 = vpop.f32.mrb[11].mxu0 }
 0x195   : > { %v1147_v41 = vmul.f32 0.7978846, %v1083_v26  ;;  %v1085_v43 = vadd.f32 %v1021_v27, %v3350_v8  ;;  %v895_v44 = vmul.f32 %v3367_v28, %v3367_v28  ;;  %v3379_v46 = vadd.f32 %v753_v39, %v3307_v38 }
 0x196   : > { %2692 = vtanh.f32 %v1146_v30  ;;  %v1148_v47 = vmul.f32 0.7978846, %v1084_v31  ;;  %v958_v49 = vmul.f32 %v894_v32, %v3363_v24  ;;  %v896_v50 = vmul.f32 %v3373_v35, %v3373_v35 }
 0x197   : > { %2694 = vtanh.f32 %v1147_v41  ;;  %v1149_v51 = vmul.f32 0.7978846, %v1085_v43  ;;  %v959_v52 = vmul.f32 %v895_v44, %v3367_v28  ;;  %v897_v53 = vmul.f32 %v3379_v46, %v3379_v46 }
 0x198   : > { %v2685_v54 = vpop.eup %2684  ;;  %2696 = vtanh.f32 %v1148_v47  ;;  %v1022_v55 = vmul.f32 0.044715, %v958_v49  ;;  %v960_v56 = vmul.f32 %v896_v50, %v3373_v35 }
 0x199   : > { %v2687_v57 = vpop.eup %2686  ;;  %2698 = vtanh.f32 %v1149_v51  ;;  %v1023_v58 = vmul.f32 0.044715, %v959_v52  ;;  %v961_v59 = vmul.f32 %v897_v53, %v3379_v46  ;;  %v757_v61 = vpop.f32.mrb[12].mxu0  ;;  %v3389_v62 = vadd.f32 1.0, %v2685_v54 }
 0x19a   : > { %v2689_v0 = vpop.eup %2688  ;;  %v1086_v1 = vadd.f32 %v1022_v55, %v3363_v24  ;;  %v1024_v2 = vmul.f32 0.044715, %v960_v56  ;;  %v3393_v3 = vadd.f32 %v757_v61, %v3303_v37  ;;  %v759_v4 = vpop.f32.mrb[13].mxu0  ;;  %v1271_v6 = vadd.f32 1.0, %v2687_v57 }
 0x19b   : > { %v1087_v7 = vadd.f32 %v1023_v58, %v3367_v28  ;;  %v1025_v9 = vmul.f32 0.044715, %v961_v59  ;;  %v3397_v10 = vadd.f32 %v759_v4, %v3307_v38  ;;  %v761_v11 = vpop.f32.mrb[14].mxu0  ;;  %v3399_v12 = vadd.f32 1.0, %v2689_v0  ;;  %v2691_v18 = vpop.eup %2690 }
 0x19c   : > { %v1150_v13 = vmul.f32 0.7978846, %v1086_v1  ;;  %v1088_v14 = vadd.f32 %v1024_v2, %v3373_v35  ;;  %v898_v15 = vmul.f32 %v3393_v3, %v3393_v3  ;;  %v3405_v16 = vadd.f32 %v761_v11, %v3303_v37  ;;  %v763_v17 = vpop.f32.mrb[15].mxu0 }
 0x19d   : > { %v1151_v19 = vmul.f32 0.7978846, %v1087_v7  ;;  %v1089_v20 = vadd.f32 %v1025_v9, %v3379_v46  ;;  %v899_v21 = vmul.f32 %v3397_v10, %v3397_v10  ;;  %v3411_v22 = vadd.f32 %v763_v17, %v3307_v38 }
 0x19e   : > { %2700 = vtanh.f32 %v1150_v13  ;;  %v1152_v23 = vmul.f32 0.7978846, %v1088_v14  ;;  %v962_v25 = vmul.f32 %v898_v15, %v3393_v3  ;;  %v900_v26 = vmul.f32 %v3405_v16, %v3405_v16 }
 0x19f   : > { %2702 = vtanh.f32 %v1151_v19  ;;  %v1153_v27 = vmul.f32 0.7978846, %v1089_v20  ;;  %v963_v29 = vmul.f32 %v899_v21, %v3397_v10  ;;  %v901_v30 = vmul.f32 %v3411_v22, %v3411_v22 }
 0x1a0   : > { %v3419_v31 = vpop.eup %2692  ;;  %2704 = vtanh.f32 %v1152_v23  ;;  %v1026_v32 = vmul.f32 0.044715, %v962_v25  ;;  %v964_v39 = vmul.f32 %v900_v26, %v3405_v16  ;;  %v1273_v41 = vadd.f32 1.0, %v2691_v18 }
 0x1a1   : > { %v3422_v43 = vpop.eup %2694  ;;  %2706 = vtanh.f32 %v1153_v27  ;;  %v1027_v44 = vmul.f32 0.044715, %v963_v29  ;;  %v965_v47 = vmul.f32 %v901_v30, %v3411_v22  ;;  %v767_v49 = vpop.f32.mrb[16].mxu0  ;;  %v1335_v50 = vmul.f32 0.5, %v1271_v6 }
 0x1a2   : > { %v3425_v51 = vpop.eup %2696  ;;  %v1090_v52 = vadd.f32 %v1026_v32, %v3393_v3  ;;  %v1028_v53 = vmul.f32 0.044715, %v964_v39  ;;  %v3429_v54 = vadd.f32 %v767_v49, %v3303_v37  ;;  %v769_v55 = vpop.f32.mrb[17].mxu0  ;;  %v1337_v56 = vmul.f32 0.5, %v1273_v41 }
 0x1a3   : > { %v3431_v57 = vpop.eup %2698  ;;  %v1091_v58 = vadd.f32 %v1027_v44, %v3397_v10  ;;  %v1029_v59 = vmul.f32 0.044715, %v965_v47  ;;  %v3435_v61 = vadd.f32 %v769_v55, %v3307_v38  ;;  %v771_v0 = vpop.f32.mrb[18].mxu0  ;;  %v1399_v1 = vmul.f32 %v1335_v50, %v3313_v42 }
 0x1a4   : > { %v1154_v2 = vmul.f32 0.7978846, %v1090_v52  ;;  %v1092_v4 = vadd.f32 %v1028_v53, %v3405_v16  ;;  %v902_v6 = vmul.f32 %v3429_v54, %v3429_v54  ;;  %v3442_v7 = vadd.f32 %v771_v0, %v3303_v37  ;;  %v773_v9 = vpop.f32.mrb[19].mxu0 }
 0x1a5   : > { %v1155_v11 = vmul.f32 0.7978846, %v1091_v58  ;;  %v1093_v13 = vadd.f32 %v1029_v59, %v3411_v22  ;;  %v903_v14 = vmul.f32 %v3435_v61, %v3435_v61  ;;  %v3448_v15 = vadd.f32 %v773_v9, %v3307_v38 }
 0x1a6   : > { %2708 = vtanh.f32 %v1154_v2  ;;  %v1156_v42 = vmul.f32 0.7978846, %v1092_v4  ;;  %v966_v17 = vmul.f32 %v902_v6, %v3429_v54  ;;  %v904_v18 = vmul.f32 %v3442_v7, %v3442_v7 }
 0x1a7   : > { %2710 = vtanh.f32 %v1155_v11  ;;  %v1157_v19 = vmul.f32 0.7978846, %v1093_v13  ;;  %v967_v20 = vmul.f32 %v903_v14, %v3435_v61  ;;  %v905_v21 = vmul.f32 %v3448_v15, %v3448_v15 }
 0x1a8   : > { %v3456_v23 = vpop.eup %2700  ;;  %2712 = vtanh.f32 %v1156_v42  ;;  %v1030_v25 = vmul.f32 0.044715, %v966_v17  ;;  %v968_v26 = vmul.f32 %v904_v18, %v3442_v7  ;;  %v1401_v27 = vmul.f32 %v1337_v56, %v3323_v48 }
 0x1a9   : > { %v3460_v29 = vpop.eup %2702  ;;  %2714 = vtanh.f32 %v1157_v19  ;;  %v1031_v30 = vmul.f32 0.044715, %v967_v20  ;;  %v969_v32 = vmul.f32 %v905_v21, %v3448_v15  ;;  %v1334_v39 = vmul.f32 0.5, %v3389_v62  ;;  %v777_v41 = vpop.f32.mrb[20].mxu0 }
 0x1aa   : > { %v3464_v44 = vpop.eup %2704  ;;  %v1094_v47 = vadd.f32 %v1030_v25, %v3429_v54  ;;  %v1032_v49 = vmul.f32 0.044715, %v968_v26  ;;  %v1527_v50 = vpack.c.bf16 %v1401_v27, %v1399_v1  ;;  %v1336_v52 = vmul.f32 0.5, %v3399_v12  ;;  %v779_v53 = vpop.f32.mrb[21].mxu0 }
 0x1ab   : > { %v3468_v55 = vpop.eup %2706  ;;  %v1095_v48 = vadd.f32 %v1031_v30, %v3435_v61  ;;  %v1033_v56 = vmul.f32 0.044715, %v969_v32  ;;  %v1398_v58 = vmul.f32 %v1334_v39, %v3310_v40  ;;  %v3473_v59 = vadd.f32 %v777_v41, %v3303_v37  ;;  %v781_v62 = vpop.f32.mrb[22].mxu0 }
 0x1ac   : > { %v1158_v0 = vmul.f32 0.7978846, %v1094_v47  ;;  %v1096_v2 = vadd.f32 %v1032_v49, %v3442_v7  ;;  %1782 = vmatprep.mubr.bf16.mxu1 %v1527_v50  ;;  %v1400_v1 = vmul.f32 %v1336_v52, %v3318_v45  ;;  %v3478_v12 = vadd.f32 %v779_v53, %v3307_v38  ;;  %v783_v4 = vpop.f32.mrb[23].mxu0 }
 0x1ad   : > { %v1159_v6 = vmul.f32 0.7978846, %v1095_v48  ;;  %v1097_v9 = vadd.f32 %v1033_v56, %v3448_v15  ;;  %v906_v40 = vmul.f32 %v3473_v59, %v3473_v59  ;;  %v3484_v11 = vadd.f32 %v781_v62, %v3303_v37 }
 0x1ae   : > { %2716 = vtanh.f32 %v1158_v0  ;;  %v1160_v13 = vmul.f32 0.7978846, %v1096_v2  ;;  %v1526_v14 = vpack.c.bf16 %v1400_v1, %v1398_v58  ;;  %v907_v42 = vmul.f32 %v3478_v12, %v3478_v12 }
 0x1af   : > { %2718 = vtanh.f32 %v1159_v6  ;;  %v1161_v45 = vmul.f32 0.7978846, %v1097_v9  ;;  %v970_v17 = vmul.f32 %v906_v40, %v3473_v59  ;;  %v908_v18 = vmul.f32 %v3484_v11, %v3484_v11 }
 0x1b0   : > { %v3491_v19 = vpop.eup %2708  ;;  %2720 = vtanh.f32 %v1160_v13  ;;  %1783 = vmatmul.mubr.bf16.vlgmr.msra.gmra.mrb[0].mxu1 %v1526_v14  ;;  %v971_v20 = vmul.f32 %v907_v42, %v3478_v12  ;;  %v3495_v21 = vadd.f32 %v783_v4, %v3307_v38  ;;  %v1275_v25 = vadd.f32 1.0, %v3422_v43 }
 0x1b1   : > { %v3498_v26 = vpop.eup %2710  ;;  %2722 = vtanh.f32 %v1161_v45  ;;  %v1034_v27 = vmul.f32 0.044715, %v970_v17  ;;  %v972_v30 = vmul.f32 %v908_v18, %v3484_v11  ;;  %v1277_v32 = vadd.f32 1.0, %v3431_v57  ;;  %v787_v39 = vpop.f32.mrb[24].mxu0 }
 0x1b2   : > { %v3502_v41 = vpop.eup %2712  ;;  %v1035_v47 = vmul.f32 0.044715, %v971_v20  ;;  %v909_v49 = vmul.f32 %v3495_v21, %v3495_v21  ;;  %v1339_v50 = vmul.f32 0.5, %v1275_v25  ;;  %v1274_v52 = vadd.f32 1.0, %v3419_v31  ;;  %v789_v53 = vpop.f32.mrb[25].mxu0 }
 0x1b3   : > { %v3507_v43 = vpop.eup %2714  ;;  %v1098_v48 = vadd.f32 %v1034_v27, %v3473_v59  ;;  %v1036_v56 = vmul.f32 0.044715, %v972_v30  ;;  %v1341_v58 = vmul.f32 0.5, %v1277_v32  ;;  %v1276_v62 = vadd.f32 1.0, %v3425_v51  ;;  %v791_v57 = vpop.f32.mrb[26].mxu0 }
 0x1b4   : > { %v1099_v0 = vadd.f32 %v1035_v47, %v3478_v12  ;;  %v973_v2 = vmul.f32 %v909_v49, %v3495_v21  ;;  %v1403_v1 = vmul.f32 %v1339_v50, %v3338_v63  ;;  %v1338_v4 = vmul.f32 0.5, %v1274_v52  ;;  %v793_v6 = vpop.f32.mrb[27].mxu0 }
 0x1b5   : > { %v1162_v9 = vmul.f32 0.7978846, %v1098_v48  ;;  %v1100_v31 = vadd.f32 %v1036_v56, %v3484_v11  ;;  %v1405_v40 = vmul.f32 %v1341_v58, %v3350_v8  ;;  %v1340_v13 = vmul.f32 0.5, %v1276_v62 }
 0x1b6   : > { %v1163_v14 = vmul.f32 0.7978846, %v1099_v0  ;;  %v1037_v42 = vmul.f32 0.044715, %v973_v2  ;;  %v1402_v45 = vmul.f32 %v1338_v4, %v3335_v60  ;;  %v3518_v51 = vadd.f32 %v787_v39, %v3303_v37 }
 0x1b7   : > { %2724 = vtanh.f32 %v1162_v9  ;;  %v1164_v17 = vmul.f32 0.7978846, %v1100_v31  ;;  %v1529_v18 = vpack.c.bf16 %v1405_v40, %v1403_v1  ;;  %v1404_v63 = vmul.f32 %v1340_v13, %v3345_v5 }
 0x1b8   : > { %v3521_v20 = vpop.eup %2716  ;;  %2726 = vtanh.f32 %v1163_v14  ;;  %v1101_v25 = vadd.f32 %v1037_v42, %v3495_v21  ;;  %v910_v8 = vmul.f32 %v3518_v51, %v3518_v51  ;;  %v3527_v27 = vadd.f32 %v789_v53, %v3307_v38 }
 0x1b9   : > { %v3529_v60 = vpop.eup %2718  ;;  %2728 = vtanh.f32 %v1164_v17  ;;  %1792 = vmatprep.mubr.bf16.mxu1 %v1529_v18  ;;  %v1528_v30 = vpack.c.bf16 %v1404_v63, %v1402_v45  ;;  %v3532_v32 = vadd.f32 %v791_v57, %v3303_v37  ;;  %v3535_v5 = vadd.f32 %v793_v6, %v3307_v38  ;;  %v797_v39 = vpop.f32.mrb[28].mxu0 }
 0x1ba   : > { %v3537_v47 = vpop.eup %2720  ;;  %v1165_v49 = vmul.f32 0.7978846, %v1101_v25  ;;  %v974_v50 = vmul.f32 %v910_v8, %v3518_v51  ;;  %v911_v52 = vmul.f32 %v3527_v27, %v3527_v27  ;;  %v1279_v53 = vadd.f32 1.0, %v3460_v29  ;;  %v799_v48 = vpop.f32.mrb[29].mxu0 }
 0x1bb   : > { %v3543_v56 = vpop.eup %2722  ;;  %1793 = vmatmul.mubr.bf16.gmra.mrb[4].mxu1 %v1528_v30  ;;  %v912_v58 = vmul.f32 %v3532_v32, %v3532_v32  ;;  %v913_v62 = vmul.f32 %v3535_v5, %v3535_v5  ;;  %v1281_v57 = vadd.f32 1.0, %v3468_v55  ;;  %v1278_v0 = vadd.f32 1.0, %v3456_v23  ;;  %v801_v2 = vpop.f32.mrb[30].mxu0 }
 0x1bc   : > { %2730 = vtanh.f32 %v1165_v49  ;;  %v1038_v1 = vmul.f32 0.044715, %v974_v50  ;;  %v975_v4 = vmul.f32 %v911_v52, %v3527_v27  ;;  %v1343_v29 = vmul.f32 0.5, %v1279_v53  ;;  %v803_v6 = vpop.f32.mrb[31].mxu0 }
 0x1bd   : > { %v976_v9 = vmul.f32 %v912_v58, %v3532_v32  ;;  %v977_v31 = vmul.f32 %v913_v62, %v3535_v5  ;;  %v1345_v40 = vmul.f32 0.5, %v1281_v57  ;;  %v1280_v13 = vadd.f32 1.0, %v3464_v44 }
 0x1be   : > { %v1102_v14 = vadd.f32 %v1038_v1, %v3518_v51  ;;  %v1039_v42 = vmul.f32 0.044715, %v975_v4  ;;  %v1407_v55 = vmul.f32 %v1343_v29, %v3367_v28  ;;  %v1342_v23 = vmul.f32 0.5, %v1278_v0 }
 0x1bf   : > { %v1040_v45 = vmul.f32 0.044715, %v976_v9  ;;  %v1041_v17 = vmul.f32 0.044715, %v977_v31  ;;  %v1409_v18 = vmul.f32 %v1345_v40, %v3379_v46  ;;  %v1344_v63 = vmul.f32 0.5, %v1280_v13 }
 0x1c0   : > { %v1166_v25 = vmul.f32 0.7978846, %v1102_v14  ;;  %v1103_v8 = vadd.f32 %v1039_v42, %v3527_v27  ;;  %v1406_v30 = vmul.f32 %v1342_v23, %v3363_v24  ;;  %v3561_v49 = vadd.f32 %v797_v39, %v3303_v37 }
 0x1c1   : > { %v3563_v44 = vpop.eup %2724  ;;  %v1104_v50 = vadd.f32 %v1040_v45, %v3532_v32  ;;  %v1105_v28 = vadd.f32 %v1041_v17, %v3535_v5  ;;  %v1531_v52 = vpack.c.bf16 %v1409_v18, %v1407_v55  ;;  %v1408_v53 = vmul.f32 %v1344_v63, %v3373_v35  ;;  %v807_v58 = vpop.f32.mrb[32].mxu0 }
 0x1c2   : > { %v3568_v46 = vpop.eup %2726  ;;  %2732 = vtanh.f32 %v1166_v25  ;;  %v1167_v62 = vmul.f32 0.7978846, %v1103_v8  ;;  %v914_v24 = vmul.f32 %v3561_v49, %v3561_v49  ;;  %v3573_v39 = vadd.f32 %v799_v48, %v3307_v38  ;;  %v809_v57 = vpop.f32.mrb[33].mxu0 }
 0x1c3   : > { %v3575_v0 = vpop.eup %2728  ;;  %v1168_v1 = vmul.f32 0.7978846, %v1104_v50  ;;  %v1169_v4 = vmul.f32 0.7978846, %v1105_v28  ;;  %1802 = vmatprep.mubr.bf16.mxu1 %v1531_v52  ;;  %v1530_v29 = vpack.c.bf16 %v1408_v53, %v1406_v30  ;;  %v3578_v35 = vadd.f32 %v801_v2, %v3303_v37  ;;  %v811_v9 = vpop.f32.mrb[34].mxu0 }
 0x1c4   : > { %2734 = vtanh.f32 %v1167_v62  ;;  %v978_v31 = vmul.f32 %v914_v24, %v3561_v49  ;;  %v915_v40 = vmul.f32 %v3573_v39, %v3573_v39  ;;  %v3584_v48 = vadd.f32 %v803_v6, %v3307_v38  ;;  %v813_v13 = vpop.f32.mrb[35].mxu0 }
 0x1c5   : > { %2736 = vtanh.f32 %v1168_v1  ;;  %1803 = vmatmul.mubr.bf16.gmra.mrb[8].mxu1 %v1530_v29  ;;  %v916_v14 = vmul.f32 %v3578_v35, %v3578_v35  ;;  %v1283_v42 = vadd.f32 1.0, %v3498_v26  ;;  %v1285_v2 = vadd.f32 1.0, %v3507_v43 }
 0x1c6   : > { %v3590_v55 = vpop.eup %2730  ;;  %2738 = vtanh.f32 %v1169_v4  ;;  %v1042_v23 = vmul.f32 0.044715, %v978_v31  ;;  %v979_v45 = vmul.f32 %v915_v40, %v3573_v39  ;;  %v917_v6 = vmul.f32 %v3584_v48, %v3584_v48 }
 0x1c7   : > { %v980_v17 = vmul.f32 %v916_v14, %v3578_v35  ;;  %v1347_v18 = vmul.f32 0.5, %v1283_v42  ;;  %v1349_v63 = vmul.f32 0.5, %v1285_v2  ;;  %v1282_v25 = vadd.f32 1.0, %v3491_v19 }
 0x1c8   : > { %v1106_v8 = vadd.f32 %v1042_v23, %v3561_v49  ;;  %v1043_v26 = vmul.f32 0.044715, %v979_v45  ;;  %v981_v43 = vmul.f32 %v917_v6, %v3584_v48  ;;  %v1284_v30 = vadd.f32 1.0, %v3502_v41 }
 0x1c9   : > { %v1044_v50 = vmul.f32 0.044715, %v980_v17  ;;  %v1411_v28 = vmul.f32 %v1347_v18, %v3397_v10  ;;  %v1413_v52 = vmul.f32 %v1349_v63, %v3411_v22  ;;  %v1346_v53 = vmul.f32 0.5, %v1282_v25  ;;  %v3602_v62 = vpop.f32.mrb[36].mxu0 }
 0x1ca   : > { %v1170_v24 = vmul.f32 0.7978846, %v1106_v8  ;;  %v1107_v1 = vadd.f32 %v1043_v26, %v3573_v39  ;;  %v1045_v4 = vmul.f32 0.044715, %v981_v43  ;;  %v1348_v19 = vmul.f32 0.5, %v1284_v30  ;;  %v3605_v29 = vpop.f32.mrb[37].mxu0 }
 0x1cb   : > { %v1108_v31 = vadd.f32 %v1044_v50, %v3578_v35  ;;  %v1533_v40 = vpack.c.bf16 %v1413_v52, %v1411_v28  ;;  %v1410_v41 = vmul.f32 %v1346_v53, %v3393_v3  ;;  %v3610_v14 = vadd.f32 %v807_v58, %v3303_v37  ;;  %v3612_v10 = vpop.f32.mrb[38].mxu0 }
 0x1cc   : > { %v3614_v22 = vpop.eup %2732  ;;  %2740 = vtanh.f32 %v1170_v24  ;;  %v1171_v42 = vmul.f32 0.7978846, %v1107_v1  ;;  %v1109_v2 = vadd.f32 %v1045_v4, %v3584_v48  ;;  %v1412_v23 = vmul.f32 %v1348_v19, %v3405_v16  ;;  %v3618_v45 = vpop.f32.mrb[39].mxu0 }
 0x1cd   : > { %v1172_v6 = vmul.f32 0.7978846, %v1108_v31  ;;  %1812 = vmatprep.mubr.bf16.mxu1 %v1533_v40  ;;  %v918_v3 = vmul.f32 %v3610_v14, %v3610_v14  ;;  %v3623_v58 = vadd.f32 %v809_v57, %v3307_v38  ;;  %v3626_v17 = vadd.f32 %v811_v9, %v3303_v37 }
 0x1ce   : > { %v3628_v18 = vpop.eup %2734  ;;  %2742 = vtanh.f32 %v1171_v42  ;;  %v1173_v63 = vmul.f32 0.7978846, %v1109_v2  ;;  %v1532_v25 = vpack.c.bf16 %v1412_v23, %v1410_v41  ;;  %v3631_v16 = vadd.f32 %v813_v13, %v3307_v38 }
 0x1cf   : > { %v3633_v8 = vpop.eup %2736  ;;  %2744 = vtanh.f32 %v1172_v6  ;;  %v982_v26 = vmul.f32 %v918_v3, %v3610_v14  ;;  %v919_v57 = vmul.f32 %v3623_v58, %v3623_v58  ;;  %v920_v9 = vmul.f32 %v3626_v17, %v3626_v17 }
 0x1d0   : > { %v3640_v43 = vpop.eup %2738  ;;  %2746 = vtanh.f32 %v1173_v63  ;;  %1813 = vmatmul.mubr.bf16.gmra.mrb[12].mxu1 %v1532_v25  ;;  %v921_v30 = vmul.f32 %v3631_v16, %v3631_v16  ;;  %v1287_v13 = vadd.f32 1.0, %v3529_v60  ;;  %v1289_v50 = vadd.f32 1.0, %v3543_v56 }
 0x1d1   : > { %v1046_v28 = vmul.f32 0.044715, %v982_v26  ;;  %v983_v52 = vmul.f32 %v919_v57, %v3623_v58  ;;  %v984_v53 = vmul.f32 %v920_v9, %v3626_v17  ;;  %v1286_v24 = vadd.f32 1.0, %v3521_v20  ;;  %v3649_v1 = vpop.f32.mrb[40].mxu0 }
 0x1d2   : > { %v985_v4 = vmul.f32 %v921_v30, %v3631_v16  ;;  %v1351_v19 = vmul.f32 0.5, %v1287_v13  ;;  %v1353_v31 = vmul.f32 0.5, %v1289_v50  ;;  %v1288_v40 = vadd.f32 1.0, %v3537_v47  ;;  %v3653_v41 = vpop.f32.mrb[41].mxu0 }
 0x1d3   : > { %v1110_v60 = vadd.f32 %v1046_v28, %v3610_v14  ;;  %v1047_v56 = vmul.f32 0.044715, %v983_v52  ;;  %v1048_v42 = vmul.f32 0.044715, %v984_v53  ;;  %v1350_v2 = vmul.f32 0.5, %v1286_v24  ;;  %v3656_v23 = vpop.f32.mrb[42].mxu0 }
 0x1d4   : > { %v1049_v6 = vmul.f32 0.044715, %v985_v4  ;;  %v1415_v20 = vmul.f32 %v1351_v19, %v3435_v61  ;;  %v1417_v3 = vmul.f32 %v1353_v31, %v3448_v15  ;;  %v1352_v63 = vmul.f32 0.5, %v1288_v40  ;;  %v3660_v25 = vpop.f32.mrb[43].mxu0 }
 0x1d5   : > { %v1174_v26 = vmul.f32 0.7978846, %v1110_v60  ;;  %v1111_v47 = vadd.f32 %v1047_v56, %v3623_v58  ;;  %v1112_v57 = vadd.f32 %v1048_v42, %v3626_v17  ;;  %v1414_v9 = vmul.f32 %v1350_v2, %v3429_v54 }
 0x1d6   : > { %v3665_v30 = vpop.eup %2740  ;;  %v1113_v13 = vadd.f32 %v1049_v6, %v3631_v16  ;;  %v1535_v50 = vpack.c.bf16 %v1417_v3, %v1415_v20  ;;  %v1416_v28 = vmul.f32 %v1352_v63, %v3442_v7  ;;  %v3671_v61 = vadd.f32 %v3602_v62, %v3303_v37 }
 0x1d7   : > { %2748 = vtanh.f32 %v1174_v26  ;;  %v1175_v15 = vmul.f32 0.7978846, %v1111_v47  ;;  %v1176_v52 = vmul.f32 0.7978846, %v1112_v57  ;;  %v3675_v53 = vadd.f32 %v3605_v29, %v3307_v38 }
 0x1d8   : > { %v3677_v24 = vpop.eup %2742  ;;  %v1177_v54 = vmul.f32 0.7978846, %v1113_v13  ;;  %1822 = vmatprep.mubr.bf16.mxu1 %v1535_v50  ;;  %v1534_v4 = vpack.c.bf16 %v1416_v28, %v1414_v9  ;;  %v922_v19 = vmul.f32 %v3671_v61, %v3671_v61  ;;  %v3683_v7 = vadd.f32 %v3612_v10, %v3303_v37 }
 0x1d9   : > { %v3685_v62 = vpop.eup %2744  ;;  %2750 = vtanh.f32 %v1175_v15  ;;  %v923_v31 = vmul.f32 %v3675_v53, %v3675_v53  ;;  %v3691_v29 = vadd.f32 %v3618_v45, %v3307_v38  ;;  %v1291_v40 = vadd.f32 1.0, %v3568_v46  ;;  %v3694_v60 = vpop.f32.mrb[44].mxu0 }
 0x1da   : > { %v3696_v56 = vpop.eup %2746  ;;  %2752 = vtanh.f32 %v1176_v52  ;;  %1823 = vmatmul.mubr.bf16.gmra.mrb[16].mxu1 %v1534_v4  ;;  %v986_v10 = vmul.f32 %v922_v19, %v3671_v61  ;;  %v924_v42 = vmul.f32 %v3683_v7, %v3683_v7  ;;  %v1293_v2 = vadd.f32 1.0, %v3590_v55  ;;  %v3702_v6 = vpop.f32.mrb[45].mxu0 }
 0x1db   : > { %2754 = vtanh.f32 %v1177_v54  ;;  %v987_v45 = vmul.f32 %v923_v31, %v3675_v53  ;;  %v925_v46 = vmul.f32 %v3691_v29, %v3691_v29  ;;  %v1355_v20 = vmul.f32 0.5, %v1291_v40  ;;  %v3707_v3 = vpop.f32.mrb[46].mxu0 }
 0x1dc   : > { %v1050_v63 = vmul.f32 0.044715, %v986_v10  ;;  %v988_v26 = vmul.f32 %v924_v42, %v3683_v7  ;;  %v1357_v47 = vmul.f32 0.5, %v1293_v2  ;;  %v1290_v57 = vadd.f32 1.0, %v3563_v44  ;;  %v3711_v9 = vpop.f32.mrb[47].mxu0 }
 0x1dd   : > { %v1051_v55 = vmul.f32 0.044715, %v987_v45  ;;  %v989_v13 = vmul.f32 %v925_v46, %v3691_v29  ;;  %v1419_v50 = vmul.f32 %v1355_v20, %v3478_v12  ;;  %v1292_v28 = vadd.f32 1.0, %v3575_v0 }
 0x1de   : > { %v1114_v15 = vadd.f32 %v1050_v63, %v3671_v61  ;;  %v1052_v52 = vmul.f32 0.044715, %v988_v26  ;;  %v1421_v54 = vmul.f32 %v1357_v47, %v3495_v21  ;;  %v1354_v4 = vmul.f32 0.5, %v1290_v57 }
 0x1df   : > { %v1115_v19 = vadd.f32 %v1051_v55, %v3675_v53  ;;  %v1053_v31 = vmul.f32 0.044715, %v989_v13  ;;  %v1356_v40 = vmul.f32 0.5, %v1292_v28  ;;  %v3721_v44 = vadd.f32 %v3649_v1, %v3303_v37 }
 0x1e0   : > { %v1178_v10 = vmul.f32 0.7978846, %v1114_v15  ;;  %v1116_v42 = vadd.f32 %v1052_v52, %v3683_v7  ;;  %v1537_v12 = vpack.c.bf16 %v1421_v54, %v1419_v50  ;;  %v1418_v0 = vmul.f32 %v1354_v4, %v3473_v59 }
 0x1e1   : > { %v3725_v2 = vpop.eup %2748  ;;  %v1179_v45 = vmul.f32 0.7978846, %v1115_v19  ;;  %v1117_v21 = vadd.f32 %v1053_v31, %v3691_v29  ;;  %v1420_v46 = vmul.f32 %v1356_v40, %v3484_v11  ;;  %v926_v20 = vmul.f32 %v3721_v44, %v3721_v44  ;;  %v3731_v63 = vpop.f32.mrb[48].mxu0 }
 0x1e2   : > { %2756 = vtanh.f32 %v1178_v10  ;;  %v1180_v1 = vmul.f32 0.7978846, %v1116_v42  ;;  %1832 = vmatprep.mubr.bf16.mxu1 %v1537_v12  ;;  %v3735_v26 = vadd.f32 %v3653_v41, %v3307_v38  ;;  %v3739_v59 = vadd.f32 %v3656_v23, %v3303_v37  ;;  %v3741_v47 = vpop.f32.mrb[49].mxu0 }
 0x1e3   : > { %v3743_v57 = vpop.eup %2750  ;;  %2758 = vtanh.f32 %v1179_v45  ;;  %v1181_v11 = vmul.f32 0.7978846, %v1117_v21  ;;  %v1536_v55 = vpack.c.bf16 %v1420_v46, %v1418_v0  ;;  %v990_v13 = vmul.f32 %v926_v20, %v3721_v44  ;;  %v3746_v50 = vpop.f32.mrb[50].mxu0 }
 0x1e4   : > { %v3748_v28 = vpop.eup %2752  ;;  %2760 = vtanh.f32 %v1180_v1  ;;  %v927_v41 = vmul.f32 %v3735_v26, %v3735_v26  ;;  %v928_v23 = vmul.f32 %v3739_v59, %v3739_v59  ;;  %v3756_v15 = vadd.f32 %v3660_v25, %v3307_v38  ;;  %v3758_v52 = vpop.f32.mrb[51].mxu0 }
 0x1e5   : > { %v3760_v54 = vpop.eup %2754  ;;  %2762 = vtanh.f32 %v1181_v11  ;;  %1833 = vmatmul.mubr.bf16.gmra.mrb[20].mxu1 %v1536_v55  ;;  %v1054_v4 = vmul.f32 0.044715, %v990_v13  ;;  %v1295_v19 = vadd.f32 1.0, %v3628_v18  ;;  %v1297_v31 = vadd.f32 1.0, %v3640_v43 }
 0x1e6   : > { %v991_v40 = vmul.f32 %v927_v41, %v3735_v26  ;;  %v992_v10 = vmul.f32 %v928_v23, %v3739_v59  ;;  %v929_v42 = vmul.f32 %v3756_v15, %v3756_v15  ;;  %v1294_v25 = vadd.f32 1.0, %v3614_v22 }
 0x1e7   : > { %v1118_v12 = vadd.f32 %v1054_v4, %v3721_v44  ;;  %v1359_v0 = vmul.f32 0.5, %v1295_v19  ;;  %v1361_v45 = vmul.f32 0.5, %v1297_v31  ;;  %v1296_v21 = vadd.f32 1.0, %v3633_v8 }
 0x1e8   : > { %v1055_v46 = vmul.f32 0.044715, %v991_v40  ;;  %v1056_v20 = vmul.f32 0.044715, %v992_v10  ;;  %v993_v18 = vmul.f32 %v929_v42, %v3756_v15  ;;  %v1358_v43 = vmul.f32 0.5, %v1294_v25 }
 0x1e9   : > { %v1182_v1 = vmul.f32 0.7978846, %v1118_v12  ;;  %v1423_v11 = vmul.f32 %v1359_v0, %v3527_v27  ;;  %v1425_v55 = vmul.f32 %v1361_v45, %v3535_v5  ;;  %v1360_v13 = vmul.f32 0.5, %v1296_v21  ;;  %v3774_v41 = vpop.f32.mrb[52].mxu0 }
 0x1ea   : > { %v1119_v22 = vadd.f32 %v1055_v46, %v3735_v26  ;;  %v1120_v23 = vadd.f32 %v1056_v20, %v3739_v59  ;;  %v1057_v4 = vmul.f32 0.044715, %v993_v18  ;;  %v1422_v8 = vmul.f32 %v1358_v43, %v3518_v51  ;;  %v3779_v19 = vpop.f32.mrb[53].mxu0 }
 0x1eb   : > { %2764 = vtanh.f32 %v1182_v1  ;;  %v1539_v31 = vpack.c.bf16 %v1425_v55, %v1423_v11  ;;  %v1424_v40 = vmul.f32 %v1360_v13, %v3532_v32  ;;  %v3784_v27 = vadd.f32 %v3694_v60, %v3303_v37  ;;  %v3786_v5 = vpop.f32.mrb[54].mxu0 }
 0x1ec   : > { %v3788_v10 = vpop.eup %2756  ;;  %v1183_v42 = vmul.f32 0.7978846, %v1119_v22  ;;  %v1184_v25 = vmul.f32 0.7978846, %v1120_v23  ;;  %v1121_v12 = vadd.f32 %v1057_v4, %v3756_v15  ;;  %v3793_v51 = vadd.f32 %v3702_v6, %v3307_v38  ;;  %v3795_v0 = vpop.f32.mrb[55].mxu0 }
 0x1ed   : > { %v3797_v45 = vpop.eup %2758  ;;  %1842 = vmatprep.mubr.bf16.mxu1 %v1539_v31  ;;  %v1538_v32 = vpack.c.bf16 %v1424_v40, %v1422_v8  ;;  %v930_v60 = vmul.f32 %v3784_v27, %v3784_v27  ;;  %v3803_v21 = vadd.f32 %v3707_v3, %v3303_v37  ;;  %v3807_v46 = vadd.f32 %v3711_v9, %v3307_v38 }
 0x1ee   : > { %v3809_v20 = vpop.eup %2760  ;;  %2766 = vtanh.f32 %v1183_v42  ;;  %v1185_v6 = vmul.f32 0.7978846, %v1121_v12  ;;  %v931_v18 = vmul.f32 %v3793_v51, %v3793_v51  ;;  %v1299_v43 = vadd.f32 1.0, %v3677_v24 }
 0x1ef   : > { %v3814_v1 = vpop.eup %2762  ;;  %2768 = vtanh.f32 %v1184_v25  ;;  %1843 = vmatmul.mubr.bf16.gmra.mrb[24].mxu1 %v1538_v32  ;;  %v994_v3 = vmul.f32 %v930_v60, %v3784_v27  ;;  %v932_v11 = vmul.f32 %v3803_v21, %v3803_v21  ;;  %v933_v9 = vmul.f32 %v3807_v46, %v3807_v46 }
 0x1f0   : > { %2770 = vtanh.f32 %v1185_v6  ;;  %v995_v55 = vmul.f32 %v931_v18, %v3793_v51  ;;  %v1301_v13 = vadd.f32 1.0, %v3696_v56  ;;  %v1363_v22 = vmul.f32 0.5, %v1299_v43 }
 0x1f1   : > { %v1058_v23 = vmul.f32 0.044715, %v994_v3  ;;  %v996_v24 = vmul.f32 %v932_v11, %v3803_v21  ;;  %v997_v4 = vmul.f32 %v933_v9, %v3807_v46  ;;  %v1298_v8 = vadd.f32 1.0, %v3665_v30  ;;  %v3826_v31 = vpop.f32.mrb[56].mxu0 }
 0x1f2   : > { %v1059_v40 = vmul.f32 0.044715, %v995_v55  ;;  %v1365_v42 = vmul.f32 0.5, %v1301_v13  ;;  %v1427_v25 = vmul.f32 %v1363_v22, %v3573_v39  ;;  %v1300_v12 = vadd.f32 1.0, %v3685_v62  ;;  %v3830_v32 = vpop.f32.mrb[57].mxu0 }
 0x1f3   : > { %v1122_v56 = vadd.f32 %v1058_v23, %v3784_v27  ;;  %v1060_v60 = vmul.f32 0.044715, %v996_v24  ;;  %v1061_v6 = vmul.f32 0.044715, %v997_v4  ;;  %v1362_v18 = vmul.f32 0.5, %v1298_v8  ;;  %v3833_v43 = vpop.f32.mrb[58].mxu0 }
 0x1f4   : > { %v1123_v3 = vadd.f32 %v1059_v40, %v3793_v51  ;;  %v1429_v30 = vmul.f32 %v1365_v42, %v3584_v48  ;;  %v1364_v11 = vmul.f32 0.5, %v1300_v12  ;;  %v3839_v9 = vadd.f32 %v3731_v63, %v3303_v37  ;;  %v3841_v39 = vpop.f32.mrb[59].mxu0 }
 0x1f5   : > { %v3843_v62 = vpop.eup %2764  ;;  %v1186_v55 = vmul.f32 0.7978846, %v1122_v56  ;;  %v1124_v13 = vadd.f32 %v1060_v60, %v3803_v21  ;;  %v1125_v22 = vadd.f32 %v1061_v6, %v3807_v46  ;;  %v1426_v23 = vmul.f32 %v1362_v18, %v3561_v49 }
 0x1f6   : > { %v1187_v24 = vmul.f32 0.7978846, %v1123_v3  ;;  %v1541_v4 = vpack.c.bf16 %v1429_v30, %v1427_v25  ;;  %v1428_v48 = vmul.f32 %v1364_v11, %v3578_v35  ;;  %v934_v8 = vmul.f32 %v3839_v9, %v3839_v9 }
 0x1f7   : > { %2772 = vtanh.f32 %v1186_v55  ;;  %v1188_v63 = vmul.f32 0.7978846, %v1124_v13  ;;  %v1189_v40 = vmul.f32 0.7978846, %v1125_v22  ;;  %v3853_v42 = vadd.f32 %v3741_v47, %v3307_v38 }
 0x1f8   : > { %v3855_v12 = vpop.eup %2766  ;;  %2774 = vtanh.f32 %v1187_v24  ;;  %1852 = vmatprep.mubr.bf16.mxu1 %v1541_v4  ;;  %v1540_v56 = vpack.c.bf16 %v1428_v48, %v1426_v23  ;;  %v998_v49 = vmul.f32 %v934_v8, %v3839_v9  ;;  %v3860_v35 = vadd.f32 %v3746_v50, %v3303_v37 }
 0x1f9   : > { %v3862_v25 = vpop.eup %2768  ;;  %2776 = vtanh.f32 %v1188_v63  ;;  %v935_v60 = vmul.f32 %v3853_v42, %v3853_v42  ;;  %v3868_v47 = vadd.f32 %v3758_v52, %v3307_v38  ;;  %v1303_v6 = vadd.f32 1.0, %v3743_v57  ;;  %v3871_v18 = vpop.f32.mrb[60].mxu0 }
 0x1fa   : > { %v3873_v3 = vpop.eup %2770  ;;  %2778 = vtanh.f32 %v1189_v40  ;;  %1853 = vmatmul.mubr.bf16.gmra.mrb[28].mxu1 %v1540_v56  ;;  %v1062_v50 = vmul.f32 0.044715, %v998_v49  ;;  %v936_v30 = vmul.f32 %v3860_v35, %v3860_v35  ;;  %v1305_v11 = vadd.f32 1.0, %v3760_v54  ;;  %v3878_v55 = vpop.f32.mrb[61].mxu0 }
 0x1fb   : > { %v999_v13 = vmul.f32 %v935_v60, %v3853_v42  ;;  %v937_v52 = vmul.f32 %v3868_v47, %v3868_v47  ;;  %v1367_v57 = vmul.f32 0.5, %v1303_v6  ;;  %v1302_v22 = vadd.f32 1.0, %v3725_v2  ;;  %v3884_v23 = vpop.f32.mrb[62].mxu0 }
 0x1fc   : > { %v1126_v24 = vadd.f32 %v1062_v50, %v3839_v9  ;;  %v1000_v4 = vmul.f32 %v936_v30, %v3860_v35  ;;  %v1369_v48 = vmul.f32 0.5, %v1305_v11  ;;  %v1304_v8 = vadd.f32 1.0, %v3748_v28  ;;  %v3889_v54 = vpop.f32.mrb[63].mxu0 }
 0x1fd   : > { %v1063_v63 = vmul.f32 0.044715, %v999_v13  ;;  %v1001_v40 = vmul.f32 %v937_v52, %v3868_v47  ;;  %v1431_v56 = vmul.f32 %v1367_v57, %v3623_v58  ;;  %v1366_v49 = vmul.f32 0.5, %v1302_v22 }
 0x1fe   : > { %v1190_v60 = vmul.f32 0.7978846, %v1126_v24  ;;  %v1064_v6 = vmul.f32 0.044715, %v1000_v4  ;;  %v1433_v2 = vmul.f32 %v1369_v48, %v3631_v16  ;;  %v1368_v36 = vmul.f32 0.5, %v1304_v8 }
 0x1ff   : > { %v1127_v50 = vadd.f32 %v1063_v63, %v3853_v42  ;;  %v1065_v34 = vmul.f32 0.044715, %v1001_v40  ;;  %v1430_v30 = vmul.f32 %v1366_v49, %v3610_v14  ;;  %v3898_v28 = vadd.f32 %v3774_v41, %v3303_v37 }
 0x200   : > { %2780 = vtanh.f32 %v1190_v60  ;;  %v1128_v11 = vadd.f32 %v1064_v6, %v3860_v35  ;;  %v1543_v13 = vpack.c.bf16 %v1433_v2, %v1431_v56  ;;  %v1432_v58 = vmul.f32 %v1368_v36, %v3626_v17 }
 0x201   : > { %v3902_v52 = vpop.eup %2772  ;;  %v1191_v57 = vmul.f32 0.7978846, %v1127_v50  ;;  %v1129_v16 = vadd.f32 %v1065_v34, %v3868_v47  ;;  %v938_v22 = vmul.f32 %v3898_v28, %v3898_v28  ;;  %v3909_v14 = vadd.f32 %v3779_v19, %v3307_v38 }
 0x202   : > { %v3911_v41 = vpop.eup %2774  ;;  %v1192_v24 = vmul.f32 0.7978846, %v1128_v11  ;;  %1862 = vmatprep.mubr.bf16.mxu1 %v1543_v13  ;;  %v1542_v4 = vpack.c.bf16 %v1432_v58, %v1430_v30  ;;  %v3915_v36 = vadd.f32 %v3786_v5, %v3303_v37  ;;  %v3919_v17 = vadd.f32 %v3795_v0, %v3307_v38 }
 0x203   : > { %v3921_v34 = vpop.eup %2776  ;;  %2782 = vtanh.f32 %v1191_v57  ;;  %v1193_v48 = vmul.f32 0.7978846, %v1129_v16  ;;  %v1002_v19 = vmul.f32 %v938_v22, %v3898_v28  ;;  %v939_v8 = vmul.f32 %v3909_v14, %v3909_v14 }
 0x204   : > { %v3926_v63 = vpop.eup %2778  ;;  %2784 = vtanh.f32 %v1192_v24  ;;  %1863 = vmatmul.mubr.bf16.gmra.mrb[32].mxu1 %v1542_v4  ;;  %v940_v5 = vmul.f32 %v3915_v36, %v3915_v36  ;;  %v941_v0 = vmul.f32 %v3919_v17, %v3919_v17  ;;  %v1307_v40 = vadd.f32 1.0, %v3797_v45 }
 0x205   : > { %2786 = vtanh.f32 %v1193_v48  ;;  %v1066_v56 = vmul.f32 0.044715, %v1002_v19  ;;  %v1003_v49 = vmul.f32 %v939_v8, %v3909_v14  ;;  %v1309_v60 = vadd.f32 1.0, %v3814_v1 }
 0x206   : > { %v1004_v6 = vmul.f32 %v940_v5, %v3915_v36  ;;  %v1005_v2 = vmul.f32 %v941_v0, %v3919_v17  ;;  %v1371_v50 = vmul.f32 0.5, %v1307_v40  ;;  %v1306_v30 = vadd.f32 1.0, %v3788_v10 }
 0x207   : > { %v1130_v11 = vadd.f32 %v1066_v56, %v3898_v28  ;;  %v1067_v13 = vmul.f32 0.044715, %v1003_v49  ;;  %v1373_v58 = vmul.f32 0.5, %v1309_v60  ;;  %v1308_v57 = vadd.f32 1.0, %v3809_v20 }
 0x208   : > { %v1068_v45 = vmul.f32 0.044715, %v1004_v6  ;;  %v1069_v16 = vmul.f32 0.044715, %v1005_v2  ;;  %v1435_v22 = vmul.f32 %v1371_v50, %v3675_v53  ;;  %v1370_v24 = vmul.f32 0.5, %v1306_v30 }
 0x209   : > { %v1194_v4 = vmul.f32 0.7978846, %v1130_v11  ;;  %v1131_v1 = vadd.f32 %v1067_v13, %v3909_v14  ;;  %v1437_v48 = vmul.f32 %v1373_v58, %v3691_v29  ;;  %v1372_v19 = vmul.f32 0.5, %v1308_v57 }
 0x20a   : > { %v3943_v8 = vpop.eup %2780  ;;  %v1132_v10 = vadd.f32 %v1068_v45, %v3915_v36  ;;  %v1133_v5 = vadd.f32 %v1069_v16, %v3919_v17  ;;  %v1434_v0 = vmul.f32 %v1370_v24, %v3671_v61  ;;  %v3950_v20 = vadd.f32 %v3826_v31, %v3303_v37 }
 0x20b   : > { %2788 = vtanh.f32 %v1194_v4  ;;  %v1195_v53 = vmul.f32 0.7978846, %v1131_v1  ;;  %v1545_v40 = vpack.c.bf16 %v1437_v48, %v1435_v22  ;;  %v1436_v56 = vmul.f32 %v1372_v19, %v3683_v7 }
 0x20c   : > { %v1196_v49 = vmul.f32 0.7978846, %v1132_v10  ;;  %v1197_v29 = vmul.f32 0.7978846, %v1133_v5  ;;  %v942_v60 = vmul.f32 %v3950_v20, %v3950_v20  ;;  %v3957_v6 = vadd.f32 %v3830_v32, %v3307_v38 }
 0x20d   : > { %v3959_v2 = vpop.eup %2782  ;;  %2790 = vtanh.f32 %v1195_v53  ;;  %1872 = vmatprep.mubr.bf16.mxu1 %v1545_v40  ;;  %v1544_v61 = vpack.c.bf16 %v1436_v56, %v1434_v0  ;;  %v3963_v31 = vadd.f32 %v3833_v43, %v3303_v37  ;;  %v3967_v7 = vadd.f32 %v3841_v39, %v3307_v38 }
 0x20e   : > { %v3969_v50 = vpop.eup %2784  ;;  %2792 = vtanh.f32 %v1196_v49  ;;  %v1006_v30 = vmul.f32 %v942_v60, %v3950_v20  ;;  %v943_v32 = vmul.f32 %v3957_v6, %v3957_v6  ;;  %v1311_v11 = vadd.f32 1.0, %v3855_v12 }
 0x20f   : > { %v3975_v13 = vpop.eup %2786  ;;  %2794 = vtanh.f32 %v1197_v29  ;;  %1873 = vmatmul.mubr.bf16.gmra.mrb[36].mxu1 %v1544_v61  ;;  %v944_v43 = vmul.f32 %v3963_v31, %v3963_v31  ;;  %v945_v39 = vmul.f32 %v3967_v7, %v3967_v7  ;;  %v1313_v58 = vadd.f32 1.0, %v3873_v3 }
 0x210   : > { %v1070_v57 = vmul.f32 0.044715, %v1006_v30  ;;  %v1007_v45 = vmul.f32 %v943_v32, %v3957_v6  ;;  %v1375_v16 = vmul.f32 0.5, %v1311_v11  ;;  %v1310_v22 = vadd.f32 1.0, %v3843_v62 }
 0x211   : > { %v1008_v12 = vmul.f32 %v944_v43, %v3963_v31  ;;  %v1009_v24 = vmul.f32 %v945_v39, %v3967_v7  ;;  %v1377_v4 = vmul.f32 0.5, %v1313_v58  ;;  %v1312_v1 = vadd.f32 1.0, %v3862_v25 }
 0x212   : > { %v1134_v48 = vadd.f32 %v1070_v57, %v3950_v20  ;;  %v1071_v19 = vmul.f32 0.044715, %v1007_v45  ;;  %v1439_v10 = vmul.f32 %v1375_v16, %v3735_v26  ;;  %v1374_v5 = vmul.f32 0.5, %v1310_v22 }
 0x213   : > { %v1072_v3 = vmul.f32 0.044715, %v1008_v12  ;;  %v1073_v0 = vmul.f32 0.044715, %v1009_v24  ;;  %v1441_v53 = vmul.f32 %v1377_v4, %v3756_v15  ;;  %v1376_v40 = vmul.f32 0.5, %v1312_v1 }
 0x214   : > { %v1198_v56 = vmul.f32 0.7978846, %v1134_v48  ;;  %v1135_v62 = vadd.f32 %v1071_v19, %v3957_v6  ;;  %v1438_v49 = vmul.f32 %v1374_v5, %v3721_v44  ;;  %v3994_v29 = vadd.f32 %v3871_v18, %v3303_v37 }
 0x215   : > { %v3996_v25 = vpop.eup %2788  ;;  %v1136_v60 = vadd.f32 %v1072_v3, %v3963_v31  ;;  %v1137_v26 = vadd.f32 %v1073_v0, %v3967_v7  ;;  %v1547_v61 = vpack.c.bf16 %v1441_v53, %v1439_v10  ;;  %v1440_v30 = vmul.f32 %v1376_v40, %v3739_v59 }
 0x216   : > { %2796 = vtanh.f32 %v1198_v56  ;;  %v1199_v15 = vmul.f32 0.7978846, %v1135_v62  ;;  %v946_v32 = vmul.f32 %v3994_v29, %v3994_v29  ;;  %v4005_v44 = vadd.f32 %v3878_v55, %v3307_v38 }
 0x217   : > { %v4007_v18 = vpop.eup %2790  ;;  %v1200_v11 = vmul.f32 0.7978846, %v1136_v60  ;;  %v1201_v43 = vmul.f32 0.7978846, %v1137_v26  ;;  %1882 = vmatprep.mubr.bf16.mxu1 %v1547_v61  ;;  %v1546_v39 = vpack.c.bf16 %v1440_v30, %v1438_v49  ;;  %v4011_v58 = vadd.f32 %v3884_v23, %v3303_v37 }
 0x218   : > { %v4013_v59 = vpop.eup %2792  ;;  %2798 = vtanh.f32 %v1199_v15  ;;  %v1010_v57 = vmul.f32 %v946_v32, %v3994_v29  ;;  %v947_v45 = vmul.f32 %v4005_v44, %v4005_v44  ;;  %v4020_v55 = vadd.f32 %v3889_v54, %v3307_v38 }
 0x219   : > { %v2795_v16 = vpop.eup %2794  ;;  %2800 = vtanh.f32 %v1200_v11  ;;  %1883 = vmatmul.mubr.bf16.gmra.mrb[40].mxu1 %v1546_v39  ;;  %v948_v22 = vmul.f32 %v4011_v58, %v4011_v58  ;;  %v1315_v37 = vadd.f32 1.0, %v3911_v41  ;;  %v1317_v23 = vadd.f32 1.0, %v3926_v63 }
 0x21a   : > { %2802 = vtanh.f32 %v1201_v43  ;;  %v1074_v12 = vmul.f32 0.044715, %v1010_v57  ;;  %v1011_v24 = vmul.f32 %v947_v45, %v4005_v44  ;;  %v949_v4 = vmul.f32 %v4020_v55, %v4020_v55 }
 0x21b   : > { %v1012_v38 = vmul.f32 %v948_v22, %v4011_v58  ;;  %v1379_v54 = vmul.f32 0.5, %v1315_v37  ;;  %v1381_v1 = vmul.f32 0.5, %v1317_v23  ;;  %v1314_v48 = vadd.f32 1.0, %v3902_v52 }
 0x21c   : > { %v1138_v19 = vadd.f32 %v1074_v12, %v3994_v29  ;;  %v1075_v10 = vmul.f32 0.044715, %v1011_v24  ;;  %v1013_v41 = vmul.f32 %v949_v4, %v4020_v55  ;;  %v1316_v63 = vadd.f32 1.0, %v3921_v34 }
 0x21d   : > { %v1076_v5 = vmul.f32 0.044715, %v1012_v38  ;;  %v1443_v3 = vmul.f32 %v1379_v54, %v3793_v51  ;;  %v1445_v0 = vmul.f32 %v1381_v1, %v3807_v46  ;;  %v1378_v53 = vmul.f32 0.5, %v1314_v48 }
 0x21e   : > { %v1202_v40 = vmul.f32 0.7978846, %v1138_v19  ;;  %v1139_v56 = vadd.f32 %v1075_v10, %v4005_v44  ;;  %v1077_v62 = vmul.f32 0.044715, %v1013_v41  ;;  %v1380_v49 = vmul.f32 0.5, %v1316_v63 }
 0x21f   : > { %v1140_v52 = vadd.f32 %v1076_v5, %v4011_v58  ;;  %v1549_v60 = vpack.c.bf16 %v1445_v0, %v1443_v3  ;;  %v1442_v26 = vmul.f32 %v1378_v53, %v3784_v27  ;;  %v1319_v61 = vadd.f32 1.0, %v3959_v2 }
 0x220   : > { %v2797_v30 = vpop.eup %2796  ;;  %2804 = vtanh.f32 %v1202_v40  ;;  %v1203_v34 = vmul.f32 0.7978846, %v1139_v56  ;;  %v1141_v51 = vadd.f32 %v1077_v62, %v4020_v55  ;;  %v1444_v46 = vmul.f32 %v1380_v49, %v3803_v21 }
 0x221   : > { %v1204_v15 = vmul.f32 0.7978846, %v1140_v52  ;;  %1892 = vmatprep.mubr.bf16.mxu1 %v1549_v60  ;;  %v1321_v32 = vadd.f32 1.0, %v3975_v13  ;;  %v1383_v11 = vmul.f32 0.5, %v1319_v61  ;;  %v1318_v43 = vadd.f32 1.0, %v3943_v8 }
 0x222   : > { %v2799_v39 = vpop.eup %2798  ;;  %2806 = vtanh.f32 %v1203_v34  ;;  %v1205_v57 = vmul.f32 0.7978846, %v1141_v51  ;;  %v1548_v27 = vpack.c.bf16 %v1444_v46, %v1442_v26  ;;  %v1320_v2 = vadd.f32 1.0, %v3969_v50 }
 0x223   : > { %v2801_v45 = vpop.eup %2800  ;;  %2808 = vtanh.f32 %v1204_v15  ;;  %v1385_v22 = vmul.f32 0.5, %v1321_v32  ;;  %v1447_v37 = vmul.f32 %v1383_v11, %v3853_v42  ;;  %v1382_v23 = vmul.f32 0.5, %v1318_v43 }
 0x224   : > { %v2803_v21 = vpop.eup %2802  ;;  %2810 = vtanh.f32 %v1205_v57  ;;  %1893 = vmatmul.mubr.bf16.gmra.mrb[44].mxu1 %v1548_v27  ;;  %v1384_v12 = vmul.f32 0.5, %v1320_v2  ;;  %v1323_v13 = vadd.f32 1.0, %v4007_v18  ;;  %v1325_v24 = vadd.f32 1.0, %v2795_v16  ;;  %v2138_v27 = vld [vmem:[%s4267_s4] sm:$0x3] }
 0x225   : > { %v1449_v8 = vmul.f32 %v1385_v22, %v3868_v47  ;;  %v1446_v4 = vmul.f32 %v1382_v23, %v3839_v9  ;;  %v1322_v38 = vadd.f32 1.0, %v3996_v25  ;;  %v1324_v50 = vadd.f32 1.0, %v4013_v59 }
 0x226   : > { %v1448_v54 = vmul.f32 %v1384_v12, %v3860_v35  ;;  %v1387_v1 = vmul.f32 0.5, %v1323_v13  ;;  %v1389_v42 = vmul.f32 0.5, %v1325_v24  ;;  %v1327_v48 = vadd.f32 1.0, %v2799_v39 }
 0x227   : > { %v1551_v19 = vpack.c.bf16 %v1449_v8, %v1447_v37  ;;  %v1386_v10 = vmul.f32 0.5, %v1322_v38  ;;  %v1388_v41 = vmul.f32 0.5, %v1324_v50  ;;  %v1329_v63 = vadd.f32 1.0, %v2803_v21 }
 0x228   : > { %v1550_v5 = vpack.c.bf16 %v1448_v54, %v1446_v4  ;;  %v1451_v18 = vmul.f32 %v1387_v1, %v3909_v14  ;;  %v1453_v47 = vmul.f32 %v1389_v42, %v3919_v17  ;;  %v1391_v16 = vmul.f32 0.5, %v1327_v48 }
 0x229   : > { %1902 = vmatprep.mubr.bf16.mxu1 %v1551_v19  ;;  %v1450_v9 = vmul.f32 %v1386_v10, %v3898_v28  ;;  %v1452_v25 = vmul.f32 %v1388_v41, %v3915_v36  ;;  %v1393_v59 = vmul.f32 0.5, %v1329_v63  ;;  %v1326_v35 = vadd.f32 1.0, %v2797_v30 }
 0x22a   : > { %v2805_v3 = vpop.eup %2804  ;;  %v1553_v0 = vpack.c.bf16 %v1453_v47, %v1451_v18  ;;  %v1455_v53 = vmul.f32 %v1391_v16, %v3957_v6  ;;  %v1328_v40 = vadd.f32 1.0, %v2801_v45 }
 0x22b   : > { %v1552_v56 = vpack.c.bf16 %v1452_v25, %v1450_v9  ;;  %v1457_v62 = vmul.f32 %v1393_v59, %v3967_v7  ;;  %v1390_v49 = vmul.f32 0.5, %v1326_v35  ;;  %v1330_v14 = vadd.f32 1.0, %v2805_v3 }
 0x22c   : > { %v2807_v52 = vpop.eup %2806  ;;  %1903 = vmatmul.mubr.bf16.gmra.mrb[48].mxu1 %v1550_v5  ;;  %v1392_v17 = vmul.f32 0.5, %v1328_v40 }
 0x22d   : > { %v2809_v60 = vpop.eup %2808  ;;  %1912 = vmatprep.mubr.bf16.mxu1 %v1553_v0  ;;  %v1555_v28 = vpack.c.bf16 %v1457_v62, %v1455_v53  ;;  %v1331_v26 = vadd.f32 1.0, %v2807_v52  ;;  %v1454_v61 = vmul.f32 %v1390_v49, %v3950_v20  ;;  %v1394_v6 = vmul.f32 0.5, %v1330_v14 }
 0x22e   : > { %v2811_v36 = vpop.eup %2810  ;;  %v1456_v30 = vmul.f32 %v1392_v17, %v3963_v31  ;;  %v1332_v34 = vadd.f32 1.0, %v2809_v60 }
 0x22f   : > { %v1333_v51 = vadd.f32 1.0, %v2811_v36  ;;  %v1395_v46 = vmul.f32 0.5, %v1331_v26  ;;  %v1458_v11 = vmul.f32 %v1394_v6, %v3994_v29  ;;  %v4285_v29 = vsub.s32 0, %v3294_v33 }
 0x230   : > { %v1554_v15 = vpack.c.bf16 %v1456_v30, %v1454_v61  ;;  %v1396_v7 = vmul.f32 0.5, %v1332_v34 }
 0x231   : > { %v1397_v32 = vmul.f32 0.5, %v1333_v51  ;;  %v1459_v39 = vmul.f32 %v1395_v46, %v4005_v44  ;;  %v4069_v2 = vrot.slane %v2138_v27, %v4285_v29  ;;  %v4286_v44 = vsub.s32 1, %v3294_v33 }
 0x232   : > { %v1460_v43 = vmul.f32 %v1396_v7, %v4011_v58 }
 0x233   : > { %v1461_v57 = vmul.f32 %v1397_v32, %v4020_v55  ;;  %v4073_v58 = vrot.slane %v2138_v27, %v4286_v44 }
 0x234   : > { %1913 = vmatmul.mubr.bf16.gmra.mrb[52].mxu1 %v1552_v56  ;;  %v1556_v20 = vpack.c.bf16 %v1460_v43, %v1458_v11 }
 0x235   : > { %1922 = vmatprep.mubr.bf16.mxu1 %v1555_v28  ;;  %v1557_v31 = vpack.c.bf16 %v1461_v57, %v1459_v39 }
 0x23c   : > { %1923 = vmatmul.mubr.bf16.gmra.mrb[56].mxu1 %v1554_v15 }
 0x23d   : > { %1932 = vmatprep.mubr.bf16.mxu1 %v1557_v31 }
 0x244   : > { %1933 = vmatmul.mubr.bf16.gmra.mrb[60].mxu1 %v1556_v20 }
 0x283   : > { %v1784_v55 = vpop.f32.mrb[0].mxu1 }
 0x284   : > { %v2150_v45 = vadd.f32 %v4069_v2, %v1784_v55  ;;  %v1786_v22 = vpop.f32.mrb[1].mxu1 }
 0x285   : > { %v2151_v37 = vadd.f32 %v4073_v58, %v1786_v22  ;;  %v1788_v23 = vpop.f32.mrb[2].mxu1 }
 0x286   : > { %2214 = vst [vmem:[%s4079_s7] sm:$0xff] %v2150_v45  ;;  %v2152_v33 = vadd.f32 %v4069_v2, %v1788_v23  ;;  %v1790_v21 = vpop.f32.mrb[3].mxu1 }
 0x287   : > { %2215 = vst [vmem:[%s4079_s7 + $0x8] sm:$0xff] %v2151_v37  ;;  %v2153_v12 = vadd.f32 %v4073_v58, %v1790_v21 }
 0x288   : > { %2216 = vst [vmem:[%s4079_s7 + $0x10] sm:$0xff] %v2152_v33 }
 0x289   : > { %2217 = vst [vmem:[%s4079_s7 + $0x18] sm:$0xff] %v2153_v12 }
 0x28e   : > { %v1794_v13 = vpop.f32.mrb[4].mxu1 }
 0x28f   : > { %v2154_v24 = vadd.f32 %v4069_v2, %v1794_v13  ;;  %v1796_v8 = vpop.f32.mrb[5].mxu1 }
 0x290   : > { %v2155_v4 = vadd.f32 %v4073_v58, %v1796_v8  ;;  %v1798_v38 = vpop.f32.mrb[6].mxu1 }
 0x291   : > { %2218 = vst [vmem:[%s4079_s7 + $0x20] sm:$0xff] %v2154_v24  ;;  %v2156_v50 = vadd.f32 %v4069_v2, %v1798_v38  ;;  %v1800_v54 = vpop.f32.mrb[7].mxu1 }
 0x292   : > { %2219 = vst [vmem:[%s4079_s7 + $0x28] sm:$0xff] %v2155_v4  ;;  %v2157_v1 = vadd.f32 %v4073_v58, %v1800_v54 }
 0x293   : > { %2220 = vst [vmem:[%s4079_s7 + $0x30] sm:$0xff] %v2156_v50 }
 0x294   : > { %2221 = vst [vmem:[%s4079_s7 + $0x38] sm:$0xff] %v2157_v1 }
 0x298   : > { %v1804_v42 = vpop.f32.mrb[8].mxu1 }
 0x299   : > { %v2158_v48 = vadd.f32 %v4069_v2, %v1804_v42  ;;  %v1806_v19 = vpop.f32.mrb[9].mxu1 }
 0x29a   : > { %v2159_v10 = vadd.f32 %v4073_v58, %v1806_v19  ;;  %v1808_v41 = vpop.f32.mrb[10].mxu1 }
 0x29b   : > { %2222 = vst [vmem:[%s4079_s7 + $0x40] sm:$0xff] %v2158_v48  ;;  %v2160_v63 = vadd.f32 %v4069_v2, %v1808_v41  ;;  %v1810_v5 = vpop.f32.mrb[11].mxu1 }
 0x29c   : > { %2223 = vst [vmem:[%s4079_s7 + $0x48] sm:$0xff] %v2159_v10  ;;  %v2161_v18 = vadd.f32 %v4073_v58, %v1810_v5 }
 0x29d   : > { %2224 = vst [vmem:[%s4079_s7 + $0x50] sm:$0xff] %v2160_v63 }
 0x29e   : > { %2225 = vst [vmem:[%s4079_s7 + $0x58] sm:$0xff] %v2161_v18 }
 0x2a3   : > { %v1814_v47 = vpop.f32.mrb[12].mxu1 }
 0x2a4   : > { %v2162_v16 = vadd.f32 %v4069_v2, %v1814_v47  ;;  %v1816_v9 = vpop.f32.mrb[13].mxu1 }
 0x2a5   : > { %v2163_v25 = vadd.f32 %v4073_v58, %v1816_v9  ;;  %v1818_v59 = vpop.f32.mrb[14].mxu1 }
 0x2a6   : > { %2226 = vst [vmem:[%s4079_s7 + $0x60] sm:$0xff] %v2162_v16  ;;  %v2164_v35 = vadd.f32 %v4069_v2, %v1818_v59  ;;  %v1820_v3 = vpop.f32.mrb[15].mxu1 }
 0x2a7   : > { %2227 = vst [vmem:[%s4079_s7 + $0x68] sm:$0xff] %v2163_v25  ;;  %v2165_v0 = vadd.f32 %v4073_v58, %v1820_v3 }
 0x2a8   : > { %2228 = vst [vmem:[%s4079_s7 + $0x70] sm:$0xff] %v2164_v35 }
 0x2a9   : > { %2229 = vst [vmem:[%s4079_s7 + $0x78] sm:$0xff] %v2165_v0 }
 0x2ad   : > { %v1824_v53 = vpop.f32.mrb[16].mxu1 }
 0x2ae   : > { %v2166_v40 = vadd.f32 %v4069_v2, %v1824_v53  ;;  %v1826_v56 = vpop.f32.mrb[17].mxu1 }
 0x2af   : > { %v2167_v62 = vadd.f32 %v4073_v58, %v1826_v56  ;;  %v1828_v49 = vpop.f32.mrb[18].mxu1 }
 0x2b0   : > { %2230 = vst [vmem:[%s4079_s7 + $0x80] sm:$0xff] %v2166_v40  ;;  %v2168_v14 = vadd.f32 %v4069_v2, %v1828_v49  ;;  %v1830_v52 = vpop.f32.mrb[19].mxu1 }
 0x2b1   : > { %2231 = vst [vmem:[%s4079_s7 + $0x88] sm:$0xff] %v2167_v62  ;;  %v2169_v17 = vadd.f32 %v4073_v58, %v1830_v52 }
 0x2b2   : > { %2232 = vst [vmem:[%s4079_s7 + $0x90] sm:$0xff] %v2168_v14 }
 0x2b3   : > { %2233 = vst [vmem:[%s4079_s7 + $0x98] sm:$0xff] %v2169_v17 }
 0x2b8   : > { %v1834_v60 = vpop.f32.mrb[20].mxu1 }
 0x2b9   : > { %v2170_v28 = vadd.f32 %v4069_v2, %v1834_v60  ;;  %v1836_v26 = vpop.f32.mrb[21].mxu1 }
 0x2ba   : > { %v2171_v36 = vadd.f32 %v4073_v58, %v1836_v26  ;;  %v1838_v61 = vpop.f32.mrb[22].mxu1 }
 0x2bb   : > { %2234 = vst [vmem:[%s4079_s7 + $0xa0] sm:$0xff] %v2170_v28  ;;  %v2172_v30 = vadd.f32 %v4069_v2, %v1838_v61  ;;  %v1840_v34 = vpop.f32.mrb[23].mxu1 }
 0x2bc   : > { %2235 = vst [vmem:[%s4079_s7 + $0xa8] sm:$0xff] %v2171_v36  ;;  %v2173_v6 = vadd.f32 %v4073_v58, %v1840_v34 }
 0x2bd   : > { %2236 = vst [vmem:[%s4079_s7 + $0xb0] sm:$0xff] %v2172_v30 }
 0x2be   : > { %2237 = vst [vmem:[%s4079_s7 + $0xb8] sm:$0xff] %v2173_v6 }
 0x2c2   : > { %v1844_v51 = vpop.f32.mrb[24].mxu1 }
 0x2c3   : > { %v2174_v46 = vadd.f32 %v4069_v2, %v1844_v51  ;;  %v1846_v15 = vpop.f32.mrb[25].mxu1 }
 0x2c4   : > { %v2175_v7 = vadd.f32 %v4073_v58, %v1846_v15  ;;  %v1848_v32 = vpop.f32.mrb[26].mxu1 }
 0x2c5   : > { %2238 = vst [vmem:[%s4079_s7 + $0xc0] sm:$0xff] %v2174_v46  ;;  %v2176_v11 = vadd.f32 %v4069_v2, %v1848_v32  ;;  %v1850_v43 = vpop.f32.mrb[27].mxu1 }
 0x2c6   : > { %2239 = vst [vmem:[%s4079_s7 + $0xc8] sm:$0xff] %v2175_v7  ;;  %v2177_v39 = vadd.f32 %v4073_v58, %v1850_v43 }
 0x2c7   : > { %2240 = vst [vmem:[%s4079_s7 + $0xd0] sm:$0xff] %v2176_v11 }
 0x2c8   : > { %2241 = vst [vmem:[%s4079_s7 + $0xd8] sm:$0xff] %v2177_v39 }
 0x2cd   : > { %v1854_v57 = vpop.f32.mrb[28].mxu1 }
 0x2ce   : > { %v2178_v20 = vadd.f32 %v4069_v2, %v1854_v57  ;;  %v1856_v31 = vpop.f32.mrb[29].mxu1 }
 0x2cf   : > { %v2179_v27 = vadd.f32 %v4073_v58, %v1856_v31  ;;  %v1858_v29 = vpop.f32.mrb[30].mxu1 }
 0x2d0   : > { %2242 = vst [vmem:[%s4079_s7 + $0xe0] sm:$0xff] %v2178_v20  ;;  %v2180_v44 = vadd.f32 %v4069_v2, %v1858_v29  ;;  %v1860_v55 = vpop.f32.mrb[31].mxu1 }
 0x2d1   : > { %2243 = vst [vmem:[%s4079_s7 + $0xe8] sm:$0xff] %v2179_v27  ;;  %v2181_v45 = vadd.f32 %v4073_v58, %v1860_v55 }
 0x2d2   : > { %2244 = vst [vmem:[%s4079_s7 + $0xf0] sm:$0xff] %v2180_v44 }
 0x2d3   : > { %2245 = vst [vmem:[%s4079_s7 + $0xf8] sm:$0xff] %v2181_v45 }
 0x2d7   : > { %v1864_v22 = vpop.f32.mrb[32].mxu1 }
 0x2d8   : > { %v2182_v37 = vadd.f32 %v4069_v2, %v1864_v22  ;;  %v1866_v23 = vpop.f32.mrb[33].mxu1 }
 0x2d9   : > { %v2183_v33 = vadd.f32 %v4073_v58, %v1866_v23  ;;  %v1868_v21 = vpop.f32.mrb[34].mxu1 }
 0x2da   : > { %2246 = vst [vmem:[%s4079_s7 + $0x100] sm:$0xff] %v2182_v37  ;;  %v2184_v12 = vadd.f32 %v4069_v2, %v1868_v21  ;;  %v1870_v13 = vpop.f32.mrb[35].mxu1 }
 0x2db   : > { %2247 = vst [vmem:[%s4079_s7 + $0x108] sm:$0xff] %v2183_v33  ;;  %v2185_v24 = vadd.f32 %v4073_v58, %v1870_v13 }
 0x2dc   : > { %2248 = vst [vmem:[%s4079_s7 + $0x110] sm:$0xff] %v2184_v12 }
 0x2dd   : > { %2249 = vst [vmem:[%s4079_s7 + $0x118] sm:$0xff] %v2185_v24 }
 0x2e2   : > { %v1874_v8 = vpop.f32.mrb[36].mxu1 }
 0x2e3   : > { %v2186_v4 = vadd.f32 %v4069_v2, %v1874_v8  ;;  %v1876_v38 = vpop.f32.mrb[37].mxu1 }
 0x2e4   : > { %v2187_v50 = vadd.f32 %v4073_v58, %v1876_v38  ;;  %v1878_v54 = vpop.f32.mrb[38].mxu1 }
 0x2e5   : > { %2250 = vst [vmem:[%s4079_s7 + $0x120] sm:$0xff] %v2186_v4  ;;  %v2188_v1 = vadd.f32 %v4069_v2, %v1878_v54  ;;  %v1880_v42 = vpop.f32.mrb[39].mxu1 }
 0x2e6   : > { %2251 = vst [vmem:[%s4079_s7 + $0x128] sm:$0xff] %v2187_v50  ;;  %v2189_v48 = vadd.f32 %v4073_v58, %v1880_v42 }
 0x2e7   : > { %2252 = vst [vmem:[%s4079_s7 + $0x130] sm:$0xff] %v2188_v1 }
 0x2e8   : > { %2253 = vst [vmem:[%s4079_s7 + $0x138] sm:$0xff] %v2189_v48 }
 0x2ec   : > { %v1884_v19 = vpop.f32.mrb[40].mxu1 }
 0x2ed   : > { %v2190_v10 = vadd.f32 %v4069_v2, %v1884_v19  ;;  %v1886_v41 = vpop.f32.mrb[41].mxu1 }
 0x2ee   : > { %v2191_v63 = vadd.f32 %v4073_v58, %v1886_v41  ;;  %v1888_v5 = vpop.f32.mrb[42].mxu1 }
 0x2ef   : > { %2254 = vst [vmem:[%s4079_s7 + $0x140] sm:$0xff] %v2190_v10  ;;  %v2192_v18 = vadd.f32 %v4069_v2, %v1888_v5  ;;  %v1890_v47 = vpop.f32.mrb[43].mxu1 }
 0x2f0   : > { %2255 = vst [vmem:[%s4079_s7 + $0x148] sm:$0xff] %v2191_v63  ;;  %v2193_v16 = vadd.f32 %v4073_v58, %v1890_v47 }
 0x2f1   : > { %2256 = vst [vmem:[%s4079_s7 + $0x150] sm:$0xff] %v2192_v18 }
 0x2f2   : > { %2257 = vst [vmem:[%s4079_s7 + $0x158] sm:$0xff] %v2193_v16 }
 0x2f7   : > { %v1894_v9 = vpop.f32.mrb[44].mxu1 }
 0x2f8   : > { %v2194_v25 = vadd.f32 %v4069_v2, %v1894_v9  ;;  %v1896_v59 = vpop.f32.mrb[45].mxu1 }
 0x2f9   : > { %v2195_v35 = vadd.f32 %v4073_v58, %v1896_v59  ;;  %v1898_v3 = vpop.f32.mrb[46].mxu1 }
 0x2fa   : > { %2258 = vst [vmem:[%s4079_s7 + $0x160] sm:$0xff] %v2194_v25  ;;  %v2196_v0 = vadd.f32 %v4069_v2, %v1898_v3  ;;  %v1900_v53 = vpop.f32.mrb[47].mxu1 }
 0x2fb   : > { %2259 = vst [vmem:[%s4079_s7 + $0x168] sm:$0xff] %v2195_v35  ;;  %v2197_v40 = vadd.f32 %v4073_v58, %v1900_v53 }
 0x2fc   : > { %2260 = vst [vmem:[%s4079_s7 + $0x170] sm:$0xff] %v2196_v0 }
 0x2fd   : > { %2261 = vst [vmem:[%s4079_s7 + $0x178] sm:$0xff] %v2197_v40 }
 0x2ff   : > { %v1904_v56 = vpop.f32.mrb[48].mxu1 }
 0x300   : > { %v2198_v62 = vadd.f32 %v4069_v2, %v1904_v56  ;;  %v1906_v49 = vpop.f32.mrb[49].mxu1 }
 0x301   : > { %v2199_v14 = vadd.f32 %v4073_v58, %v1906_v49  ;;  %v1908_v52 = vpop.f32.mrb[50].mxu1 }
 0x302   : > { %2262 = vst [vmem:[%s4079_s7 + $0x180] sm:$0xff] %v2198_v62  ;;  %v2200_v17 = vadd.f32 %v4069_v2, %v1908_v52  ;;  %v1910_v60 = vpop.f32.mrb[51].mxu1 }
 0x303   : > { %2263 = vst [vmem:[%s4079_s7 + $0x188] sm:$0xff] %v2199_v14  ;;  %v2201_v28 = vadd.f32 %v4073_v58, %v1910_v60 }
 0x304   : > { %2264 = vst [vmem:[%s4079_s7 + $0x190] sm:$0xff] %v2200_v17 }
 0x305   : > { %2265 = vst [vmem:[%s4079_s7 + $0x198] sm:$0xff] %v2201_v28 }
 0x307   : > { %v1914_v26 = vpop.f32.mrb[52].mxu1 }
 0x308   : > { %v2202_v36 = vadd.f32 %v4069_v2, %v1914_v26  ;;  %v1916_v61 = vpop.f32.mrb[53].mxu1 }
 0x309   : > { %v2203_v30 = vadd.f32 %v4073_v58, %v1916_v61  ;;  %v1918_v34 = vpop.f32.mrb[54].mxu1 }
 0x30a   : > { %2266 = vst [vmem:[%s4079_s7 + $0x1a0] sm:$0xff] %v2202_v36  ;;  %v2204_v6 = vadd.f32 %v4069_v2, %v1918_v34  ;;  %v1920_v51 = vpop.f32.mrb[55].mxu1 }
 0x30b   : > { %2267 = vst [vmem:[%s4079_s7 + $0x1a8] sm:$0xff] %v2203_v30  ;;  %v2205_v46 = vadd.f32 %v4073_v58, %v1920_v51 }
 0x30c   : > { %2268 = vst [vmem:[%s4079_s7 + $0x1b0] sm:$0xff] %v2204_v6 }
 0x30d   : > { %2269 = vst [vmem:[%s4079_s7 + $0x1b8] sm:$0xff] %v2205_v46 }
 0x30f   : > { %v1924_v15 = vpop.f32.mrb[56].mxu1 }
 0x310   : > { %v2206_v7 = vadd.f32 %v4069_v2, %v1924_v15  ;;  %v1926_v32 = vpop.f32.mrb[57].mxu1 }
 0x311   : > { %v2207_v11 = vadd.f32 %v4073_v58, %v1926_v32  ;;  %v1928_v43 = vpop.f32.mrb[58].mxu1 }
 0x312   : > { %2270 = vst [vmem:[%s4079_s7 + $0x1c0] sm:$0xff] %v2206_v7  ;;  %v2208_v39 = vadd.f32 %v4069_v2, %v1928_v43  ;;  %v1930_v57 = vpop.f32.mrb[59].mxu1 }
 0x313   : > { %2271 = vst [vmem:[%s4079_s7 + $0x1c8] sm:$0xff] %v2207_v11  ;;  %v2209_v20 = vadd.f32 %v4073_v58, %v1930_v57 }
 0x314   : > { %2272 = vst [vmem:[%s4079_s7 + $0x1d0] sm:$0xff] %v2208_v39 }
 0x315   : > { %2273 = vst [vmem:[%s4079_s7 + $0x1d8] sm:$0xff] %v2209_v20 }
 0x317   : > { %v1934_v31 = vpop.f32.mrb[60].mxu1 }
 0x318   : > { %v2210_v27 = vadd.f32 %v4069_v2, %v1934_v31  ;;  %v1936_v29 = vpop.f32.mrb[61].mxu1 }
 0x319   : > { %v2211_v44 = vadd.f32 %v4073_v58, %v1936_v29  ;;  %v1938_v55 = vpop.f32.mrb[62].mxu1 }
 0x31a   : > { %2274 = vst [vmem:[%s4079_s7 + $0x1e0] sm:$0xff] %v2210_v27  ;;  %v2212_v45 = vadd.f32 %v4069_v2, %v1938_v55  ;;  %v1940_v22 = vpop.f32.mrb[63].mxu1 }
 0x31b   : > { %2275 = vst [vmem:[%s4079_s7 + $0x1e8] sm:$0xff] %v2211_v44  ;;  %v2213_v37 = vadd.f32 %v4073_v58, %v1940_v22 }
 0x31c   : > { %2276 = vst [vmem:[%s4079_s7 + $0x1f0] sm:$0xff] %v2212_v45 }
 0x31d   : > { %2277 = vst [vmem:[%s4079_s7 + $0x1f8] sm:$0xff] %v2213_v37 }
 0x31e   : > { %2911 = shalt.err (!%p2908_p11)
}
 0x31f   : > { %s2912_s26 = scalar_lea.hbm %s4208_s13, 8192  ;;  %s2916_s24 = scalar_lea.hbm %s4268_s5, 16384 }
 0x320   : > { %p2913_p0 = scmp.ne.s32.totalorder %s4208_s13, %s2912_s26  ;;  %p2917_p6 = scmp.lt.u32.totalorder %s4208_s13, %s4268_s5 }
 0x321   : > { %p2918_p7 = scmp.lt.u32.totalorder %s2916_s24, %s2912_s26  ;;  %p2920_p8 = scmp.lt.u32.totalorder %s2912_s26, %s4208_s13 }
 0x322   : > { %p2914_p4 = pnand %p2913_p0, %p4287_p12 }
 0x323   : > { %p2919_p2 = por %p2918_p7, %p2917_p6 }
 0x324   : > { %p2915_p13 = pneg %p2914_p4 }
 0x325   : > { %p2921_p1 = por %p2920_p8, %p2919_p2 }
 0x327   : > { %p2922_p10 = pnand %p2921_p1, %p2915_p13 }
 0x329   : > { %2925 = shalt.err (!%p2922_p10)
}
 0x32a   : > { %s2994_s14 = smov 256   ;;  %s2995_s10 = smov 16  }
 0x32b   : > { %2509 = dma.vmem_to_hbm [thread:$0]  (%p4287_p12), %s4210_s11, 8192, %s4208_s13, %s2279_s21, %s2994_s14, %s2994_s14, %s2995_s10  }
 0x32c PF: > { %s2308_s25 = sand.u32 1, %s2964_s18   ;;  %p4288_p3 = scmp.ne.s32.totalorder %s4278_s29, 0 }
 0x32d   : > { %p4289_p5 = scmp.ge.s32.totalorder %s2984_s23, 2  ;;  %s2309_s17 = scalar_lea.sflag [#allocation5], %s2308_s25 }
 0x32f   : > { %p2523_p9 = pnand %p4289_p5, %p4288_p3 }
 0x331   : > { %2959 = dma.done.wait (!%p2523_p9), %s2309_s17, 8192  }
 0x332   : > { %2961 = vsyncadd (!%p2523_p9), %s2309_s17, 4294959104  ;;  %s22_s23 = sadd.s32 1, %s2984_s23   ;;  %s4290_s18 = smov %s2968_s19 }
 0x333   : > { %p19_p11 = scmp.ge.s32.totalorder %s22_s23, 4   ;;  %s4291_s19 = smov %s2972_s20 }
 0x334   : > { %s4292_s20 = smov %s3168_s6  ;;  %s4293_s21 = smov %s2980_s22 }
 0x335   : > { %s4294_s22 = smov %s4296_s12  ;;  %21 = sbr.rel (!%p19_p11) target bundleno = 7 (0x7), region = 106 }
 0x33c   :  { %2314 = vsyncpa [#allocation4], 1 }
 0x33d   :  { %2316 = vsyncpa [#allocation4 + $0x1], 1 }
 0x33e   :  { %2317 = vsyncpa [#allocation7], 1 }
 0x33f   :  { %2318 = vsyncpa [#allocation5], 1 }
 0x340   :  { %2320 = vsyncpa [#allocation5 + $0x1], 1 }

// kernel: tpu_custom_call.1
= control target key start
LH: loop header
LB: loop body
LE: loop exit
PB: predicated region body
PF: predicated region fallthrough
CT: control target
= control target key end

     0   :  { %10 = vsyncpa [#allocation4], 0  ;;  %s4263_s0 = inlined_call_operand.hbm [shape: f32[512,256], index: 0, kind: input, shape index: {}]   ;;  %s4264_s1 = inlined_call_operand.hbm [shape: bf16[256,256], index: 1, kind: input, shape index: {}]   ;;  %s4265_s2 = inlined_call_operand.vmem [shape: f32[1,256], index: 2, kind: input, shape index: {}]   ;;  %s4266_s3 = inlined_call_operand.hbm [shape: bf16[256,256], index: 3, kind: input, shape index: {}]   ;;  %s4267_s4 = inlined_call_operand.vmem [shape: f32[1,256], index: 4, kind: input, shape index: {}]   ;;  %s4268_s5 = inlined_call_operand.hbm [shape: f32[512,256], index: 5, kind: output, shape index: {}]  }
   0x1   :  { %12 = vsyncpa [#allocation4 + $0x1], 0 }
   0x2   :  { %13 = vsyncpa [#allocation7], 0 }
   0x3   :  { %14 = vsyncpa [#allocation5], 0 }
   0x4   :  { %16 = vsyncpa [#allocation5 + $0x1], 0  ;;  %s3026_s18 = smov 0   ;;  %s3028_s19 = smov 0  }
   0x5   :  { %s3030_s20 = smov 0   ;;  %s3032_s21 = smov 0  }
   0x6   :  { %s3034_s22 = smov 0   ;;  %s3036_s23 = smov 0  }
   0x7 LB: > { %s2409_s24 = sadd.s32 4294967295, %s2984_s23   ;;  %s2410_s25 = sadd.s32 4294967294, %s2984_s23   ;;  %s2984_s23 = sphi %s3036_s23, %s22_s23   ;;  %s2980_s22 = sphi %s3034_s22, %s4294_s22   ;;  %s2976_s21 = sphi %s3032_s21, %s4293_s21   ;;  %s2972_s20 = sphi %s3030_s20, %s4292_s20   ;;  %s2968_s19 = sphi %s3028_s19, %s4291_s19   ;;  %s2964_s18 = sphi %s3026_s18, %s4290_s18  }
   0x8   : > { %p54_p0 = scmp.ne.s32.totalorder %s2968_s19, %s2964_s18  ;;  %p3060_p1 = scmp.eq.s32.totalorder %s2409_s24, 0 }
   0x9   : > { %p3064_p2 = scmp.eq.s32.totalorder %s2409_s24, 1  ;;  %p183_p3 = scmp.eq.s32.totalorder %s2410_s25, 1 }
   0xa   : > { %s4275_s26 = scalar_select %p3060_p1, 1, 0 }
   0xb   : > { %p3070_p4 = por %p3060_p1, %p54_p0  ;;  %p2411_p5 = scmp.ge.s32.totalorder %s2984_s23, 1 }
   0xc   : > { %p3075_p6 = por %p183_p3, %p54_p0  ;;  %p190_p7 = scmp.lt.s32.totalorder %s2984_s23, 3 }
   0xd   : > { %s4277_s28 = scalar_select %p3070_p4, 1, 0 }
   0xe   : > { %s4278_s29 = scalar_select %p3075_p6, 1, 0 }
   0xf   : > { %p3080_p8 = pnand %p2411_p5, %p190_p7  ;;  %s2986_s6 = smov [#allocation6]  }
  0x10   : > { %s205_s7 = sshll.u32 %s2986_s6, 4  ;;  %s2987_s9 = smov [#allocation8]   ;;  %s3084_s7 = int_to_ptr.vmem [resolvable:$true] %s205_s7 }
  0x11   : > { %p2511_p9 = pneg %p3080_p8  ;;  %s230_s10 = sshll.u32 %s2987_s9, 4  ;;  %s3095_s10 = int_to_ptr.vmem [resolvable:$true] %s230_s10 }
  0x12   : > { %s2812_s13 = scalar_lea.hbm %s4264_s1, 4096 }
  0x13   : > { %p3091_p11 = pnand %p2511_p9, %p3060_p1  ;;  %p2813_p12 = scmp.ne.s32.totalorder %s4264_s1, %s2812_s13 }
  0x14   : > { %p2819_p5 = scmp.lt.u32.totalorder %s2812_s13, %s4264_s1 }
  0x15   : > { %p2814_p13 = pneg %p3091_p11 }
  0x17   : > { %p2815_p0 = pnand %p2814_p13, %p2813_p12 }
  0x19   : > { %p2816_p3 = pneg %p2815_p0 }
  0x1b   : > { %p2821_p7 = pnand %p2819_p5, %p2816_p3 }
  0x1d   : > { %2824 = shalt.err (!%p2821_p7)
}
  0x1e   : > { %s2825_s24 = scalar_lea.vmem %s3084_s7, 4096  ;;  %p2833_p1 = scmp.lt.s32.totalorder %s3084_s7, %s3084_s7 }
  0x1f   : > { %p2826_p9 = scmp.ne.s32.totalorder %s3084_s7, %s2825_s24  ;;  %p2834_p12 = scmp.lt.s32.totalorder %s2825_s24, %s2825_s24 }
  0x21   : > { %p2828_p10 = pnand %p2826_p9, %p2814_p13  ;;  %p2835_p0 = por %p2834_p12, %p2833_p1 }
  0x23   : > { %p2829_p6 = pneg %p2828_p10 }
  0x25   : > { %p2836_p4 = pnand %p2835_p0, %p2829_p6 }
  0x27   : > { %2839 = shalt.err (!%p2836_p4)
}
  0x28   : > { %s2988_s25 = smov 128   ;;  %s2989_s6 = smov 8  }
  0x29   : > { %2514 = dma.hbm_to_vmem [thread:$0]  (!%p3091_p11), %s4264_s1, 4096, %s3084_s7, [#allocation7], %s2988_s25, %s2988_s25, %s2989_s6  }
  0x2a   : > { %s2840_s14 = scalar_lea.hbm %s4266_s3, 4096 }
  0x2b   : > { %p2841_p1 = scmp.ne.s32.totalorder %s4266_s3, %s2840_s14  ;;  %p2847_p10 = scmp.lt.u32.totalorder %s2840_s14, %s4266_s3 }
  0x2d   : > { %p2843_p4 = pnand %p2841_p1, %p2814_p13 }
  0x2f   : > { %p2844_p6 = pneg %p2843_p4 }
  0x31   : > { %p2849_p3 = pnand %p2847_p10, %p2844_p6 }
  0x33   : > { %2852 = shalt.err (!%p2849_p3)
}
  0x34   : > { %s2853_s7 = scalar_lea.vmem %s3095_s10, 4096  ;;  %p2861_p12 = scmp.lt.s32.totalorder %s3095_s10, %s3095_s10 }
  0x35   : > { %p2854_p5 = scmp.ne.s32.totalorder %s3095_s10, %s2853_s7  ;;  %p2862_p0 = scmp.lt.s32.totalorder %s2853_s7, %s2853_s7 }
  0x37   : > { %p2856_p7 = pnand %p2854_p5, %p2814_p13  ;;  %p2863_p1 = por %p2862_p0, %p2861_p12 }
  0x39   : > { %p2857_p9 = pneg %p2856_p7 }
  0x3b   : > { %p2864_p4 = pnand %p2863_p1, %p2857_p9 }
  0x3d   : > { %2867 = shalt.err (!%p2864_p4)
}
  0x3e   : > { %2517 = dma.hbm_to_vmem [thread:$0]  (!%p3091_p11), %s4266_s3, 4096, %s3095_s10, [#allocation7], %s2988_s25, %s2988_s25, %s2989_s6  }
  0x3f   : > { %s34_s12 = sadd.s32 1, %s2980_s22  ;;  %s41_s13 = sadd.s32 1, %s2972_s20 }
  0x40   : > { %p36_p13 = scmp.ge.s32.totalorder %s34_s12, 2  ;;  %p48_p6 = scmp.ne.s32.totalorder %s2972_s20, %s2968_s19 }
  0x41   : > { %p49_p10 = scmp.eq.s32.totalorder %s2984_s23, 0  ;;  %p2528_p3 = scmp.lt.s32.totalorder %s2984_s23, 2 }
  0x42   : > { %s4296_s12 = smov (%p36_p13, %s34_s12), 0  ;;  %p3159_p7 = por %p3064_p2, %p48_p6 }
  0x43   : > { %p50_p5 = por %p49_p10, %p48_p6  ;;  %s38_s14 = ssub.s32 %s2980_s22, %s4296_s12 }
  0x44   : > { %s4281_s8 = scalar_select %p3159_p7, 1, 0 }
  0x45   : > { %s247_s15 = sand.u32 1, %s2972_s20   ;;  %p39_p9 = scmp.eq.s32.totalorder %s38_s14, 0 }
  0x46   : > { %s2416_s10 = sshll.u32 %s247_s15, 9  ;;  %s2496_s25 = sshll.u32 %s2980_s22, 13 }
  0x47   : > { %s3168_s6 = scalar_select %p39_p9, %s2972_s20, %s41_s13  }
  0x48   : > { %s3173_s24 = scalar_lea.hbm %s4263_s0, %s2496_s25  ;;  %s251_s27 = scalar_lea.vmem [#allocation3], %s2416_s10 }
  0x49   : > { %s259_s7 = sshll.u32 %s251_s27, 4  ;;  %p3177_p2 = pnand %p2528_p3, %p50_p5  ;;  %s3181_s7 = int_to_ptr.vmem [resolvable:$true] %s259_s7 }
  0x4a   : > { %s3183_s11 = scalar_lea.sflag [#allocation4], %s247_s15  ;;  %s2868_s13 = scalar_lea.hbm %s3173_s24, 8192 }
  0x4b   : > { %p2869_p11 = scmp.ne.s32.totalorder %s3173_s24, %s2868_s13  ;;  %p2870_p12 = pneg %p3177_p2 }
  0x4c   : > { %s2873_s25 = scalar_lea.hbm %s4263_s0, 16384  ;;  %p2874_p4 = scmp.lt.u32.totalorder %s3173_s24, %s4263_s0 }
  0x4d   : > { %p2871_p0 = pnand %p2870_p12, %p2869_p11  ;;  %p2875_p13 = scmp.lt.u32.totalorder %s2873_s25, %s2868_s13 }
  0x4e   : > { %p2877_p10 = scmp.lt.u32.totalorder %s2868_s13, %s3173_s24 }
  0x4f   : > { %p2872_p1 = pneg %p2871_p0  ;;  %p2876_p6 = por %p2875_p13, %p2874_p4 }
  0x51   : > { %p2878_p3 = por %p2877_p10, %p2876_p6 }
  0x53   : > { %p2879_p5 = pnand %p2878_p3, %p2872_p1 }
  0x55   : > { %2882 = shalt.err (!%p2879_p5)
}
  0x56   : > { %s2883_s15 = scalar_lea.vmem %s3181_s7, 8192  ;;  %s2990_s27 = smov [#allocation3]  }
  0x57   : > { %p2884_p9 = scmp.ne.s32.totalorder %s3181_s7, %s2883_s15  ;;  %s2888_s14 = sshll.u32 %s2990_s27, 4  ;;  %s2889_s14 = int_to_ptr.vmem [resolvable:$false] %s2888_s14 }
  0x58   : > { %s2890_s10 = scalar_lea.vmem %s2889_s14, 16384  ;;  %p2891_p7 = scmp.lt.s32.totalorder %s3181_s7, %s2889_s14 }
  0x59   : > { %p2886_p11 = pnand %p2884_p9, %p2870_p12  ;;  %p2892_p4 = scmp.lt.s32.totalorder %s2890_s10, %s2883_s15 }
  0x5b   : > { %p2887_p0 = pneg %p2886_p11  ;;  %p2893_p13 = por %p2892_p4, %p2891_p7 }
  0x5d   : > { %p2894_p6 = pnand %p2893_p13, %p2887_p0 }
  0x5f   : > { %2897 = shalt.err (!%p2894_p6)
}
  0x60   : > { %s2991_s13 = smov 256   ;;  %s2992_s25 = smov 16  }
  0x61   : > { %2521 = dma.hbm_to_vmem [thread:$0]  (!%p3177_p2), %s3173_s24, 8192, %s3181_s7, %s3183_s11, %s2991_s13, %s2991_s13, %s2992_s25  }
  0x62   : > { %271 = sbr.rel (%p3080_p8) target bundleno = 812 (0x32c), region = 40  ;;  %s3214_s16 = sand.u32 (!%p3080_p8), 1, %s2968_s19  }
  0x63   : > { %s2421_s17 = sshll.u32 (!%p3080_p8), %s3214_s16, 9  ;;  %s274_s15 = scalar_lea.sflag (!%p3080_p8), [#allocation4], %s3214_s16 }
  0x64   : > { %s3220_s27 = scalar_lea.vmem (!%p3080_p8), [#allocation3], %s2421_s17  ;;  %p4283_p7 = scmp.ne.s32.totalorder (!%p3080_p8), %s4277_s28, 0 }
  0x69   : > { %2951 = dma.done.wait (%p4283_p7), %s274_s15, 8192  }
  0x6a   : > { %2953 = vsyncadd (%p4283_p7), %s274_s15, 4294959104  ;;  %p4284_p2 = scmp.ne.s32.totalorder %s4275_s26, 0 }
  0x6c   : > { %2955 = dma.done.wait (%p4284_p2), [#allocation7], 8192  }
  0x6d   : > { %2957 = vsyncadd (%p4284_p2), [#allocation7], 4294959104  ;;  %v2588_v0 = vld [vmem:[#allocation6 + $0x4] ss:$8 sps:$4 sm:$0xff]   ;;  %v2590_v1 = vld [vmem:[#allocation6] ss:$8 sps:$4 sm:$0xff]  }
  0x6e   : > { %693 = vmatprep.subr.bf16.mxu0 %v2588_v0  ;;  %v2591_v2 = vld [vmem:[#allocation6 + $0x14] ss:$8 sps:$4 sm:$0xff]   ;;  %v2593_v3 = vld [vmem:[#allocation6 + $0x10] ss:$8 sps:$4 sm:$0xff]   ;;  %v2594_v4 = vld [vmem:[#allocation6 + $0x24] ss:$8 sps:$4 sm:$0xff]  }
  0x6f   : > { %694 = vmatpush1.bf16.msra.mxu0 %v2590_v1  ;;  %v2596_v5 = vld [vmem:[#allocation6 + $0x20] ss:$8 sps:$4 sm:$0xff]   ;;  %v2597_v6 = vld [vmem:[#allocation6 + $0x34] ss:$8 sps:$4 sm:$0xff]   ;;  %v2599_v7 = vld [vmem:[#allocation6 + $0x30] ss:$8 sps:$4 sm:$0xff]  }
  0x70   : > { %695 = vmatprep.subr.bf16.mxu0 %v2591_v2  ;;  %v2600_v8 = vld [vmem:[#allocation6 + $0x44] ss:$8 sps:$4 sm:$0xff]   ;;  %v2602_v9 = vld [vmem:[#allocation6 + $0x40] ss:$8 sps:$4 sm:$0xff]   ;;  %v2603_v10 = vld [vmem:[#allocation6 + $0x54] ss:$8 sps:$4 sm:$0xff]  }
  0x71   : > { %v2605_v11 = vld [vmem:[#allocation6 + $0x50] ss:$8 sps:$4 sm:$0xff]   ;;  %v2606_v12 = vld [vmem:[#allocation6 + $0x64] ss:$8 sps:$4 sm:$0xff]   ;;  %v2608_v16 = vld [vmem:[#allocation6 + $0x60] ss:$8 sps:$4 sm:$0xff]  }
  0x72   : > { %v394_v13 = vld [vmem:[%s3220_s27 + $0x8] sm:$0xff]  ;;  %v396_v14 = vld [vmem:[%s3220_s27 + $0x18] sm:$0xff]  ;;  %v393_v38 = vld [vmem:[%s3220_s27] sm:$0xff]  ;;  %s4079_s7 = scalar_lea.vmem [#allocation9], %s2421_s17  ;;  %s2498_s9 = sshll.u32 %s2976_s21, 13 }
  0x73   : > { %696 = vmatpush1.bf16.msra.mxu0 %v2593_v3  ;;  %v458_v15 = vpack.c.bf16 %v396_v14, %v394_v13  ;;  %v2609_v17 = vld [vmem:[#allocation6 + $0x74] ss:$8 sps:$4 sm:$0xff]   ;;  %v2611_v18 = vld [vmem:[#allocation6 + $0x70] ss:$8 sps:$4 sm:$0xff]   ;;  %v2612_v19 = vld [vmem:[#allocation6 + $0x84] ss:$8 sps:$4 sm:$0xff]   ;;  %s4208_s13 = scalar_lea.hbm %s4268_s5, %s2498_s9 }
  0x74   : > { %697 = vmatprep.subr.bf16.mxu0 %v2594_v4  ;;  %v2614_v20 = vld [vmem:[#allocation6 + $0x80] ss:$8 sps:$4 sm:$0xff]   ;;  %v2615_v21 = vld [vmem:[#allocation6 + $0x94] ss:$8 sps:$4 sm:$0xff]   ;;  %v2617_v22 = vld [vmem:[#allocation6 + $0x90] ss:$8 sps:$4 sm:$0xff]  }
  0x75   : > { %725 = vmatprep.mubr.bf16.mxu0 %v458_v15  ;;  %v2618_v23 = vld [vmem:[#allocation6 + $0xa4] ss:$8 sps:$4 sm:$0xff]   ;;  %v2620_v24 = vld [vmem:[#allocation6 + $0xa0] ss:$8 sps:$4 sm:$0xff]   ;;  %v2621_v25 = vld [vmem:[#allocation6 + $0xb4] ss:$8 sps:$4 sm:$0xff]  }
  0x76   : > { %v2623_v26 = vld [vmem:[#allocation6 + $0xb0] ss:$8 sps:$4 sm:$0xff]   ;;  %v2624_v27 = vld [vmem:[#allocation6 + $0xc4] ss:$8 sps:$4 sm:$0xff]   ;;  %v2626_v28 = vld [vmem:[#allocation6 + $0xc0] ss:$8 sps:$4 sm:$0xff]  }
  0x77   : > { %698 = vmatpush1.bf16.msra.mxu0 %v2596_v5  ;;  %v2627_v29 = vld [vmem:[#allocation6 + $0xd4] ss:$8 sps:$4 sm:$0xff]   ;;  %v2629_v30 = vld [vmem:[#allocation6 + $0xd0] ss:$8 sps:$4 sm:$0xff]   ;;  %v2630_v31 = vld [vmem:[#allocation6 + $0xe4] ss:$8 sps:$4 sm:$0xff]  }
  0x78   : > { %699 = vmatprep.subr.bf16.mxu0 %v2597_v6  ;;  %v2632_v32 = vld [vmem:[#allocation6 + $0xe0] ss:$8 sps:$4 sm:$0xff]   ;;  %v2633_v33 = vld [vmem:[#allocation6 + $0xf4] ss:$8 sps:$4 sm:$0xff]   ;;  %v2636_v34 = vld [vmem:[#allocation8 + $0x4] ss:$8 sps:$4 sm:$0xff]  }
  0x79   : > { %v2638_v35 = vld [vmem:[#allocation8] ss:$8 sps:$4 sm:$0xff]   ;;  %v2639_v36 = vld [vmem:[#allocation8 + $0x14] ss:$8 sps:$4 sm:$0xff]   ;;  %v2635_v37 = vld [vmem:[#allocation6 + $0xf0] ss:$8 sps:$4 sm:$0xff]   ;;  %1750 = vmatprep.subr.bf16.mxu1 %v2636_v34 }
  0x7a   : > { %v395_v39 = vld [vmem:[%s3220_s27 + $0x10] sm:$0xff]  ;;  %v398_v40 = vld [vmem:[%s3220_s27 + $0x28] sm:$0xff]  ;;  %v400_v41 = vld [vmem:[%s3220_s27 + $0x38] sm:$0xff]  ;;  %1751 = vmatpush1.bf16.msra.mxu1 %v2638_v35  ;;  %s2293_s11 = sshll.u32 %s4079_s7, 4  ;;  %s2279_s21 = scalar_lea.sflag [#allocation5], %s3214_s16  ;;  %s4210_s11 = int_to_ptr.vmem [resolvable:$true] %s2293_s11 }
  0x7b   : > { %700 = vmatpush1.bf16.msra.mxu0 %v2599_v7  ;;  %v2641_v42 = vld [vmem:[#allocation8 + $0x10] ss:$8 sps:$4 sm:$0xff]   ;;  %v457_v43 = vpack.c.bf16 %v395_v39, %v393_v38  ;;  %1752 = vmatprep.subr.bf16.mxu1 %v2639_v36  ;;  %v2642_v44 = vld [vmem:[#allocation8 + $0x24] ss:$8 sps:$4 sm:$0xff]   ;;  %v460_v45 = vpack.c.bf16 %v400_v41, %v398_v40  ;;  %v2644_v46 = vld [vmem:[#allocation8 + $0x20] ss:$8 sps:$4 sm:$0xff]  }
  0x7c   : > { %701 = vmatprep.subr.bf16.mxu0 %v2600_v8  ;;  %v2645_v47 = vld [vmem:[#allocation8 + $0x34] ss:$8 sps:$4 sm:$0xff]   ;;  %v397_v48 = vld [vmem:[%s3220_s27 + $0x20] sm:$0xff]  ;;  %v402_v50 = vld [vmem:[%s3220_s27 + $0x48] sm:$0xff]  ;;  %s2898_s25 = scalar_lea.vmem %s4210_s11, 8192  ;;  %p4287_p12 = scmp.ne.s32.totalorder %s4281_s8, 0 }
  0x7d   : > { %v399_v49 = vld [vmem:[%s3220_s27 + $0x30] sm:$0xff]  ;;  %v404_v51 = vld [vmem:[%s3220_s27 + $0x58] sm:$0xff]  ;;  %v2648_v54 = vld [vmem:[#allocation8 + $0x44] ss:$8 sps:$4 sm:$0xff]   ;;  %p2899_p8 = scmp.ne.s32.totalorder %s4210_s11, %s2898_s25  ;;  %s2993_s17 = smov [#allocation9]  }
  0x7e   : > { %1753 = vmatpush1.bf16.msra.mxu1 %v2641_v42  ;;  %v2647_v52 = vld [vmem:[#allocation8 + $0x30] ss:$8 sps:$4 sm:$0xff]   ;;  %v459_v53 = vpack.c.bf16 %v399_v49, %v397_v48  ;;  %v462_v55 = vpack.c.bf16 %v404_v51, %v402_v50  ;;  %v2650_v56 = vld [vmem:[#allocation8 + $0x40] ss:$8 sps:$4 sm:$0xff]   ;;  %v2651_v57 = vld [vmem:[#allocation8 + $0x54] ss:$8 sps:$4 sm:$0xff]  }
  0x7f   : > { %702 = vmatpush1.bf16.msra.mxu0 %v2602_v9  ;;  %1754 = vmatprep.subr.bf16.mxu1 %v2642_v44  ;;  %v401_v58 = vld [vmem:[%s3220_s27 + $0x40] sm:$0xff]  ;;  %v403_v59 = vld [vmem:[%s3220_s27 + $0x50] sm:$0xff]  ;;  %v406_v60 = vld [vmem:[%s3220_s27 + $0x68] sm:$0xff]  ;;  %p2900_p1 = pnand %p2899_p8, %p4287_p12  ;;  %s2902_s15 = sshll.u32 %s2993_s17, 4  ;;  %s2903_s15 = int_to_ptr.vmem [resolvable:$false] %s2902_s15 }
  0x80   : > { %703 = vmatprep.subr.bf16.mxu0 %v2603_v10  ;;  %v408_v61 = vld [vmem:[%s3220_s27 + $0x78] sm:$0xff]  ;;  %v461_v63 = vpack.c.bf16 %v403_v59, %v401_v58  ;;  %v2654_v0 = vld [vmem:[#allocation8 + $0x64] ss:$8 sps:$4 sm:$0xff]   ;;  %v2656_v2 = vld [vmem:[#allocation8 + $0x60] ss:$8 sps:$4 sm:$0xff]   ;;  %p2905_p3 = scmp.lt.s32.totalorder %s4210_s11, %s2903_s15 }
  0x81   : > { %v2653_v62 = vld [vmem:[#allocation8 + $0x50] ss:$8 sps:$4 sm:$0xff]   ;;  %v464_v1 = vpack.c.bf16 %v408_v61, %v406_v60  ;;  %v405_v3 = vld [vmem:[%s3220_s27 + $0x60] sm:$0xff]  ;;  %v410_v5 = vld [vmem:[%s3220_s27 + $0x88] sm:$0xff]  ;;  %p2901_p10 = pneg %p2900_p1 }
  0x82   : > { %1755 = vmatpush1.bf16.msra.mxu1 %v2644_v46  ;;  %v407_v4 = vld [vmem:[%s3220_s27 + $0x70] sm:$0xff]  ;;  %v412_v6 = vld [vmem:[%s3220_s27 + $0x98] sm:$0xff]  ;;  %v409_v9 = vld [vmem:[%s3220_s27 + $0x80] sm:$0xff] }
  0x83   : > { %704 = vmatpush1.bf16.msra.mxu0 %v2605_v11  ;;  %1756 = vmatprep.subr.bf16.mxu1 %v2645_v47  ;;  %v463_v7 = vpack.c.bf16 %v407_v4, %v405_v3  ;;  %v466_v8 = vpack.c.bf16 %v412_v6, %v410_v5  ;;  %v411_v10 = vld [vmem:[%s3220_s27 + $0x90] sm:$0xff]  ;;  %v414_v11 = vld [vmem:[%s3220_s27 + $0xa8] sm:$0xff]  ;;  %v413_v15 = vld [vmem:[%s3220_s27 + $0xa0] sm:$0xff] }
  0x84   : > { %705 = vmatprep.subr.bf16.mxu0 %v2606_v12  ;;  %v416_v12 = vld [vmem:[%s3220_s27 + $0xb8] sm:$0xff]  ;;  %v465_v13 = vpack.c.bf16 %v411_v10, %v409_v9  ;;  %v427_v34 = vld [vmem:[%s3220_s27 + $0x110] sm:$0xff]  ;;  %v430_v35 = vld [vmem:[%s3220_s27 + $0x128] sm:$0xff] }
  0x85   : > { %v468_v14 = vpack.c.bf16 %v416_v12, %v414_v11  ;;  %v432_v36 = vld [vmem:[%s3220_s27 + $0x138] sm:$0xff]  ;;  %v429_v39 = vld [vmem:[%s3220_s27 + $0x120] sm:$0xff]  ;;  %v431_v40 = vld [vmem:[%s3220_s27 + $0x130] sm:$0xff] }
  0x86   : > { %1757 = vmatpush1.bf16.msra.mxu1 %v2647_v52  ;;  %v476_v38 = vpack.c.bf16 %v432_v36, %v430_v35  ;;  %v434_v41 = vld [vmem:[%s3220_s27 + $0x148] sm:$0xff]  ;;  %v436_v42 = vld [vmem:[%s3220_s27 + $0x158] sm:$0xff]  ;;  %v435_v46 = vld [vmem:[%s3220_s27 + $0x150] sm:$0xff] }
  0x87   : > { %706 = vmatpush1.bf16.msra.mxu0 %v2608_v16  ;;  %1758 = vmatprep.subr.bf16.mxu1 %v2648_v54  ;;  %v415_v16 = vld [vmem:[%s3220_s27 + $0xb0] sm:$0xff]  ;;  %v478_v44 = vpack.c.bf16 %v436_v42, %v434_v41  ;;  %v438_v47 = vld [vmem:[%s3220_s27 + $0x168] sm:$0xff]  ;;  %v440_v48 = vld [vmem:[%s3220_s27 + $0x178] sm:$0xff] }
  0x88   : > { %707 = vmatprep.subr.bf16.mxu0 %v2609_v17  ;;  %v418_v17 = vld [vmem:[%s3220_s27 + $0xc8] sm:$0xff]  ;;  %v480_v50 = vpack.c.bf16 %v440_v48, %v438_v47  ;;  %v437_v51 = vld [vmem:[%s3220_s27 + $0x160] sm:$0xff]  ;;  %v439_v52 = vld [vmem:[%s3220_s27 + $0x170] sm:$0xff] }
  0x89   : > { %v442_v54 = vld [vmem:[%s3220_s27 + $0x188] sm:$0xff]  ;;  %v441_v61 = vld [vmem:[%s3220_s27 + $0x180] sm:$0xff]  ;;  %v2669_v9 = vld [vmem:[#allocation8 + $0xb4] ss:$8 sps:$4 sm:$0xff]  }
  0x8a   : > { %1759 = vmatpush1.bf16.msra.mxu1 %v2650_v56  ;;  %v2659_v56 = vld [vmem:[#allocation8 + $0x70] ss:$8 sps:$4 sm:$0xff]   ;;  %v2660_v59 = vld [vmem:[#allocation8 + $0x84] ss:$8 sps:$4 sm:$0xff]   ;;  %v2662_v60 = vld [vmem:[#allocation8 + $0x80] ss:$8 sps:$4 sm:$0xff]  }
  0x8b   : > { %708 = vmatpush1.bf16.msra.mxu0 %v2611_v18  ;;  %1760 = vmatprep.subr.bf16.mxu1 %v2651_v57  ;;  %v420_v18 = vld [vmem:[%s3220_s27 + $0xd8] sm:$0xff]  ;;  %v479_v57 = vpack.c.bf16 %v439_v52, %v437_v51  ;;  %v2666_v5 = vld [vmem:[#allocation8 + $0xa4] ss:$8 sps:$4 sm:$0xff]   ;;  %v2668_v6 = vld [vmem:[#allocation8 + $0xa0] ss:$8 sps:$4 sm:$0xff]  }
  0x8c   : > { %709 = vmatprep.subr.bf16.mxu0 %v2612_v19  ;;  %v467_v19 = vpack.c.bf16 %v415_v16, %v413_v15  ;;  %v450_v10 = vld [vmem:[%s3220_s27 + $0x1c8] sm:$0xff]  ;;  %v452_v11 = vld [vmem:[%s3220_s27 + $0x1d8] sm:$0xff]  ;;  %v521_v35 = vld [vmem:[%s4265_s2] sm:$0x3] }
  0x8d   : > { %v2671_v12 = vld [vmem:[#allocation8 + $0xb0] ss:$8 sps:$4 sm:$0xff]   ;;  %v2672_v15 = vld [vmem:[#allocation8 + $0xc4] ss:$8 sps:$4 sm:$0xff]   ;;  %v2674_v16 = vld [vmem:[#allocation8 + $0xc0] ss:$8 sps:$4 sm:$0xff]  }
  0x8e   : > { %1761 = vmatpush1.bf16.msra.mxu1 %v2653_v62  ;;  %v443_v62 = vld [vmem:[%s3220_s27 + $0x190] sm:$0xff] }
  0x8f   : > { %710 = vmatpush1.bf16.msra.mxu0 %v2614_v20  ;;  %1762 = vmatprep.subr.bf16.mxu1 %v2654_v0  ;;  %v470_v20 = vpack.c.bf16 %v420_v18, %v418_v17  ;;  %v446_v0 = vld [vmem:[%s3220_s27 + $0x1a8] sm:$0xff]  ;;  %v481_v3 = vpack.c.bf16 %v443_v62, %v441_v61  ;;  %v449_v17 = vld [vmem:[%s3220_s27 + $0x1c0] sm:$0xff]  ;;  %v451_v18 = vld [vmem:[%s3220_s27 + $0x1d0] sm:$0xff] }
  0x90   : > { %711 = vmatprep.subr.bf16.mxu0 %v2615_v21  ;;  %v417_v21 = vld [vmem:[%s3220_s27 + $0xc0] sm:$0xff] }
  0x92   : > { %1763 = vmatpush1.bf16.msra.mxu1 %v2656_v2  ;;  %v2665_v2 = vld [vmem:[#allocation8 + $0x90] ss:$8 sps:$4 sm:$0xff]  }
  0x93   : > { %712 = vmatpush1.bf16.msra.mxu0 %v2617_v22  ;;  %v419_v22 = vld [vmem:[%s3220_s27 + $0xd0] sm:$0xff] }
  0x94   : > { %713 = vmatprep.subr.bf16.mxu0 %v2618_v23  ;;  %v422_v23 = vld [vmem:[%s3220_s27 + $0xe8] sm:$0xff] }
  0x97   : > { %714 = vmatpush1.bf16.msra.mxu0 %v2620_v24  ;;  %v424_v24 = vld [vmem:[%s3220_s27 + $0xf8] sm:$0xff] }
  0x98   : > { %715 = vmatprep.subr.bf16.mxu0 %v2621_v25  ;;  %v469_v25 = vpack.c.bf16 %v419_v22, %v417_v21  ;;  %v456_v21 = vld [vmem:[%s3220_s27 + $0x1f8] sm:$0xff] }
  0x99   : > { %v2677_v22 = vld [vmem:[#allocation8 + $0xd0] ss:$8 sps:$4 sm:$0xff]  }
  0x9b   : > { %716 = vmatpush1.bf16.msra.mxu0 %v2623_v26  ;;  %v472_v26 = vpack.c.bf16 %v424_v24, %v422_v23  ;;  %v485_v23 = vpack.c.bf16 %v451_v18, %v449_v17 }
  0x9c   : > { %717 = vmatprep.subr.bf16.mxu0 %v2624_v27  ;;  %v421_v27 = vld [vmem:[%s3220_s27 + $0xe0] sm:$0xff] }
  0x9f   : > { %718 = vmatpush1.bf16.msra.mxu0 %v2626_v28  ;;  %v423_v28 = vld [vmem:[%s3220_s27 + $0xf0] sm:$0xff] }
  0xa0   : > { %719 = vmatprep.subr.bf16.mxu0 %v2627_v29  ;;  %v426_v29 = vld [vmem:[%s3220_s27 + $0x108] sm:$0xff] }
  0xa3   : > { %720 = vmatpush1.bf16.msra.mxu0 %v2629_v30  ;;  %v428_v30 = vld [vmem:[%s3220_s27 + $0x118] sm:$0xff] }
  0xa4   : > { %721 = vmatprep.subr.bf16.mxu0 %v2630_v31  ;;  %v471_v31 = vpack.c.bf16 %v423_v28, %v421_v27  ;;  %v453_v27 = vld [vmem:[%s3220_s27 + $0x1e0] sm:$0xff]  ;;  %v455_v28 = vld [vmem:[%s3220_s27 + $0x1f0] sm:$0xff] }
  0xa7   : > { %722 = vmatpush1.bf16.msra.mxu0 %v2632_v32  ;;  %v474_v32 = vpack.c.bf16 %v428_v30, %v426_v29  ;;  %v2681_v29 = vld [vmem:[#allocation8 + $0xf4] ss:$8 sps:$4 sm:$0xff]   ;;  %v2683_v30 = vld [vmem:[#allocation8 + $0xf0] ss:$8 sps:$4 sm:$0xff]  }
  0xa8   : > { %723 = vmatprep.subr.bf16.mxu0 %v2633_v33  ;;  %v425_v33 = vld [vmem:[%s3220_s27 + $0x100] sm:$0xff] }
  0xab   : > { %724 = vmatpush1.bf16.msra.mxu0 %v2635_v37  ;;  %v473_v37 = vpack.c.bf16 %v427_v34, %v425_v33 }
  0xae   : > { %726 = vmatmul.mubr.bf16.vlgmr.msra.gmra.mrb[0].mxu0 %v457_v43  ;;  %v475_v43 = vpack.c.bf16 %v431_v40, %v429_v39 }
  0xaf   : > { %735 = vmatprep.mubr.bf16.mxu0 %v460_v45  ;;  %v433_v45 = vld [vmem:[%s3220_s27 + $0x140] sm:$0xff] }
  0xb0   : > { %v477_v49 = vpack.c.bf16 %v435_v46, %v433_v45 }
  0xb6   : > { %736 = vmatmul.mubr.bf16.gmra.mrb[4].mxu0 %v459_v53  ;;  %v2657_v53 = vld [vmem:[#allocation8 + $0x74] ss:$8 sps:$4 sm:$0xff]  }
  0xb7   : > { %745 = vmatprep.mubr.bf16.mxu0 %v462_v55  ;;  %v444_v55 = vld [vmem:[%s3220_s27 + $0x198] sm:$0xff]  ;;  %1764 = vmatprep.subr.bf16.mxu1 %v2657_v53 }
  0xb8   : > { %1765 = vmatpush1.bf16.msra.mxu1 %v2659_v56  ;;  %v482_v58 = vpack.c.bf16 %v444_v55, %v442_v54 }
  0xb9   : > { %1766 = vmatprep.subr.bf16.mxu1 %v2660_v59 }
  0xbc   : > { %1767 = vmatpush1.bf16.msra.mxu1 %v2662_v60 }
  0xbe   : > { %746 = vmatmul.mubr.bf16.gmra.mrb[8].mxu0 %v461_v63  ;;  %v2663_v63 = vld [vmem:[#allocation8 + $0x94] ss:$8 sps:$4 sm:$0xff]  }
  0xbf   : > { %755 = vmatprep.mubr.bf16.mxu0 %v464_v1  ;;  %v448_v1 = vld [vmem:[%s3220_s27 + $0x1b8] sm:$0xff]  ;;  %1768 = vmatprep.subr.bf16.mxu1 %v2663_v63 }
  0xc0   : > { %1769 = vmatpush1.bf16.msra.mxu1 %v2665_v2  ;;  %v484_v4 = vpack.c.bf16 %v448_v1, %v446_v0 }
  0xc1   : > { %1770 = vmatprep.subr.bf16.mxu1 %v2666_v5 }
  0xc4   : > { %1771 = vmatpush1.bf16.msra.mxu1 %v2668_v6 }
  0xc5   : > { %1772 = vmatprep.subr.bf16.mxu1 %v2669_v9 }
  0xc6   : > { %756 = vmatmul.mubr.bf16.gmra.mrb[12].mxu0 %v463_v7  ;;  %v445_v7 = vld [vmem:[%s3220_s27 + $0x1a0] sm:$0xff] }
  0xc7   : > { %765 = vmatprep.mubr.bf16.mxu0 %v466_v8  ;;  %v447_v8 = vld [vmem:[%s3220_s27 + $0x1b0] sm:$0xff] }
  0xc8   : > { %1773 = vmatpush1.bf16.msra.mxu1 %v2671_v12 }
  0xc9   : > { %1774 = vmatprep.subr.bf16.mxu1 %v2672_v15 }
  0xcc   : > { %1775 = vmatpush1.bf16.msra.mxu1 %v2674_v16 }
  0xce   : > { %766 = vmatmul.mubr.bf16.gmra.mrb[16].mxu0 %v465_v13  ;;  %v483_v13 = vpack.c.bf16 %v447_v8, %v445_v7 }
  0xcf   : > { %775 = vmatprep.mubr.bf16.mxu0 %v468_v14  ;;  %v486_v14 = vpack.c.bf16 %v452_v11, %v450_v10 }
  0xd6   : > { %776 = vmatmul.mubr.bf16.gmra.mrb[20].mxu0 %v467_v19  ;;  %v2675_v19 = vld [vmem:[#allocation8 + $0xd4] ss:$8 sps:$4 sm:$0xff]  }
  0xd7   : > { %785 = vmatprep.mubr.bf16.mxu0 %v470_v20  ;;  %v454_v20 = vld [vmem:[%s3220_s27 + $0x1e8] sm:$0xff]  ;;  %1776 = vmatprep.subr.bf16.mxu1 %v2675_v19  ;;  %s2904_s27 = scalar_lea.vmem %s2903_s15, 16384 }
  0xd8   : > { %1777 = vmatpush1.bf16.msra.mxu1 %v2677_v22  ;;  %v488_v24 = vpack.c.bf16 %v456_v21, %v454_v20  ;;  %p2906_p5 = scmp.lt.s32.totalorder %s2904_s27, %s2898_s25 }
  0xda   : > { %p2907_p9 = por %p2906_p5, %p2905_p3 }
  0xdc   : > { %p2908_p11 = pnand %p2907_p9, %p2901_p10 }
  0xde   : > { %786 = vmatmul.mubr.bf16.gmra.mrb[24].mxu0 %v469_v25  ;;  %v2678_v25 = vld [vmem:[#allocation8 + $0xe4] ss:$8 sps:$4 sm:$0xff]  }
  0xdf   : > { %795 = vmatprep.mubr.bf16.mxu0 %v472_v26  ;;  %v2680_v26 = vld [vmem:[#allocation8 + $0xe0] ss:$8 sps:$4 sm:$0xff]   ;;  %1778 = vmatprep.subr.bf16.mxu1 %v2678_v25 }
  0xe0   : > { %1779 = vmatpush1.bf16.msra.mxu1 %v2680_v26 }
  0xe1   : > { %1780 = vmatprep.subr.bf16.mxu1 %v2681_v29 }
  0xe4   : > { %1781 = vmatpush1.bf16.msra.mxu1 %v2683_v30 }
  0xe6   : > { %796 = vmatmul.mubr.bf16.gmra.mrb[28].mxu0 %v471_v31  ;;  %v487_v31 = vpack.c.bf16 %v455_v28, %v453_v27 }
  0xe7   : > { %805 = vmatprep.mubr.bf16.mxu0 %v474_v32  ;;  %v523_v32 = vlaneseq }
  0xe9   : > { %v3294_v33 = vshrl.u32 %v523_v32, 7 }
  0xeb   : > { %v4274_v34 = vsub.s32 0, %v3294_v33  ;;  %v4273_v36 = vsub.s32 1, %v3294_v33 }
  0xee   : > { %806 = vmatmul.mubr.bf16.gmra.mrb[32].mxu0 %v473_v37  ;;  %v3303_v37 = vrot.slane %v521_v35, %v4274_v34 }
  0xef   : > { %815 = vmatprep.mubr.bf16.mxu0 %v476_v38  ;;  %v3307_v38 = vrot.slane %v521_v35, %v4273_v36 }
  0xf6   : > { %816 = vmatmul.mubr.bf16.gmra.mrb[36].mxu0 %v475_v43 }
  0xf7   : > { %825 = vmatprep.mubr.bf16.mxu0 %v478_v44 }
  0xfe   : > { %826 = vmatmul.mubr.bf16.gmra.mrb[40].mxu0 %v477_v49 }
  0xff   : > { %835 = vmatprep.mubr.bf16.mxu0 %v480_v50 }
 0x106   : > { %836 = vmatmul.mubr.bf16.gmra.mrb[44].mxu0 %v479_v57 }
 0x107   : > { %845 = vmatprep.mubr.bf16.mxu0 %v482_v58 }
 0x10e   : > { %846 = vmatmul.mubr.bf16.gmra.mrb[48].mxu0 %v481_v3 }
 0x10f   : > { %855 = vmatprep.mubr.bf16.mxu0 %v484_v4 }
 0x116   : > { %856 = vmatmul.mubr.bf16.gmra.mrb[52].mxu0 %v483_v13 }
 0x117   : > { %865 = vmatprep.mubr.bf16.mxu0 %v486_v14 }
 0x11e   : > { %866 = vmatmul.mubr.bf16.gmra.mrb[56].mxu0 %v485_v23 }
 0x11f   : > { %875 = vmatprep.mubr.bf16.mxu0 %v488_v24 }
 0x126   : > { %876 = vmatmul.mubr.bf16.gmra.mrb[60].mxu0 %v487_v31 }
 0x181   : > { %v727_v39 = vpop.f32.mrb[0].mxu0 }
 0x182   : > { %v3310_v40 = vadd.f32 %v727_v39, %v3303_v37  ;;  %v729_v41 = vpop.f32.mrb[1].mxu0 }
 0x183   : > { %v3313_v42 = vadd.f32 %v729_v41, %v3307_v38  ;;  %v731_v43 = vpop.f32.mrb[2].mxu0 }
 0x184   : > { %v886_v44 = vmul.f32 %v3310_v40, %v3310_v40  ;;  %v3318_v45 = vadd.f32 %v731_v43, %v3303_v37  ;;  %v733_v46 = vpop.f32.mrb[3].mxu0 }
 0x185   : > { %v887_v47 = vmul.f32 %v3313_v42, %v3313_v42  ;;  %v3323_v48 = vadd.f32 %v733_v46, %v3307_v38 }
 0x186   : > { %v950_v49 = vmul.f32 %v886_v44, %v3310_v40  ;;  %v888_v50 = vmul.f32 %v3318_v45, %v3318_v45 }
 0x187   : > { %v951_v51 = vmul.f32 %v887_v47, %v3313_v42  ;;  %v889_v52 = vmul.f32 %v3323_v48, %v3323_v48 }
 0x188   : > { %v1014_v53 = vmul.f32 0.044715, %v950_v49  ;;  %v952_v54 = vmul.f32 %v888_v50, %v3318_v45 }
 0x189   : > { %v1015_v55 = vmul.f32 0.044715, %v951_v51  ;;  %v953_v56 = vmul.f32 %v889_v52, %v3323_v48  ;;  %v737_v57 = vpop.f32.mrb[4].mxu0 }
 0x18a   : > { %v1078_v58 = vadd.f32 %v1014_v53, %v3310_v40  ;;  %v1016_v59 = vmul.f32 0.044715, %v952_v54  ;;  %v3335_v60 = vadd.f32 %v737_v57, %v3303_v37  ;;  %v739_v61 = vpop.f32.mrb[5].mxu0 }
 0x18b   : > { %v1017_v62 = vmul.f32 0.044715, %v953_v56  ;;  %v3338_v63 = vadd.f32 %v739_v61, %v3307_v38  ;;  %v741_v0 = vpop.f32.mrb[6].mxu0  ;;  %v1079_v1 = vadd.f32 %v1015_v55, %v3313_v42 }
 0x18c   : > { %v1142_v2 = vmul.f32 0.7978846, %v1078_v58  ;;  %v1080_v3 = vadd.f32 %v1016_v59, %v3318_v45  ;;  %v890_v4 = vmul.f32 %v3335_v60, %v3335_v60  ;;  %v3345_v5 = vadd.f32 %v741_v0, %v3303_v37  ;;  %v743_v6 = vpop.f32.mrb[7].mxu0 }
 0x18d   : > { %v891_v7 = vmul.f32 %v3338_v63, %v3338_v63  ;;  %v3350_v8 = vadd.f32 %v743_v6, %v3307_v38  ;;  %v1081_v9 = vadd.f32 %v1017_v62, %v3323_v48  ;;  %v1143_v10 = vmul.f32 0.7978846, %v1079_v1 }
 0x18e   : > { %2684 = vtanh.f32 %v1142_v2  ;;  %v1144_v11 = vmul.f32 0.7978846, %v1080_v3  ;;  %v954_v12 = vmul.f32 %v890_v4, %v3335_v60  ;;  %v892_v13 = vmul.f32 %v3345_v5, %v3345_v5 }
 0x18f   : > { %v955_v14 = vmul.f32 %v891_v7, %v3338_v63  ;;  %v893_v15 = vmul.f32 %v3350_v8, %v3350_v8  ;;  %v1145_v16 = vmul.f32 0.7978846, %v1081_v9  ;;  %2686 = vtanh.f32 %v1143_v10 }
 0x190   : > { %2688 = vtanh.f32 %v1144_v11  ;;  %v1018_v17 = vmul.f32 0.044715, %v954_v12  ;;  %v956_v18 = vmul.f32 %v892_v13, %v3345_v5 }
 0x191   : > { %v1019_v19 = vmul.f32 0.044715, %v955_v14  ;;  %v957_v20 = vmul.f32 %v893_v15, %v3350_v8  ;;  %v747_v21 = vpop.f32.mrb[8].mxu0  ;;  %2690 = vtanh.f32 %v1145_v16 }
 0x192   : > { %v1082_v22 = vadd.f32 %v1018_v17, %v3335_v60  ;;  %v1020_v23 = vmul.f32 0.044715, %v956_v18  ;;  %v3363_v24 = vadd.f32 %v747_v21, %v3303_v37  ;;  %v749_v25 = vpop.f32.mrb[9].mxu0 }
 0x193   : > { %v1083_v26 = vadd.f32 %v1019_v19, %v3338_v63  ;;  %v1021_v27 = vmul.f32 0.044715, %v957_v20  ;;  %v3367_v28 = vadd.f32 %v749_v25, %v3307_v38  ;;  %v751_v29 = vpop.f32.mrb[10].mxu0 }
 0x194   : > { %v1146_v30 = vmul.f32 0.7978846, %v1082_v22  ;;  %v1084_v31 = vadd.f32 %v1020_v23, %v3345_v5  ;;  %v894_v32 = vmul.f32 %v3363_v24, %v3363_v24  ;;  %v3373_v35 = vadd.f32 %v751_v29, %v3303_v37  ;;  %v753_v39 = vpop.f32.mrb[11].mxu0 }
 0x195   : > { %v1147_v41 = vmul.f32 0.7978846, %v1083_v26  ;;  %v1085_v43 = vadd.f32 %v1021_v27, %v3350_v8  ;;  %v895_v44 = vmul.f32 %v3367_v28, %v3367_v28  ;;  %v3379_v46 = vadd.f32 %v753_v39, %v3307_v38 }
 0x196   : > { %2692 = vtanh.f32 %v1146_v30  ;;  %v1148_v47 = vmul.f32 0.7978846, %v1084_v31  ;;  %v958_v49 = vmul.f32 %v894_v32, %v3363_v24  ;;  %v896_v50 = vmul.f32 %v3373_v35, %v3373_v35 }
 0x197   : > { %2694 = vtanh.f32 %v1147_v41  ;;  %v1149_v51 = vmul.f32 0.7978846, %v1085_v43  ;;  %v959_v52 = vmul.f32 %v895_v44, %v3367_v28  ;;  %v897_v53 = vmul.f32 %v3379_v46, %v3379_v46 }
 0x198   : > { %v2685_v54 = vpop.eup %2684  ;;  %2696 = vtanh.f32 %v1148_v47  ;;  %v1022_v55 = vmul.f32 0.044715, %v958_v49  ;;  %v960_v56 = vmul.f32 %v896_v50, %v3373_v35 }
 0x199   : > { %v2687_v57 = vpop.eup %2686  ;;  %2698 = vtanh.f32 %v1149_v51  ;;  %v1023_v58 = vmul.f32 0.044715, %v959_v52  ;;  %v961_v59 = vmul.f32 %v897_v53, %v3379_v46  ;;  %v757_v61 = vpop.f32.mrb[12].mxu0  ;;  %v3389_v62 = vadd.f32 1.0, %v2685_v54 }
 0x19a   : > { %v2689_v0 = vpop.eup %2688  ;;  %v1086_v1 = vadd.f32 %v1022_v55, %v3363_v24  ;;  %v1024_v2 = vmul.f32 0.044715, %v960_v56  ;;  %v3393_v3 = vadd.f32 %v757_v61, %v3303_v37  ;;  %v759_v4 = vpop.f32.mrb[13].mxu0  ;;  %v1271_v6 = vadd.f32 1.0, %v2687_v57 }
 0x19b   : > { %v1087_v7 = vadd.f32 %v1023_v58, %v3367_v28  ;;  %v1025_v9 = vmul.f32 0.044715, %v961_v59  ;;  %v3397_v10 = vadd.f32 %v759_v4, %v3307_v38  ;;  %v761_v11 = vpop.f32.mrb[14].mxu0  ;;  %v3399_v12 = vadd.f32 1.0, %v2689_v0  ;;  %v2691_v18 = vpop.eup %2690 }
 0x19c   : > { %v1150_v13 = vmul.f32 0.7978846, %v1086_v1  ;;  %v1088_v14 = vadd.f32 %v1024_v2, %v3373_v35  ;;  %v898_v15 = vmul.f32 %v3393_v3, %v3393_v3  ;;  %v3405_v16 = vadd.f32 %v761_v11, %v3303_v37  ;;  %v763_v17 = vpop.f32.mrb[15].mxu0 }
 0x19d   : > { %v1151_v19 = vmul.f32 0.7978846, %v1087_v7  ;;  %v1089_v20 = vadd.f32 %v1025_v9, %v3379_v46  ;;  %v899_v21 = vmul.f32 %v3397_v10, %v3397_v10  ;;  %v3411_v22 = vadd.f32 %v763_v17, %v3307_v38 }
 0x19e   : > { %2700 = vtanh.f32 %v1150_v13  ;;  %v1152_v23 = vmul.f32 0.7978846, %v1088_v14  ;;  %v962_v25 = vmul.f32 %v898_v15, %v3393_v3  ;;  %v900_v26 = vmul.f32 %v3405_v16, %v3405_v16 }
 0x19f   : > { %2702 = vtanh.f32 %v1151_v19  ;;  %v1153_v27 = vmul.f32 0.7978846, %v1089_v20  ;;  %v963_v29 = vmul.f32 %v899_v21, %v3397_v10  ;;  %v901_v30 = vmul.f32 %v3411_v22, %v3411_v22 }
 0x1a0   : > { %v3419_v31 = vpop.eup %2692  ;;  %2704 = vtanh.f32 %v1152_v23  ;;  %v1026_v32 = vmul.f32 0.044715, %v962_v25  ;;  %v964_v39 = vmul.f32 %v900_v26, %v3405_v16  ;;  %v1273_v41 = vadd.f32 1.0, %v2691_v18 }
 0x1a1   : > { %v3422_v43 = vpop.eup %2694  ;;  %2706 = vtanh.f32 %v1153_v27  ;;  %v1027_v44 = vmul.f32 0.044715, %v963_v29  ;;  %v965_v47 = vmul.f32 %v901_v30, %v3411_v22  ;;  %v767_v49 = vpop.f32.mrb[16].mxu0  ;;  %v1335_v50 = vmul.f32 0.5, %v1271_v6 }
 0x1a2   : > { %v3425_v51 = vpop.eup %2696  ;;  %v1090_v52 = vadd.f32 %v1026_v32, %v3393_v3  ;;  %v1028_v53 = vmul.f32 0.044715, %v964_v39  ;;  %v3429_v54 = vadd.f32 %v767_v49, %v3303_v37  ;;  %v769_v55 = vpop.f32.mrb[17].mxu0  ;;  %v1337_v56 = vmul.f32 0.5, %v1273_v41 }
 0x1a3   : > { %v3431_v57 = vpop.eup %2698  ;;  %v1091_v58 = vadd.f32 %v1027_v44, %v3397_v10  ;;  %v1029_v59 = vmul.f32 0.044715, %v965_v47  ;;  %v3435_v61 = vadd.f32 %v769_v55, %v3307_v38  ;;  %v771_v0 = vpop.f32.mrb[18].mxu0  ;;  %v1399_v1 = vmul.f32 %v1335_v50, %v3313_v42 }
 0x1a4   : > { %v1154_v2 = vmul.f32 0.7978846, %v1090_v52  ;;  %v1092_v4 = vadd.f32 %v1028_v53, %v3405_v16  ;;  %v902_v6 = vmul.f32 %v3429_v54, %v3429_v54  ;;  %v3442_v7 = vadd.f32 %v771_v0, %v3303_v37  ;;  %v773_v9 = vpop.f32.mrb[19].mxu0 }
 0x1a5   : > { %v1155_v11 = vmul.f32 0.7978846, %v1091_v58  ;;  %v1093_v13 = vadd.f32 %v1029_v59, %v3411_v22  ;;  %v903_v14 = vmul.f32 %v3435_v61, %v3435_v61  ;;  %v3448_v15 = vadd.f32 %v773_v9, %v3307_v38 }
 0x1a6   : > { %2708 = vtanh.f32 %v1154_v2  ;;  %v1156_v42 = vmul.f32 0.7978846, %v1092_v4  ;;  %v966_v17 = vmul.f32 %v902_v6, %v3429_v54  ;;  %v904_v18 = vmul.f32 %v3442_v7, %v3442_v7 }
 0x1a7   : > { %2710 = vtanh.f32 %v1155_v11  ;;  %v1157_v19 = vmul.f32 0.7978846, %v1093_v13  ;;  %v967_v20 = vmul.f32 %v903_v14, %v3435_v61  ;;  %v905_v21 = vmul.f32 %v3448_v15, %v3448_v15 }
 0x1a8   : > { %v3456_v23 = vpop.eup %2700  ;;  %2712 = vtanh.f32 %v1156_v42  ;;  %v1030_v25 = vmul.f32 0.044715, %v966_v17  ;;  %v968_v26 = vmul.f32 %v904_v18, %v3442_v7  ;;  %v1401_v27 = vmul.f32 %v1337_v56, %v3323_v48 }
 0x1a9   : > { %v3460_v29 = vpop.eup %2702  ;;  %2714 = vtanh.f32 %v1157_v19  ;;  %v1031_v30 = vmul.f32 0.044715, %v967_v20  ;;  %v969_v32 = vmul.f32 %v905_v21, %v3448_v15  ;;  %v1334_v39 = vmul.f32 0.5, %v3389_v62  ;;  %v777_v41 = vpop.f32.mrb[20].mxu0 }
 0x1aa   : > { %v3464_v44 = vpop.eup %2704  ;;  %v1094_v47 = vadd.f32 %v1030_v25, %v3429_v54  ;;  %v1032_v49 = vmul.f32 0.044715, %v968_v26  ;;  %v1527_v50 = vpack.c.bf16 %v1401_v27, %v1399_v1  ;;  %v1336_v52 = vmul.f32 0.5, %v3399_v12  ;;  %v779_v53 = vpop.f32.mrb[21].mxu0 }
 0x1ab   : > { %v3468_v55 = vpop.eup %2706  ;;  %v1095_v48 = vadd.f32 %v1031_v30, %v3435_v61  ;;  %v1033_v56 = vmul.f32 0.044715, %v969_v32  ;;  %v1398_v58 = vmul.f32 %v1334_v39, %v3310_v40  ;;  %v3473_v59 = vadd.f32 %v777_v41, %v3303_v37  ;;  %v781_v62 = vpop.f32.mrb[22].mxu0 }
 0x1ac   : > { %v1158_v0 = vmul.f32 0.7978846, %v1094_v47  ;;  %v1096_v2 = vadd.f32 %v1032_v49, %v3442_v7  ;;  %1782 = vmatprep.mubr.bf16.mxu1 %v1527_v50  ;;  %v1400_v1 = vmul.f32 %v1336_v52, %v3318_v45  ;;  %v3478_v12 = vadd.f32 %v779_v53, %v3307_v38  ;;  %v783_v4 = vpop.f32.mrb[23].mxu0 }
 0x1ad   : > { %v1159_v6 = vmul.f32 0.7978846, %v1095_v48  ;;  %v1097_v9 = vadd.f32 %v1033_v56, %v3448_v15  ;;  %v906_v40 = vmul.f32 %v3473_v59, %v3473_v59  ;;  %v3484_v11 = vadd.f32 %v781_v62, %v3303_v37 }
 0x1ae   : > { %2716 = vtanh.f32 %v1158_v0  ;;  %v1160_v13 = vmul.f32 0.7978846, %v1096_v2  ;;  %v1526_v14 = vpack.c.bf16 %v1400_v1, %v1398_v58  ;;  %v907_v42 = vmul.f32 %v3478_v12, %v3478_v12 }
 0x1af   : > { %2718 = vtanh.f32 %v1159_v6  ;;  %v1161_v45 = vmul.f32 0.7978846, %v1097_v9  ;;  %v970_v17 = vmul.f32 %v906_v40, %v3473_v59  ;;  %v908_v18 = vmul.f32 %v3484_v11, %v3484_v11 }
 0x1b0   : > { %v3491_v19 = vpop.eup %2708  ;;  %2720 = vtanh.f32 %v1160_v13  ;;  %1783 = vmatmul.mubr.bf16.vlgmr.msra.gmra.mrb[0].mxu1 %v1526_v14  ;;  %v971_v20 = vmul.f32 %v907_v42, %v3478_v12  ;;  %v3495_v21 = vadd.f32 %v783_v4, %v3307_v38  ;;  %v1275_v25 = vadd.f32 1.0, %v3422_v43 }
 0x1b1   : > { %v3498_v26 = vpop.eup %2710  ;;  %2722 = vtanh.f32 %v1161_v45  ;;  %v1034_v27 = vmul.f32 0.044715, %v970_v17  ;;  %v972_v30 = vmul.f32 %v908_v18, %v3484_v11  ;;  %v1277_v32 = vadd.f32 1.0, %v3431_v57  ;;  %v787_v39 = vpop.f32.mrb[24].mxu0 }
 0x1b2   : > { %v3502_v41 = vpop.eup %2712  ;;  %v1035_v47 = vmul.f32 0.044715, %v971_v20  ;;  %v909_v49 = vmul.f32 %v3495_v21, %v3495_v21  ;;  %v1339_v50 = vmul.f32 0.5, %v1275_v25  ;;  %v1274_v52 = vadd.f32 1.0, %v3419_v31  ;;  %v789_v53 = vpop.f32.mrb[25].mxu0 }
 0x1b3   : > { %v3507_v43 = vpop.eup %2714  ;;  %v1098_v48 = vadd.f32 %v1034_v27, %v3473_v59  ;;  %v1036_v56 = vmul.f32 0.044715, %v972_v30  ;;  %v1341_v58 = vmul.f32 0.5, %v1277_v32  ;;  %v1276_v62 = vadd.f32 1.0, %v3425_v51  ;;  %v791_v57 = vpop.f32.mrb[26].mxu0 }
 0x1b4   : > { %v1099_v0 = vadd.f32 %v1035_v47, %v3478_v12  ;;  %v973_v2 = vmul.f32 %v909_v49, %v3495_v21  ;;  %v1403_v1 = vmul.f32 %v1339_v50, %v3338_v63  ;;  %v1338_v4 = vmul.f32 0.5, %v1274_v52  ;;  %v793_v6 = vpop.f32.mrb[27].mxu0 }
 0x1b5   : > { %v1162_v9 = vmul.f32 0.7978846, %v1098_v48  ;;  %v1100_v31 = vadd.f32 %v1036_v56, %v3484_v11  ;;  %v1405_v40 = vmul.f32 %v1341_v58, %v3350_v8  ;;  %v1340_v13 = vmul.f32 0.5, %v1276_v62 }
 0x1b6   : > { %v1163_v14 = vmul.f32 0.7978846, %v1099_v0  ;;  %v1037_v42 = vmul.f32 0.044715, %v973_v2  ;;  %v1402_v45 = vmul.f32 %v1338_v4, %v3335_v60  ;;  %v3518_v51 = vadd.f32 %v787_v39, %v3303_v37 }
 0x1b7   : > { %2724 = vtanh.f32 %v1162_v9  ;;  %v1164_v17 = vmul.f32 0.7978846, %v1100_v31  ;;  %v1529_v18 = vpack.c.bf16 %v1405_v40, %v1403_v1  ;;  %v1404_v63 = vmul.f32 %v1340_v13, %v3345_v5 }
 0x1b8   : > { %v3521_v20 = vpop.eup %2716  ;;  %2726 = vtanh.f32 %v1163_v14  ;;  %v1101_v25 = vadd.f32 %v1037_v42, %v3495_v21  ;;  %v910_v8 = vmul.f32 %v3518_v51, %v3518_v51  ;;  %v3527_v27 = vadd.f32 %v789_v53, %v3307_v38 }
 0x1b9   : > { %v3529_v60 = vpop.eup %2718  ;;  %2728 = vtanh.f32 %v1164_v17  ;;  %1792 = vmatprep.mubr.bf16.mxu1 %v1529_v18  ;;  %v1528_v30 = vpack.c.bf16 %v1404_v63, %v1402_v45  ;;  %v3532_v32 = vadd.f32 %v791_v57, %v3303_v37  ;;  %v3535_v5 = vadd.f32 %v793_v6, %v3307_v38  ;;  %v797_v39 = vpop.f32.mrb[28].mxu0 }
 0x1ba   : > { %v3537_v47 = vpop.eup %2720  ;;  %v1165_v49 = vmul.f32 0.7978846, %v1101_v25  ;;  %v974_v50 = vmul.f32 %v910_v8, %v3518_v51  ;;  %v911_v52 = vmul.f32 %v3527_v27, %v3527_v27  ;;  %v1279_v53 = vadd.f32 1.0, %v3460_v29  ;;  %v799_v48 = vpop.f32.mrb[29].mxu0 }
 0x1bb   : > { %v3543_v56 = vpop.eup %2722  ;;  %1793 = vmatmul.mubr.bf16.gmra.mrb[4].mxu1 %v1528_v30  ;;  %v912_v58 = vmul.f32 %v3532_v32, %v3532_v32  ;;  %v913_v62 = vmul.f32 %v3535_v5, %v3535_v5  ;;  %v1281_v57 = vadd.f32 1.0, %v3468_v55  ;;  %v1278_v0 = vadd.f32 1.0, %v3456_v23  ;;  %v801_v2 = vpop.f32.mrb[30].mxu0 }
 0x1bc   : > { %2730 = vtanh.f32 %v1165_v49  ;;  %v1038_v1 = vmul.f32 0.044715, %v974_v50  ;;  %v975_v4 = vmul.f32 %v911_v52, %v3527_v27  ;;  %v1343_v29 = vmul.f32 0.5, %v1279_v53  ;;  %v803_v6 = vpop.f32.mrb[31].mxu0 }
 0x1bd   : > { %v976_v9 = vmul.f32 %v912_v58, %v3532_v32  ;;  %v977_v31 = vmul.f32 %v913_v62, %v3535_v5  ;;  %v1345_v40 = vmul.f32 0.5, %v1281_v57  ;;  %v1280_v13 = vadd.f32 1.0, %v3464_v44 }
 0x1be   : > { %v1102_v14 = vadd.f32 %v1038_v1, %v3518_v51  ;;  %v1039_v42 = vmul.f32 0.044715, %v975_v4  ;;  %v1407_v55 = vmul.f32 %v1343_v29, %v3367_v28  ;;  %v1342_v23 = vmul.f32 0.5, %v1278_v0 }
 0x1bf   : > { %v1040_v45 = vmul.f32 0.044715, %v976_v9  ;;  %v1041_v17 = vmul.f32 0.044715, %v977_v31  ;;  %v1409_v18 = vmul.f32 %v1345_v40, %v3379_v46  ;;  %v1344_v63 = vmul.f32 0.5, %v1280_v13 }
 0x1c0   : > { %v1166_v25 = vmul.f32 0.7978846, %v1102_v14  ;;  %v1103_v8 = vadd.f32 %v1039_v42, %v3527_v27  ;;  %v1406_v30 = vmul.f32 %v1342_v23, %v3363_v24  ;;  %v3561_v49 = vadd.f32 %v797_v39, %v3303_v37 }
 0x1c1   : > { %v3563_v44 = vpop.eup %2724  ;;  %v1104_v50 = vadd.f32 %v1040_v45, %v3532_v32  ;;  %v1105_v28 = vadd.f32 %v1041_v17, %v3535_v5  ;;  %v1531_v52 = vpack.c.bf16 %v1409_v18, %v1407_v55  ;;  %v1408_v53 = vmul.f32 %v1344_v63, %v3373_v35  ;;  %v807_v58 = vpop.f32.mrb[32].mxu0 }
 0x1c2   : > { %v3568_v46 = vpop.eup %2726  ;;  %2732 = vtanh.f32 %v1166_v25  ;;  %v1167_v62 = vmul.f32 0.7978846, %v1103_v8  ;;  %v914_v24 = vmul.f32 %v3561_v49, %v3561_v49  ;;  %v3573_v39 = vadd.f32 %v799_v48, %v3307_v38  ;;  %v809_v57 = vpop.f32.mrb[33].mxu0 }
 0x1c3   : > { %v3575_v0 = vpop.eup %2728  ;;  %v1168_v1 = vmul.f32 0.7978846, %v1104_v50  ;;  %v1169_v4 = vmul.f32 0.7978846, %v1105_v28  ;;  %1802 = vmatprep.mubr.bf16.mxu1 %v1531_v52  ;;  %v1530_v29 = vpack.c.bf16 %v1408_v53, %v1406_v30  ;;  %v3578_v35 = vadd.f32 %v801_v2, %v3303_v37  ;;  %v811_v9 = vpop.f32.mrb[34].mxu0 }
 0x1c4   : > { %2734 = vtanh.f32 %v1167_v62  ;;  %v978_v31 = vmul.f32 %v914_v24, %v3561_v49  ;;  %v915_v40 = vmul.f32 %v3573_v39, %v3573_v39  ;;  %v3584_v48 = vadd.f32 %v803_v6, %v3307_v38  ;;  %v813_v13 = vpop.f32.mrb[35].mxu0 }
 0x1c5   : > { %2736 = vtanh.f32 %v1168_v1  ;;  %1803 = vmatmul.mubr.bf16.gmra.mrb[8].mxu1 %v1530_v29  ;;  %v916_v14 = vmul.f32 %v3578_v35, %v3578_v35  ;;  %v1283_v42 = vadd.f32 1.0, %v3498_v26  ;;  %v1285_v2 = vadd.f32 1.0, %v3507_v43 }
 0x1c6   : > { %v3590_v55 = vpop.eup %2730  ;;  %2738 = vtanh.f32 %v1169_v4  ;;  %v1042_v23 = vmul.f32 0.044715, %v978_v31  ;;  %v979_v45 = vmul.f32 %v915_v40, %v3573_v39  ;;  %v917_v6 = vmul.f32 %v3584_v48, %v3584_v48 }
 0x1c7   : > { %v980_v17 = vmul.f32 %v916_v14, %v3578_v35  ;;  %v1347_v18 = vmul.f32 0.5, %v1283_v42  ;;  %v1349_v63 = vmul.f32 0.5, %v1285_v2  ;;  %v1282_v25 = vadd.f32 1.0, %v3491_v19 }
 0x1c8   : > { %v1106_v8 = vadd.f32 %v1042_v23, %v3561_v49  ;;  %v1043_v26 = vmul.f32 0.044715, %v979_v45  ;;  %v981_v43 = vmul.f32 %v917_v6, %v3584_v48  ;;  %v1284_v30 = vadd.f32 1.0, %v3502_v41 }
 0x1c9   : > { %v1044_v50 = vmul.f32 0.044715, %v980_v17  ;;  %v1411_v28 = vmul.f32 %v1347_v18, %v3397_v10  ;;  %v1413_v52 = vmul.f32 %v1349_v63, %v3411_v22  ;;  %v1346_v53 = vmul.f32 0.5, %v1282_v25  ;;  %v3602_v62 = vpop.f32.mrb[36].mxu0 }
 0x1ca   : > { %v1170_v24 = vmul.f32 0.7978846, %v1106_v8  ;;  %v1107_v1 = vadd.f32 %v1043_v26, %v3573_v39  ;;  %v1045_v4 = vmul.f32 0.044715, %v981_v43  ;;  %v1348_v19 = vmul.f32 0.5, %v1284_v30  ;;  %v3605_v29 = vpop.f32.mrb[37].mxu0 }
 0x1cb   : > { %v1108_v31 = vadd.f32 %v1044_v50, %v3578_v35  ;;  %v1533_v40 = vpack.c.bf16 %v1413_v52, %v1411_v28  ;;  %v1410_v41 = vmul.f32 %v1346_v53, %v3393_v3  ;;  %v3610_v14 = vadd.f32 %v807_v58, %v3303_v37  ;;  %v3612_v10 = vpop.f32.mrb[38].mxu0 }
 0x1cc   : > { %v3614_v22 = vpop.eup %2732  ;;  %2740 = vtanh.f32 %v1170_v24  ;;  %v1171_v42 = vmul.f32 0.7978846, %v1107_v1  ;;  %v1109_v2 = vadd.f32 %v1045_v4, %v3584_v48  ;;  %v1412_v23 = vmul.f32 %v1348_v19, %v3405_v16  ;;  %v3618_v45 = vpop.f32.mrb[39].mxu0 }
 0x1cd   : > { %v1172_v6 = vmul.f32 0.7978846, %v1108_v31  ;;  %1812 = vmatprep.mubr.bf16.mxu1 %v1533_v40  ;;  %v918_v3 = vmul.f32 %v3610_v14, %v3610_v14  ;;  %v3623_v58 = vadd.f32 %v809_v57, %v3307_v38  ;;  %v3626_v17 = vadd.f32 %v811_v9, %v3303_v37 }
 0x1ce   : > { %v3628_v18 = vpop.eup %2734  ;;  %2742 = vtanh.f32 %v1171_v42  ;;  %v1173_v63 = vmul.f32 0.7978846, %v1109_v2  ;;  %v1532_v25 = vpack.c.bf16 %v1412_v23, %v1410_v41  ;;  %v3631_v16 = vadd.f32 %v813_v13, %v3307_v38 }
 0x1cf   : > { %v3633_v8 = vpop.eup %2736  ;;  %2744 = vtanh.f32 %v1172_v6  ;;  %v982_v26 = vmul.f32 %v918_v3, %v3610_v14  ;;  %v919_v57 = vmul.f32 %v3623_v58, %v3623_v58  ;;  %v920_v9 = vmul.f32 %v3626_v17, %v3626_v17 }
 0x1d0   : > { %v3640_v43 = vpop.eup %2738  ;;  %2746 = vtanh.f32 %v1173_v63  ;;  %1813 = vmatmul.mubr.bf16.gmra.mrb[12].mxu1 %v1532_v25  ;;  %v921_v30 = vmul.f32 %v3631_v16, %v3631_v16  ;;  %v1287_v13 = vadd.f32 1.0, %v3529_v60  ;;  %v1289_v50 = vadd.f32 1.0, %v3543_v56 }
 0x1d1   : > { %v1046_v28 = vmul.f32 0.044715, %v982_v26  ;;  %v983_v52 = vmul.f32 %v919_v57, %v3623_v58  ;;  %v984_v53 = vmul.f32 %v920_v9, %v3626_v17  ;;  %v1286_v24 = vadd.f32 1.0, %v3521_v20  ;;  %v3649_v1 = vpop.f32.mrb[40].mxu0 }
 0x1d2   : > { %v985_v4 = vmul.f32 %v921_v30, %v3631_v16  ;;  %v1351_v19 = vmul.f32 0.5, %v1287_v13  ;;  %v1353_v31 = vmul.f32 0.5, %v1289_v50  ;;  %v1288_v40 = vadd.f32 1.0, %v3537_v47  ;;  %v3653_v41 = vpop.f32.mrb[41].mxu0 }
 0x1d3   : > { %v1110_v60 = vadd.f32 %v1046_v28, %v3610_v14  ;;  %v1047_v56 = vmul.f32 0.044715, %v983_v52  ;;  %v1048_v42 = vmul.f32 0.044715, %v984_v53  ;;  %v1350_v2 = vmul.f32 0.5, %v1286_v24  ;;  %v3656_v23 = vpop.f32.mrb[42].mxu0 }
 0x1d4   : > { %v1049_v6 = vmul.f32 0.044715, %v985_v4  ;;  %v1415_v20 = vmul.f32 %v1351_v19, %v3435_v61  ;;  %v1417_v3 = vmul.f32 %v1353_v31, %v3448_v15  ;;  %v1352_v63 = vmul.f32 0.5, %v1288_v40  ;;  %v3660_v25 = vpop.f32.mrb[43].mxu0 }
 0x1d5   : > { %v1174_v26 = vmul.f32 0.7978846, %v1110_v60  ;;  %v1111_v47 = vadd.f32 %v1047_v56, %v3623_v58  ;;  %v1112_v57 = vadd.f32 %v1048_v42, %v3626_v17  ;;  %v1414_v9 = vmul.f32 %v1350_v2, %v3429_v54 }
 0x1d6   : > { %v3665_v30 = vpop.eup %2740  ;;  %v1113_v13 = vadd.f32 %v1049_v6, %v3631_v16  ;;  %v1535_v50 = vpack.c.bf16 %v1417_v3, %v1415_v20  ;;  %v1416_v28 = vmul.f32 %v1352_v63, %v3442_v7  ;;  %v3671_v61 = vadd.f32 %v3602_v62, %v3303_v37 }
 0x1d7   : > { %2748 = vtanh.f32 %v1174_v26  ;;  %v1175_v15 = vmul.f32 0.7978846, %v1111_v47  ;;  %v1176_v52 = vmul.f32 0.7978846, %v1112_v57  ;;  %v3675_v53 = vadd.f32 %v3605_v29, %v3307_v38 }
 0x1d8   : > { %v3677_v24 = vpop.eup %2742  ;;  %v1177_v54 = vmul.f32 0.7978846, %v1113_v13  ;;  %1822 = vmatprep.mubr.bf16.mxu1 %v1535_v50  ;;  %v1534_v4 = vpack.c.bf16 %v1416_v28, %v1414_v9  ;;  %v922_v19 = vmul.f32 %v3671_v61, %v3671_v61  ;;  %v3683_v7 = vadd.f32 %v3612_v10, %v3303_v37 }
 0x1d9   : > { %v3685_v62 = vpop.eup %2744  ;;  %2750 = vtanh.f32 %v1175_v15  ;;  %v923_v31 = vmul.f32 %v3675_v53, %v3675_v53  ;;  %v3691_v29 = vadd.f32 %v3618_v45, %v3307_v38  ;;  %v1291_v40 = vadd.f32 1.0, %v3568_v46  ;;  %v3694_v60 = vpop.f32.mrb[44].mxu0 }
 0x1da   : > { %v3696_v56 = vpop.eup %2746  ;;  %2752 = vtanh.f32 %v1176_v52  ;;  %1823 = vmatmul.mubr.bf16.gmra.mrb[16].mxu1 %v1534_v4  ;;  %v986_v10 = vmul.f32 %v922_v19, %v3671_v61  ;;  %v924_v42 = vmul.f32 %v3683_v7, %v3683_v7  ;;  %v1293_v2 = vadd.f32 1.0, %v3590_v55  ;;  %v3702_v6 = vpop.f32.mrb[45].mxu0 }
 0x1db   : > { %2754 = vtanh.f32 %v1177_v54  ;;  %v987_v45 = vmul.f32 %v923_v31, %v3675_v53  ;;  %v925_v46 = vmul.f32 %v3691_v29, %v3691_v29  ;;  %v1355_v20 = vmul.f32 0.5, %v1291_v40  ;;  %v3707_v3 = vpop.f32.mrb[46].mxu0 }
 0x1dc   : > { %v1050_v63 = vmul.f32 0.044715, %v986_v10  ;;  %v988_v26 = vmul.f32 %v924_v42, %v3683_v7  ;;  %v1357_v47 = vmul.f32 0.5, %v1293_v2  ;;  %v1290_v57 = vadd.f32 1.0, %v3563_v44  ;;  %v3711_v9 = vpop.f32.mrb[47].mxu0 }
 0x1dd   : > { %v1051_v55 = vmul.f32 0.044715, %v987_v45  ;;  %v989_v13 = vmul.f32 %v925_v46, %v3691_v29  ;;  %v1419_v50 = vmul.f32 %v1355_v20, %v3478_v12  ;;  %v1292_v28 = vadd.f32 1.0, %v3575_v0 }
 0x1de   : > { %v1114_v15 = vadd.f32 %v1050_v63, %v3671_v61  ;;  %v1052_v52 = vmul.f32 0.044715, %v988_v26  ;;  %v1421_v54 = vmul.f32 %v1357_v47, %v3495_v21  ;;  %v1354_v4 = vmul.f32 0.5, %v1290_v57 }
 0x1df   : > { %v1115_v19 = vadd.f32 %v1051_v55, %v3675_v53  ;;  %v1053_v31 = vmul.f32 0.044715, %v989_v13  ;;  %v1356_v40 = vmul.f32 0.5, %v1292_v28  ;;  %v3721_v44 = vadd.f32 %v3649_v1, %v3303_v37 }
 0x1e0   : > { %v1178_v10 = vmul.f32 0.7978846, %v1114_v15  ;;  %v1116_v42 = vadd.f32 %v1052_v52, %v3683_v7  ;;  %v1537_v12 = vpack.c.bf16 %v1421_v54, %v1419_v50  ;;  %v1418_v0 = vmul.f32 %v1354_v4, %v3473_v59 }
 0x1e1   : > { %v3725_v2 = vpop.eup %2748  ;;  %v1179_v45 = vmul.f32 0.7978846, %v1115_v19  ;;  %v1117_v21 = vadd.f32 %v1053_v31, %v3691_v29  ;;  %v1420_v46 = vmul.f32 %v1356_v40, %v3484_v11  ;;  %v926_v20 = vmul.f32 %v3721_v44, %v3721_v44  ;;  %v3731_v63 = vpop.f32.mrb[48].mxu0 }
 0x1e2   : > { %2756 = vtanh.f32 %v1178_v10  ;;  %v1180_v1 = vmul.f32 0.7978846, %v1116_v42  ;;  %1832 = vmatprep.mubr.bf16.mxu1 %v1537_v12  ;;  %v3735_v26 = vadd.f32 %v3653_v41, %v3307_v38  ;;  %v3739_v59 = vadd.f32 %v3656_v23, %v3303_v37  ;;  %v3741_v47 = vpop.f32.mrb[49].mxu0 }
 0x1e3   : > { %v3743_v57 = vpop.eup %2750  ;;  %2758 = vtanh.f32 %v1179_v45  ;;  %v1181_v11 = vmul.f32 0.7978846, %v1117_v21  ;;  %v1536_v55 = vpack.c.bf16 %v1420_v46, %v1418_v0  ;;  %v990_v13 = vmul.f32 %v926_v20, %v3721_v44  ;;  %v3746_v50 = vpop.f32.mrb[50].mxu0 }
 0x1e4   : > { %v3748_v28 = vpop.eup %2752  ;;  %2760 = vtanh.f32 %v1180_v1  ;;  %v927_v41 = vmul.f32 %v3735_v26, %v3735_v26  ;;  %v928_v23 = vmul.f32 %v3739_v59, %v3739_v59  ;;  %v3756_v15 = vadd.f32 %v3660_v25, %v3307_v38  ;;  %v3758_v52 = vpop.f32.mrb[51].mxu0 }
 0x1e5   : > { %v3760_v54 = vpop.eup %2754  ;;  %2762 = vtanh.f32 %v1181_v11  ;;  %1833 = vmatmul.mubr.bf16.gmra.mrb[20].mxu1 %v1536_v55  ;;  %v1054_v4 = vmul.f32 0.044715, %v990_v13  ;;  %v1295_v19 = vadd.f32 1.0, %v3628_v18  ;;  %v1297_v31 = vadd.f32 1.0, %v3640_v43 }
 0x1e6   : > { %v991_v40 = vmul.f32 %v927_v41, %v3735_v26  ;;  %v992_v10 = vmul.f32 %v928_v23, %v3739_v59  ;;  %v929_v42 = vmul.f32 %v3756_v15, %v3756_v15  ;;  %v1294_v25 = vadd.f32 1.0, %v3614_v22 }
 0x1e7   : > { %v1118_v12 = vadd.f32 %v1054_v4, %v3721_v44  ;;  %v1359_v0 = vmul.f32 0.5, %v1295_v19  ;;  %v1361_v45 = vmul.f32 0.5, %v1297_v31  ;;  %v1296_v21 = vadd.f32 1.0, %v3633_v8 }
 0x1e8   : > { %v1055_v46 = vmul.f32 0.044715, %v991_v40  ;;  %v1056_v20 = vmul.f32 0.044715, %v992_v10  ;;  %v993_v18 = vmul.f32 %v929_v42, %v3756_v15  ;;  %v1358_v43 = vmul.f32 0.5, %v1294_v25 }
 0x1e9   : > { %v1182_v1 = vmul.f32 0.7978846, %v1118_v12  ;;  %v1423_v11 = vmul.f32 %v1359_v0, %v3527_v27  ;;  %v1425_v55 = vmul.f32 %v1361_v45, %v3535_v5  ;;  %v1360_v13 = vmul.f32 0.5, %v1296_v21  ;;  %v3774_v41 = vpop.f32.mrb[52].mxu0 }
 0x1ea   : > { %v1119_v22 = vadd.f32 %v1055_v46, %v3735_v26  ;;  %v1120_v23 = vadd.f32 %v1056_v20, %v3739_v59  ;;  %v1057_v4 = vmul.f32 0.044715, %v993_v18  ;;  %v1422_v8 = vmul.f32 %v1358_v43, %v3518_v51  ;;  %v3779_v19 = vpop.f32.mrb[53].mxu0 }
 0x1eb   : > { %2764 = vtanh.f32 %v1182_v1  ;;  %v1539_v31 = vpack.c.bf16 %v1425_v55, %v1423_v11  ;;  %v1424_v40 = vmul.f32 %v1360_v13, %v3532_v32  ;;  %v3784_v27 = vadd.f32 %v3694_v60, %v3303_v37  ;;  %v3786_v5 = vpop.f32.mrb[54].mxu0 }
 0x1ec   : > { %v3788_v10 = vpop.eup %2756  ;;  %v1183_v42 = vmul.f32 0.7978846, %v1119_v22  ;;  %v1184_v25 = vmul.f32 0.7978846, %v1120_v23  ;;  %v1121_v12 = vadd.f32 %v1057_v4, %v3756_v15  ;;  %v3793_v51 = vadd.f32 %v3702_v6, %v3307_v38  ;;  %v3795_v0 = vpop.f32.mrb[55].mxu0 }
 0x1ed   : > { %v3797_v45 = vpop.eup %2758  ;;  %1842 = vmatprep.mubr.bf16.mxu1 %v1539_v31  ;;  %v1538_v32 = vpack.c.bf16 %v1424_v40, %v1422_v8  ;;  %v930_v60 = vmul.f32 %v3784_v27, %v3784_v27  ;;  %v3803_v21 = vadd.f32 %v3707_v3, %v3303_v37  ;;  %v3807_v46 = vadd.f32 %v3711_v9, %v3307_v38 }
 0x1ee   : > { %v3809_v20 = vpop.eup %2760  ;;  %2766 = vtanh.f32 %v1183_v42  ;;  %v1185_v6 = vmul.f32 0.7978846, %v1121_v12  ;;  %v931_v18 = vmul.f32 %v3793_v51, %v3793_v51  ;;  %v1299_v43 = vadd.f32 1.0, %v3677_v24 }
 0x1ef   : > { %v3814_v1 = vpop.eup %2762  ;;  %2768 = vtanh.f32 %v1184_v25  ;;  %1843 = vmatmul.mubr.bf16.gmra.mrb[24].mxu1 %v1538_v32  ;;  %v994_v3 = vmul.f32 %v930_v60, %v3784_v27  ;;  %v932_v11 = vmul.f32 %v3803_v21, %v3803_v21  ;;  %v933_v9 = vmul.f32 %v3807_v46, %v3807_v46 }
 0x1f0   : > { %2770 = vtanh.f32 %v1185_v6  ;;  %v995_v55 = vmul.f32 %v931_v18, %v3793_v51  ;;  %v1301_v13 = vadd.f32 1.0, %v3696_v56  ;;  %v1363_v22 = vmul.f32 0.5, %v1299_v43 }
 0x1f1   : > { %v1058_v23 = vmul.f32 0.044715, %v994_v3  ;;  %v996_v24 = vmul.f32 %v932_v11, %v3803_v21  ;;  %v997_v4 = vmul.f32 %v933_v9, %v3807_v46  ;;  %v1298_v8 = vadd.f32 1.0, %v3665_v30  ;;  %v3826_v31 = vpop.f32.mrb[56].mxu0 }
 0x1f2   : > { %v1059_v40 = vmul.f32 0.044715, %v995_v55  ;;  %v1365_v42 = vmul.f32 0.5, %v1301_v13  ;;  %v1427_v25 = vmul.f32 %v1363_v22, %v3573_v39  ;;  %v1300_v12 = vadd.f32 1.0, %v3685_v62  ;;  %v3830_v32 = vpop.f32.mrb[57].mxu0 }
 0x1f3   : > { %v1122_v56 = vadd.f32 %v1058_v23, %v3784_v27  ;;  %v1060_v60 = vmul.f32 0.044715, %v996_v24  ;;  %v1061_v6 = vmul.f32 0.044715, %v997_v4  ;;  %v1362_v18 = vmul.f32 0.5, %v1298_v8  ;;  %v3833_v43 = vpop.f32.mrb[58].mxu0 }
 0x1f4   : > { %v1123_v3 = vadd.f32 %v1059_v40, %v3793_v51  ;;  %v1429_v30 = vmul.f32 %v1365_v42, %v3584_v48  ;;  %v1364_v11 = vmul.f32 0.5, %v1300_v12  ;;  %v3839_v9 = vadd.f32 %v3731_v63, %v3303_v37  ;;  %v3841_v39 = vpop.f32.mrb[59].mxu0 }
 0x1f5   : > { %v3843_v62 = vpop.eup %2764  ;;  %v1186_v55 = vmul.f32 0.7978846, %v1122_v56  ;;  %v1124_v13 = vadd.f32 %v1060_v60, %v3803_v21  ;;  %v1125_v22 = vadd.f32 %v1061_v6, %v3807_v46  ;;  %v1426_v23 = vmul.f32 %v1362_v18, %v3561_v49 }
 0x1f6   : > { %v1187_v24 = vmul.f32 0.7978846, %v1123_v3  ;;  %v1541_v4 = vpack.c.bf16 %v1429_v30, %v1427_v25  ;;  %v1428_v48 = vmul.f32 %v1364_v11, %v3578_v35  ;;  %v934_v8 = vmul.f32 %v3839_v9, %v3839_v9 }
 0x1f7   : > { %2772 = vtanh.f32 %v1186_v55  ;;  %v1188_v63 = vmul.f32 0.7978846, %v1124_v13  ;;  %v1189_v40 = vmul.f32 0.7978846, %v1125_v22  ;;  %v3853_v42 = vadd.f32 %v3741_v47, %v3307_v38 }
 0x1f8   : > { %v3855_v12 = vpop.eup %2766  ;;  %2774 = vtanh.f32 %v1187_v24  ;;  %1852 = vmatprep.mubr.bf16.mxu1 %v1541_v4  ;;  %v1540_v56 = vpack.c.bf16 %v1428_v48, %v1426_v23  ;;  %v998_v49 = vmul.f32 %v934_v8, %v3839_v9  ;;  %v3860_v35 = vadd.f32 %v3746_v50, %v3303_v37 }
 0x1f9   : > { %v3862_v25 = vpop.eup %2768  ;;  %2776 = vtanh.f32 %v1188_v63  ;;  %v935_v60 = vmul.f32 %v3853_v42, %v3853_v42  ;;  %v3868_v47 = vadd.f32 %v3758_v52, %v3307_v38  ;;  %v1303_v6 = vadd.f32 1.0, %v3743_v57  ;;  %v3871_v18 = vpop.f32.mrb[60].mxu0 }
 0x1fa   : > { %v3873_v3 = vpop.eup %2770  ;;  %2778 = vtanh.f32 %v1189_v40  ;;  %1853 = vmatmul.mubr.bf16.gmra.mrb[28].mxu1 %v1540_v56  ;;  %v1062_v50 = vmul.f32 0.044715, %v998_v49  ;;  %v936_v30 = vmul.f32 %v3860_v35, %v3860_v35  ;;  %v1305_v11 = vadd.f32 1.0, %v3760_v54  ;;  %v3878_v55 = vpop.f32.mrb[61].mxu0 }
 0x1fb   : > { %v999_v13 = vmul.f32 %v935_v60, %v3853_v42  ;;  %v937_v52 = vmul.f32 %v3868_v47, %v3868_v47  ;;  %v1367_v57 = vmul.f32 0.5, %v1303_v6  ;;  %v1302_v22 = vadd.f32 1.0, %v3725_v2  ;;  %v3884_v23 = vpop.f32.mrb[62].mxu0 }
 0x1fc   : > { %v1126_v24 = vadd.f32 %v1062_v50, %v3839_v9  ;;  %v1000_v4 = vmul.f32 %v936_v30, %v3860_v35  ;;  %v1369_v48 = vmul.f32 0.5, %v1305_v11  ;;  %v1304_v8 = vadd.f32 1.0, %v3748_v28  ;;  %v3889_v54 = vpop.f32.mrb[63].mxu0 }
 0x1fd   : > { %v1063_v63 = vmul.f32 0.044715, %v999_v13  ;;  %v1001_v40 = vmul.f32 %v937_v52, %v3868_v47  ;;  %v1431_v56 = vmul.f32 %v1367_v57, %v3623_v58  ;;  %v1366_v49 = vmul.f32 0.5, %v1302_v22 }
 0x1fe   : > { %v1190_v60 = vmul.f32 0.7978846, %v1126_v24  ;;  %v1064_v6 = vmul.f32 0.044715, %v1000_v4  ;;  %v1433_v2 = vmul.f32 %v1369_v48, %v3631_v16  ;;  %v1368_v36 = vmul.f32 0.5, %v1304_v8 }
 0x1ff   : > { %v1127_v50 = vadd.f32 %v1063_v63, %v3853_v42  ;;  %v1065_v34 = vmul.f32 0.044715, %v1001_v40  ;;  %v1430_v30 = vmul.f32 %v1366_v49, %v3610_v14  ;;  %v3898_v28 = vadd.f32 %v3774_v41, %v3303_v37 }
 0x200   : > { %2780 = vtanh.f32 %v1190_v60  ;;  %v1128_v11 = vadd.f32 %v1064_v6, %v3860_v35  ;;  %v1543_v13 = vpack.c.bf16 %v1433_v2, %v1431_v56  ;;  %v1432_v58 = vmul.f32 %v1368_v36, %v3626_v17 }
 0x201   : > { %v3902_v52 = vpop.eup %2772  ;;  %v1191_v57 = vmul.f32 0.7978846, %v1127_v50  ;;  %v1129_v16 = vadd.f32 %v1065_v34, %v3868_v47  ;;  %v938_v22 = vmul.f32 %v3898_v28, %v3898_v28  ;;  %v3909_v14 = vadd.f32 %v3779_v19, %v3307_v38 }
 0x202   : > { %v3911_v41 = vpop.eup %2774  ;;  %v1192_v24 = vmul.f32 0.7978846, %v1128_v11  ;;  %1862 = vmatprep.mubr.bf16.mxu1 %v1543_v13  ;;  %v1542_v4 = vpack.c.bf16 %v1432_v58, %v1430_v30  ;;  %v3915_v36 = vadd.f32 %v3786_v5, %v3303_v37  ;;  %v3919_v17 = vadd.f32 %v3795_v0, %v3307_v38 }
 0x203   : > { %v3921_v34 = vpop.eup %2776  ;;  %2782 = vtanh.f32 %v1191_v57  ;;  %v1193_v48 = vmul.f32 0.7978846, %v1129_v16  ;;  %v1002_v19 = vmul.f32 %v938_v22, %v3898_v28  ;;  %v939_v8 = vmul.f32 %v3909_v14, %v3909_v14 }
 0x204   : > { %v3926_v63 = vpop.eup %2778  ;;  %2784 = vtanh.f32 %v1192_v24  ;;  %1863 = vmatmul.mubr.bf16.gmra.mrb[32].mxu1 %v1542_v4  ;;  %v940_v5 = vmul.f32 %v3915_v36, %v3915_v36  ;;  %v941_v0 = vmul.f32 %v3919_v17, %v3919_v17  ;;  %v1307_v40 = vadd.f32 1.0, %v3797_v45 }
 0x205   : > { %2786 = vtanh.f32 %v1193_v48  ;;  %v1066_v56 = vmul.f32 0.044715, %v1002_v19  ;;  %v1003_v49 = vmul.f32 %v939_v8, %v3909_v14  ;;  %v1309_v60 = vadd.f32 1.0, %v3814_v1 }
 0x206   : > { %v1004_v6 = vmul.f32 %v940_v5, %v3915_v36  ;;  %v1005_v2 = vmul.f32 %v941_v0, %v3919_v17  ;;  %v1371_v50 = vmul.f32 0.5, %v1307_v40  ;;  %v1306_v30 = vadd.f32 1.0, %v3788_v10 }
 0x207   : > { %v1130_v11 = vadd.f32 %v1066_v56, %v3898_v28  ;;  %v1067_v13 = vmul.f32 0.044715, %v1003_v49  ;;  %v1373_v58 = vmul.f32 0.5, %v1309_v60  ;;  %v1308_v57 = vadd.f32 1.0, %v3809_v20 }
 0x208   : > { %v1068_v45 = vmul.f32 0.044715, %v1004_v6  ;;  %v1069_v16 = vmul.f32 0.044715, %v1005_v2  ;;  %v1435_v22 = vmul.f32 %v1371_v50, %v3675_v53  ;;  %v1370_v24 = vmul.f32 0.5, %v1306_v30 }
 0x209   : > { %v1194_v4 = vmul.f32 0.7978846, %v1130_v11  ;;  %v1131_v1 = vadd.f32 %v1067_v13, %v3909_v14  ;;  %v1437_v48 = vmul.f32 %v1373_v58, %v3691_v29  ;;  %v1372_v19 = vmul.f32 0.5, %v1308_v57 }
 0x20a   : > { %v3943_v8 = vpop.eup %2780  ;;  %v1132_v10 = vadd.f32 %v1068_v45, %v3915_v36  ;;  %v1133_v5 = vadd.f32 %v1069_v16, %v3919_v17  ;;  %v1434_v0 = vmul.f32 %v1370_v24, %v3671_v61  ;;  %v3950_v20 = vadd.f32 %v3826_v31, %v3303_v37 }
 0x20b   : > { %2788 = vtanh.f32 %v1194_v4  ;;  %v1195_v53 = vmul.f32 0.7978846, %v1131_v1  ;;  %v1545_v40 = vpack.c.bf16 %v1437_v48, %v1435_v22  ;;  %v1436_v56 = vmul.f32 %v1372_v19, %v3683_v7 }
 0x20c   : > { %v1196_v49 = vmul.f32 0.7978846, %v1132_v10  ;;  %v1197_v29 = vmul.f32 0.7978846, %v1133_v5  ;;  %v942_v60 = vmul.f32 %v3950_v20, %v3950_v20  ;;  %v3957_v6 = vadd.f32 %v3830_v32, %v3307_v38 }
 0x20d   : > { %v3959_v2 = vpop.eup %2782  ;;  %2790 = vtanh.f32 %v1195_v53  ;;  %1872 = vmatprep.mubr.bf16.mxu1 %v1545_v40  ;;  %v1544_v61 = vpack.c.bf16 %v1436_v56, %v1434_v0  ;;  %v3963_v31 = vadd.f32 %v3833_v43, %v3303_v37  ;;  %v3967_v7 = vadd.f32 %v3841_v39, %v3307_v38 }
 0x20e   : > { %v3969_v50 = vpop.eup %2784  ;;  %2792 = vtanh.f32 %v1196_v49  ;;  %v1006_v30 = vmul.f32 %v942_v60, %v3950_v20  ;;  %v943_v32 = vmul.f32 %v3957_v6, %v3957_v6  ;;  %v1311_v11 = vadd.f32 1.0, %v3855_v12 }
 0x20f   : > { %v3975_v13 = vpop.eup %2786  ;;  %2794 = vtanh.f32 %v1197_v29  ;;  %1873 = vmatmul.mubr.bf16.gmra.mrb[36].mxu1 %v1544_v61  ;;  %v944_v43 = vmul.f32 %v3963_v31, %v3963_v31  ;;  %v945_v39 = vmul.f32 %v3967_v7, %v3967_v7  ;;  %v1313_v58 = vadd.f32 1.0, %v3873_v3 }
 0x210   : > { %v1070_v57 = vmul.f32 0.044715, %v1006_v30  ;;  %v1007_v45 = vmul.f32 %v943_v32, %v3957_v6  ;;  %v1375_v16 = vmul.f32 0.5, %v1311_v11  ;;  %v1310_v22 = vadd.f32 1.0, %v3843_v62 }
 0x211   : > { %v1008_v12 = vmul.f32 %v944_v43, %v3963_v31  ;;  %v1009_v24 = vmul.f32 %v945_v39, %v3967_v7  ;;  %v1377_v4 = vmul.f32 0.5, %v1313_v58  ;;  %v1312_v1 = vadd.f32 1.0, %v3862_v25 }
 0x212   : > { %v1134_v48 = vadd.f32 %v1070_v57, %v3950_v20  ;;  %v1071_v19 = vmul.f32 0.044715, %v1007_v45  ;;  %v1439_v10 = vmul.f32 %v1375_v16, %v3735_v26  ;;  %v1374_v5 = vmul.f32 0.5, %v1310_v22 }
 0x213   : > { %v1072_v3 = vmul.f32 0.044715, %v1008_v12  ;;  %v1073_v0 = vmul.f32 0.044715, %v1009_v24  ;;  %v1441_v53 = vmul.f32 %v1377_v4, %v3756_v15  ;;  %v1376_v40 = vmul.f32 0.5, %v1312_v1 }
 0x214   : > { %v1198_v56 = vmul.f32 0.7978846, %v1134_v48  ;;  %v1135_v62 = vadd.f32 %v1071_v19, %v3957_v6  ;;  %v1438_v49 = vmul.f32 %v1374_v5, %v3721_v44  ;;  %v3994_v29 = vadd.f32 %v3871_v18, %v3303_v37 }
 0x215   : > { %v3996_v25 = vpop.eup %2788  ;;  %v1136_v60 = vadd.f32 %v1072_v3, %v3963_v31  ;;  %v1137_v26 = vadd.f32 %v1073_v0, %v3967_v7  ;;  %v1547_v61 = vpack.c.bf16 %v1441_v53, %v1439_v10  ;;  %v1440_v30 = vmul.f32 %v1376_v40, %v3739_v59 }
 0x216   : > { %2796 = vtanh.f32 %v1198_v56  ;;  %v1199_v15 = vmul.f32 0.7978846, %v1135_v62  ;;  %v946_v32 = vmul.f32 %v3994_v29, %v3994_v29  ;;  %v4005_v44 = vadd.f32 %v3878_v55, %v3307_v38 }
 0x217   : > { %v4007_v18 = vpop.eup %2790  ;;  %v1200_v11 = vmul.f32 0.7978846, %v1136_v60  ;;  %v1201_v43 = vmul.f32 0.7978846, %v1137_v26  ;;  %1882 = vmatprep.mubr.bf16.mxu1 %v1547_v61  ;;  %v1546_v39 = vpack.c.bf16 %v1440_v30, %v1438_v49  ;;  %v4011_v58 = vadd.f32 %v3884_v23, %v3303_v37 }
 0x218   : > { %v4013_v59 = vpop.eup %2792  ;;  %2798 = vtanh.f32 %v1199_v15  ;;  %v1010_v57 = vmul.f32 %v946_v32, %v3994_v29  ;;  %v947_v45 = vmul.f32 %v4005_v44, %v4005_v44  ;;  %v4020_v55 = vadd.f32 %v3889_v54, %v3307_v38 }
 0x219   : > { %v2795_v16 = vpop.eup %2794  ;;  %2800 = vtanh.f32 %v1200_v11  ;;  %1883 = vmatmul.mubr.bf16.gmra.mrb[40].mxu1 %v1546_v39  ;;  %v948_v22 = vmul.f32 %v4011_v58, %v4011_v58  ;;  %v1315_v37 = vadd.f32 1.0, %v3911_v41  ;;  %v1317_v23 = vadd.f32 1.0, %v3926_v63 }
 0x21a   : > { %2802 = vtanh.f32 %v1201_v43  ;;  %v1074_v12 = vmul.f32 0.044715, %v1010_v57  ;;  %v1011_v24 = vmul.f32 %v947_v45, %v4005_v44  ;;  %v949_v4 = vmul.f32 %v4020_v55, %v4020_v55 }
 0x21b   : > { %v1012_v38 = vmul.f32 %v948_v22, %v4011_v58  ;;  %v1379_v54 = vmul.f32 0.5, %v1315_v37  ;;  %v1381_v1 = vmul.f32 0.5, %v1317_v23  ;;  %v1314_v48 = vadd.f32 1.0, %v3902_v52 }
 0x21c   : > { %v1138_v19 = vadd.f32 %v1074_v12, %v3994_v29  ;;  %v1075_v10 = vmul.f32 0.044715, %v1011_v24  ;;  %v1013_v41 = vmul.f32 %v949_v4, %v4020_v55  ;;  %v1316_v63 = vadd.f32 1.0, %v3921_v34 }
 0x21d   : > { %v1076_v5 = vmul.f32 0.044715, %v1012_v38  ;;  %v1443_v3 = vmul.f32 %v1379_v54, %v3793_v51  ;;  %v1445_v0 = vmul.f32 %v1381_v1, %v3807_v46  ;;  %v1378_v53 = vmul.f32 0.5, %v1314_v48 }
 0x21e   : > { %v1202_v40 = vmul.f32 0.7978846, %v1138_v19  ;;  %v1139_v56 = vadd.f32 %v1075_v10, %v4005_v44  ;;  %v1077_v62 = vmul.f32 0.044715, %v1013_v41  ;;  %v1380_v49 = vmul.f32 0.5, %v1316_v63 }
 0x21f   : > { %v1140_v52 = vadd.f32 %v1076_v5, %v4011_v58  ;;  %v1549_v60 = vpack.c.bf16 %v1445_v0, %v1443_v3  ;;  %v1442_v26 = vmul.f32 %v1378_v53, %v3784_v27  ;;  %v1319_v61 = vadd.f32 1.0, %v3959_v2 }
 0x220   : > { %v2797_v30 = vpop.eup %2796  ;;  %2804 = vtanh.f32 %v1202_v40  ;;  %v1203_v34 = vmul.f32 0.7978846, %v1139_v56  ;;  %v1141_v51 = vadd.f32 %v1077_v62, %v4020_v55  ;;  %v1444_v46 = vmul.f32 %v1380_v49, %v3803_v21 }
 0x221   : > { %v1204_v15 = vmul.f32 0.7978846, %v1140_v52  ;;  %1892 = vmatprep.mubr.bf16.mxu1 %v1549_v60  ;;  %v1321_v32 = vadd.f32 1.0, %v3975_v13  ;;  %v1383_v11 = vmul.f32 0.5, %v1319_v61  ;;  %v1318_v43 = vadd.f32 1.0, %v3943_v8 }
 0x222   : > { %v2799_v39 = vpop.eup %2798  ;;  %2806 = vtanh.f32 %v1203_v34  ;;  %v1205_v57 = vmul.f32 0.7978846, %v1141_v51  ;;  %v1548_v27 = vpack.c.bf16 %v1444_v46, %v1442_v26  ;;  %v1320_v2 = vadd.f32 1.0, %v3969_v50 }
 0x223   : > { %v2801_v45 = vpop.eup %2800  ;;  %2808 = vtanh.f32 %v1204_v15  ;;  %v1385_v22 = vmul.f32 0.5, %v1321_v32  ;;  %v1447_v37 = vmul.f32 %v1383_v11, %v3853_v42  ;;  %v1382_v23 = vmul.f32 0.5, %v1318_v43 }
 0x224   : > { %v2803_v21 = vpop.eup %2802  ;;  %2810 = vtanh.f32 %v1205_v57  ;;  %1893 = vmatmul.mubr.bf16.gmra.mrb[44].mxu1 %v1548_v27  ;;  %v1384_v12 = vmul.f32 0.5, %v1320_v2  ;;  %v1323_v13 = vadd.f32 1.0, %v4007_v18  ;;  %v1325_v24 = vadd.f32 1.0, %v2795_v16  ;;  %v2138_v27 = vld [vmem:[%s4267_s4] sm:$0x3] }
 0x225   : > { %v1449_v8 = vmul.f32 %v1385_v22, %v3868_v47  ;;  %v1446_v4 = vmul.f32 %v1382_v23, %v3839_v9  ;;  %v1322_v38 = vadd.f32 1.0, %v3996_v25  ;;  %v1324_v50 = vadd.f32 1.0, %v4013_v59 }
 0x226   : > { %v1448_v54 = vmul.f32 %v1384_v12, %v3860_v35  ;;  %v1387_v1 = vmul.f32 0.5, %v1323_v13  ;;  %v1389_v42 = vmul.f32 0.5, %v1325_v24  ;;  %v1327_v48 = vadd.f32 1.0, %v2799_v39 }
 0x227   : > { %v1551_v19 = vpack.c.bf16 %v1449_v8, %v1447_v37  ;;  %v1386_v10 = vmul.f32 0.5, %v1322_v38  ;;  %v1388_v41 = vmul.f32 0.5, %v1324_v50  ;;  %v1329_v63 = vadd.f32 1.0, %v2803_v21 }
 0x228   : > { %v1550_v5 = vpack.c.bf16 %v1448_v54, %v1446_v4  ;;  %v1451_v18 = vmul.f32 %v1387_v1, %v3909_v14  ;;  %v1453_v47 = vmul.f32 %v1389_v42, %v3919_v17  ;;  %v1391_v16 = vmul.f32 0.5, %v1327_v48 }
 0x229   : > { %1902 = vmatprep.mubr.bf16.mxu1 %v1551_v19  ;;  %v1450_v9 = vmul.f32 %v1386_v10, %v3898_v28  ;;  %v1452_v25 = vmul.f32 %v1388_v41, %v3915_v36  ;;  %v1393_v59 = vmul.f32 0.5, %v1329_v63  ;;  %v1326_v35 = vadd.f32 1.0, %v2797_v30 }
 0x22a   : > { %v2805_v3 = vpop.eup %2804  ;;  %v1553_v0 = vpack.c.bf16 %v1453_v47, %v1451_v18  ;;  %v1455_v53 = vmul.f32 %v1391_v16, %v3957_v6  ;;  %v1328_v40 = vadd.f32 1.0, %v2801_v45 }
 0x22b   : > { %v1552_v56 = vpack.c.bf16 %v1452_v25, %v1450_v9  ;;  %v1457_v62 = vmul.f32 %v1393_v59, %v3967_v7  ;;  %v1390_v49 = vmul.f32 0.5, %v1326_v35  ;;  %v1330_v14 = vadd.f32 1.0, %v2805_v3 }
 0x22c   : > { %v2807_v52 = vpop.eup %2806  ;;  %1903 = vmatmul.mubr.bf16.gmra.mrb[48].mxu1 %v1550_v5  ;;  %v1392_v17 = vmul.f32 0.5, %v1328_v40 }
 0x22d   : > { %v2809_v60 = vpop.eup %2808  ;;  %1912 = vmatprep.mubr.bf16.mxu1 %v1553_v0  ;;  %v1555_v28 = vpack.c.bf16 %v1457_v62, %v1455_v53  ;;  %v1331_v26 = vadd.f32 1.0, %v2807_v52  ;;  %v1454_v61 = vmul.f32 %v1390_v49, %v3950_v20  ;;  %v1394_v6 = vmul.f32 0.5, %v1330_v14 }
 0x22e   : > { %v2811_v36 = vpop.eup %2810  ;;  %v1456_v30 = vmul.f32 %v1392_v17, %v3963_v31  ;;  %v1332_v34 = vadd.f32 1.0, %v2809_v60 }
 0x22f   : > { %v1333_v51 = vadd.f32 1.0, %v2811_v36  ;;  %v1395_v46 = vmul.f32 0.5, %v1331_v26  ;;  %v1458_v11 = vmul.f32 %v1394_v6, %v3994_v29  ;;  %v4285_v29 = vsub.s32 0, %v3294_v33 }
 0x230   : > { %v1554_v15 = vpack.c.bf16 %v1456_v30, %v1454_v61  ;;  %v1396_v7 = vmul.f32 0.5, %v1332_v34 }
 0x231   : > { %v1397_v32 = vmul.f32 0.5, %v1333_v51  ;;  %v1459_v39 = vmul.f32 %v1395_v46, %v4005_v44  ;;  %v4069_v2 = vrot.slane %v2138_v27, %v4285_v29  ;;  %v4286_v44 = vsub.s32 1, %v3294_v33 }
 0x232   : > { %v1460_v43 = vmul.f32 %v1396_v7, %v4011_v58 }
 0x233   : > { %v1461_v57 = vmul.f32 %v1397_v32, %v4020_v55  ;;  %v4073_v58 = vrot.slane %v2138_v27, %v4286_v44 }
 0x234   : > { %1913 = vmatmul.mubr.bf16.gmra.mrb[52].mxu1 %v1552_v56  ;;  %v1556_v20 = vpack.c.bf16 %v1460_v43, %v1458_v11 }
 0x235   : > { %1922 = vmatprep.mubr.bf16.mxu1 %v1555_v28  ;;  %v1557_v31 = vpack.c.bf16 %v1461_v57, %v1459_v39 }
 0x23c   : > { %1923 = vmatmul.mubr.bf16.gmra.mrb[56].mxu1 %v1554_v15 }
 0x23d   : > { %1932 = vmatprep.mubr.bf16.mxu1 %v1557_v31 }
 0x244   : > { %1933 = vmatmul.mubr.bf16.gmra.mrb[60].mxu1 %v1556_v20 }
 0x283   : > { %v1784_v55 = vpop.f32.mrb[0].mxu1 }
 0x284   : > { %v2150_v45 = vadd.f32 %v4069_v2, %v1784_v55  ;;  %v1786_v22 = vpop.f32.mrb[1].mxu1 }
 0x285   : > { %v2151_v37 = vadd.f32 %v4073_v58, %v1786_v22  ;;  %v1788_v23 = vpop.f32.mrb[2].mxu1 }
 0x286   : > { %2214 = vst [vmem:[%s4079_s7] sm:$0xff] %v2150_v45  ;;  %v2152_v33 = vadd.f32 %v4069_v2, %v1788_v23  ;;  %v1790_v21 = vpop.f32.mrb[3].mxu1 }
 0x287   : > { %2215 = vst [vmem:[%s4079_s7 + $0x8] sm:$0xff] %v2151_v37  ;;  %v2153_v12 = vadd.f32 %v4073_v58, %v1790_v21 }
 0x288   : > { %2216 = vst [vmem:[%s4079_s7 + $0x10] sm:$0xff] %v2152_v33 }
 0x289   : > { %2217 = vst [vmem:[%s4079_s7 + $0x18] sm:$0xff] %v2153_v12 }
 0x28e   : > { %v1794_v13 = vpop.f32.mrb[4].mxu1 }
 0x28f   : > { %v2154_v24 = vadd.f32 %v4069_v2, %v1794_v13  ;;  %v1796_v8 = vpop.f32.mrb[5].mxu1 }
 0x290   : > { %v2155_v4 = vadd.f32 %v4073_v58, %v1796_v8  ;;  %v1798_v38 = vpop.f32.mrb[6].mxu1 }
 0x291   : > { %2218 = vst [vmem:[%s4079_s7 + $0x20] sm:$0xff] %v2154_v24  ;;  %v2156_v50 = vadd.f32 %v4069_v2, %v1798_v38  ;;  %v1800_v54 = vpop.f32.mrb[7].mxu1 }
 0x292   : > { %2219 = vst [vmem:[%s4079_s7 + $0x28] sm:$0xff] %v2155_v4  ;;  %v2157_v1 = vadd.f32 %v4073_v58, %v1800_v54 }
 0x293   : > { %2220 = vst [vmem:[%s4079_s7 + $0x30] sm:$0xff] %v2156_v50 }
 0x294   : > { %2221 = vst [vmem:[%s4079_s7 + $0x38] sm:$0xff] %v2157_v1 }
 0x298   : > { %v1804_v42 = vpop.f32.mrb[8].mxu1 }
 0x299   : > { %v2158_v48 = vadd.f32 %v4069_v2, %v1804_v42  ;;  %v1806_v19 = vpop.f32.mrb[9].mxu1 }
 0x29a   : > { %v2159_v10 = vadd.f32 %v4073_v58, %v1806_v19  ;;  %v1808_v41 = vpop.f32.mrb[10].mxu1 }
 0x29b   : > { %2222 = vst [vmem:[%s4079_s7 + $0x40] sm:$0xff] %v2158_v48  ;;  %v2160_v63 = vadd.f32 %v4069_v2, %v1808_v41  ;;  %v1810_v5 = vpop.f32.mrb[11].mxu1 }
 0x29c   : > { %2223 = vst [vmem:[%s4079_s7 + $0x48] sm:$0xff] %v2159_v10  ;;  %v2161_v18 = vadd.f32 %v4073_v58, %v1810_v5 }
 0x29d   : > { %2224 = vst [vmem:[%s4079_s7 + $0x50] sm:$0xff] %v2160_v63 }
 0x29e   : > { %2225 = vst [vmem:[%s4079_s7 + $0x58] sm:$0xff] %v2161_v18 }
 0x2a3   : > { %v1814_v47 = vpop.f32.mrb[12].mxu1 }
 0x2a4   : > { %v2162_v16 = vadd.f32 %v4069_v2, %v1814_v47  ;;  %v1816_v9 = vpop.f32.mrb[13].mxu1 }
 0x2a5   : > { %v2163_v25 = vadd.f32 %v4073_v58, %v1816_v9  ;;  %v1818_v59 = vpop.f32.mrb[14].mxu1 }
 0x2a6   : > { %2226 = vst [vmem:[%s4079_s7 + $0x60] sm:$0xff] %v2162_v16  ;;  %v2164_v35 = vadd.f32 %v4069_v2, %v1818_v59  ;;  %v1820_v3 = vpop.f32.mrb[15].mxu1 }
 0x2a7   : > { %2227 = vst [vmem:[%s4079_s7 + $0x68] sm:$0xff] %v2163_v25  ;;  %v2165_v0 = vadd.f32 %v4073_v58, %v1820_v3 }
 0x2a8   : > { %2228 = vst [vmem:[%s4079_s7 + $0x70] sm:$0xff] %v2164_v35 }
 0x2a9   : > { %2229 = vst [vmem:[%s4079_s7 + $0x78] sm:$0xff] %v2165_v0 }
 0x2ad   : > { %v1824_v53 = vpop.f32.mrb[16].mxu1 }
 0x2ae   : > { %v2166_v40 = vadd.f32 %v4069_v2, %v1824_v53  ;;  %v1826_v56 = vpop.f32.mrb[17].mxu1 }
 0x2af   : > { %v2167_v62 = vadd.f32 %v4073_v58, %v1826_v56  ;;  %v1828_v49 = vpop.f32.mrb[18].mxu1 }
 0x2b0   : > { %2230 = vst [vmem:[%s4079_s7 + $0x80] sm:$0xff] %v2166_v40  ;;  %v2168_v14 = vadd.f32 %v4069_v2, %v1828_v49  ;;  %v1830_v52 = vpop.f32.mrb[19].mxu1 }
 0x2b1   : > { %2231 = vst [vmem:[%s4079_s7 + $0x88] sm:$0xff] %v2167_v62  ;;  %v2169_v17 = vadd.f32 %v4073_v58, %v1830_v52 }
 0x2b2   : > { %2232 = vst [vmem:[%s4079_s7 + $0x90] sm:$0xff] %v2168_v14 }
 0x2b3   : > { %2233 = vst [vmem:[%s4079_s7 + $0x98] sm:$0xff] %v2169_v17 }
 0x2b8   : > { %v1834_v60 = vpop.f32.mrb[20].mxu1 }
 0x2b9   : > { %v2170_v28 = vadd.f32 %v4069_v2, %v1834_v60  ;;  %v1836_v26 = vpop.f32.mrb[21].mxu1 }
 0x2ba   : > { %v2171_v36 = vadd.f32 %v4073_v58, %v1836_v26  ;;  %v1838_v61 = vpop.f32.mrb[22].mxu1 }
 0x2bb   : > { %2234 = vst [vmem:[%s4079_s7 + $0xa0] sm:$0xff] %v2170_v28  ;;  %v2172_v30 = vadd.f32 %v4069_v2, %v1838_v61  ;;  %v1840_v34 = vpop.f32.mrb[23].mxu1 }
 0x2bc   : > { %2235 = vst [vmem:[%s4079_s7 + $0xa8] sm:$0xff] %v2171_v36  ;;  %v2173_v6 = vadd.f32 %v4073_v58, %v1840_v34 }
 0x2bd   : > { %2236 = vst [vmem:[%s4079_s7 + $0xb0] sm:$0xff] %v2172_v30 }
 0x2be   : > { %2237 = vst [vmem:[%s4079_s7 + $0xb8] sm:$0xff] %v2173_v6 }
 0x2c2   : > { %v1844_v51 = vpop.f32.mrb[24].mxu1 }
 0x2c3   : > { %v2174_v46 = vadd.f32 %v4069_v2, %v1844_v51  ;;  %v1846_v15 = vpop.f32.mrb[25].mxu1 }
 0x2c4   : > { %v2175_v7 = vadd.f32 %v4073_v58, %v1846_v15  ;;  %v1848_v32 = vpop.f32.mrb[26].mxu1 }
 0x2c5   : > { %2238 = vst [vmem:[%s4079_s7 + $0xc0] sm:$0xff] %v2174_v46  ;;  %v2176_v11 = vadd.f32 %v4069_v2, %v1848_v32  ;;  %v1850_v43 = vpop.f32.mrb[27].mxu1 }
 0x2c6   : > { %2239 = vst [vmem:[%s4079_s7 + $0xc8] sm:$0xff] %v2175_v7  ;;  %v2177_v39 = vadd.f32 %v4073_v58, %v1850_v43 }
 0x2c7   : > { %2240 = vst [vmem:[%s4079_s7 + $0xd0] sm:$0xff] %v2176_v11 }
 0x2c8   : > { %2241 = vst [vmem:[%s4079_s7 + $0xd8] sm:$0xff] %v2177_v39 }
 0x2cd   : > { %v1854_v57 = vpop.f32.mrb[28].mxu1 }
 0x2ce   : > { %v2178_v20 = vadd.f32 %v4069_v2, %v1854_v57  ;;  %v1856_v31 = vpop.f32.mrb[29].mxu1 }
 0x2cf   : > { %v2179_v27 = vadd.f32 %v4073_v58, %v1856_v31  ;;  %v1858_v29 = vpop.f32.mrb[30].mxu1 }
 0x2d0   : > { %2242 = vst [vmem:[%s4079_s7 + $0xe0] sm:$0xff] %v2178_v20  ;;  %v2180_v44 = vadd.f32 %v4069_v2, %v1858_v29  ;;  %v1860_v55 = vpop.f32.mrb[31].mxu1 }
 0x2d1   : > { %2243 = vst [vmem:[%s4079_s7 + $0xe8] sm:$0xff] %v2179_v27  ;;  %v2181_v45 = vadd.f32 %v4073_v58, %v1860_v55 }
 0x2d2   : > { %2244 = vst [vmem:[%s4079_s7 + $0xf0] sm:$0xff] %v2180_v44 }
 0x2d3   : > { %2245 = vst [vmem:[%s4079_s7 + $0xf8] sm:$0xff] %v2181_v45 }
 0x2d7   : > { %v1864_v22 = vpop.f32.mrb[32].mxu1 }
 0x2d8   : > { %v2182_v37 = vadd.f32 %v4069_v2, %v1864_v22  ;;  %v1866_v23 = vpop.f32.mrb[33].mxu1 }
 0x2d9   : > { %v2183_v33 = vadd.f32 %v4073_v58, %v1866_v23  ;;  %v1868_v21 = vpop.f32.mrb[34].mxu1 }
 0x2da   : > { %2246 = vst [vmem:[%s4079_s7 + $0x100] sm:$0xff] %v2182_v37  ;;  %v2184_v12 = vadd.f32 %v4069_v2, %v1868_v21  ;;  %v1870_v13 = vpop.f32.mrb[35].mxu1 }
 0x2db   : > { %2247 = vst [vmem:[%s4079_s7 + $0x108] sm:$0xff] %v2183_v33  ;;  %v2185_v24 = vadd.f32 %v4073_v58, %v1870_v13 }
 0x2dc   : > { %2248 = vst [vmem:[%s4079_s7 + $0x110] sm:$0xff] %v2184_v12 }
 0x2dd   : > { %2249 = vst [vmem:[%s4079_s7 + $0x118] sm:$0xff] %v2185_v24 }
 0x2e2   : > { %v1874_v8 = vpop.f32.mrb[36].mxu1 }
 0x2e3   : > { %v2186_v4 = vadd.f32 %v4069_v2, %v1874_v8  ;;  %v1876_v38 = vpop.f32.mrb[37].mxu1 }
 0x2e4   : > { %v2187_v50 = vadd.f32 %v4073_v58, %v1876_v38  ;;  %v1878_v54 = vpop.f32.mrb[38].mxu1 }
 0x2e5   : > { %2250 = vst [vmem:[%s4079_s7 + $0x120] sm:$0xff] %v2186_v4  ;;  %v2188_v1 = vadd.f32 %v4069_v2, %v1878_v54  ;;  %v1880_v42 = vpop.f32.mrb[39].mxu1 }
 0x2e6   : > { %2251 = vst [vmem:[%s4079_s7 + $0x128] sm:$0xff] %v2187_v50  ;;  %v2189_v48 = vadd.f32 %v4073_v58, %v1880_v42 }
 0x2e7   : > { %2252 = vst [vmem:[%s4079_s7 + $0x130] sm:$0xff] %v2188_v1 }
 0x2e8   : > { %2253 = vst [vmem:[%s4079_s7 + $0x138] sm:$0xff] %v2189_v48 }
 0x2ec   : > { %v1884_v19 = vpop.f32.mrb[40].mxu1 }
 0x2ed   : > { %v2190_v10 = vadd.f32 %v4069_v2, %v1884_v19  ;;  %v1886_v41 = vpop.f32.mrb[41].mxu1 }
 0x2ee   : > { %v2191_v63 = vadd.f32 %v4073_v58, %v1886_v41  ;;  %v1888_v5 = vpop.f32.mrb[42].mxu1 }
 0x2ef   : > { %2254 = vst [vmem:[%s4079_s7 + $0x140] sm:$0xff] %v2190_v10  ;;  %v2192_v18 = vadd.f32 %v4069_v2, %v1888_v5  ;;  %v1890_v47 = vpop.f32.mrb[43].mxu1 }
 0x2f0   : > { %2255 = vst [vmem:[%s4079_s7 + $0x148] sm:$0xff] %v2191_v63  ;;  %v2193_v16 = vadd.f32 %v4073_v58, %v1890_v47 }
 0x2f1   : > { %2256 = vst [vmem:[%s4079_s7 + $0x150] sm:$0xff] %v2192_v18 }
 0x2f2   : > { %2257 = vst [vmem:[%s4079_s7 + $0x158] sm:$0xff] %v2193_v16 }
 0x2f7   : > { %v1894_v9 = vpop.f32.mrb[44].mxu1 }
 0x2f8   : > { %v2194_v25 = vadd.f32 %v4069_v2, %v1894_v9  ;;  %v1896_v59 = vpop.f32.mrb[45].mxu1 }
 0x2f9   : > { %v2195_v35 = vadd.f32 %v4073_v58, %v1896_v59  ;;  %v1898_v3 = vpop.f32.mrb[46].mxu1 }
 0x2fa   : > { %2258 = vst [vmem:[%s4079_s7 + $0x160] sm:$0xff] %v2194_v25  ;;  %v2196_v0 = vadd.f32 %v4069_v2, %v1898_v3  ;;  %v1900_v53 = vpop.f32.mrb[47].mxu1 }
 0x2fb   : > { %2259 = vst [vmem:[%s4079_s7 + $0x168] sm:$0xff] %v2195_v35  ;;  %v2197_v40 = vadd.f32 %v4073_v58, %v1900_v53 }
 0x2fc   : > { %2260 = vst [vmem:[%s4079_s7 + $0x170] sm:$0xff] %v2196_v0 }
 0x2fd   : > { %2261 = vst [vmem:[%s4079_s7 + $0x178] sm:$0xff] %v2197_v40 }
 0x2ff   : > { %v1904_v56 = vpop.f32.mrb[48].mxu1 }
 0x300   : > { %v2198_v62 = vadd.f32 %v4069_v2, %v1904_v56  ;;  %v1906_v49 = vpop.f32.mrb[49].mxu1 }
 0x301   : > { %v2199_v14 = vadd.f32 %v4073_v58, %v1906_v49  ;;  %v1908_v52 = vpop.f32.mrb[50].mxu1 }
 0x302   : > { %2262 = vst [vmem:[%s4079_s7 + $0x180] sm:$0xff] %v2198_v62  ;;  %v2200_v17 = vadd.f32 %v4069_v2, %v1908_v52  ;;  %v1910_v60 = vpop.f32.mrb[51].mxu1 }
 0x303   : > { %2263 = vst [vmem:[%s4079_s7 + $0x188] sm:$0xff] %v2199_v14  ;;  %v2201_v28 = vadd.f32 %v4073_v58, %v1910_v60 }
 0x304   : > { %2264 = vst [vmem:[%s4079_s7 + $0x190] sm:$0xff] %v2200_v17 }
 0x305   : > { %2265 = vst [vmem:[%s4079_s7 + $0x198] sm:$0xff] %v2201_v28 }
 0x307   : > { %v1914_v26 = vpop.f32.mrb[52].mxu1 }
 0x308   : > { %v2202_v36 = vadd.f32 %v4069_v2, %v1914_v26  ;;  %v1916_v61 = vpop.f32.mrb[53].mxu1 }
 0x309   : > { %v2203_v30 = vadd.f32 %v4073_v58, %v1916_v61  ;;  %v1918_v34 = vpop.f32.mrb[54].mxu1 }
 0x30a   : > { %2266 = vst [vmem:[%s4079_s7 + $0x1a0] sm:$0xff] %v2202_v36  ;;  %v2204_v6 = vadd.f32 %v4069_v2, %v1918_v34  ;;  %v1920_v51 = vpop.f32.mrb[55].mxu1 }
 0x30b   : > { %2267 = vst [vmem:[%s4079_s7 + $0x1a8] sm:$0xff] %v2203_v30  ;;  %v2205_v46 = vadd.f32 %v4073_v58, %v1920_v51 }
 0x30c   : > { %2268 = vst [vmem:[%s4079_s7 + $0x1b0] sm:$0xff] %v2204_v6 }
 0x30d   : > { %2269 = vst [vmem:[%s4079_s7 + $0x1b8] sm:$0xff] %v2205_v46 }
 0x30f   : > { %v1924_v15 = vpop.f32.mrb[56].mxu1 }
 0x310   : > { %v2206_v7 = vadd.f32 %v4069_v2, %v1924_v15  ;;  %v1926_v32 = vpop.f32.mrb[57].mxu1 }
 0x311   : > { %v2207_v11 = vadd.f32 %v4073_v58, %v1926_v32  ;;  %v1928_v43 = vpop.f32.mrb[58].mxu1 }
 0x312   : > { %2270 = vst [vmem:[%s4079_s7 + $0x1c0] sm:$0xff] %v2206_v7  ;;  %v2208_v39 = vadd.f32 %v4069_v2, %v1928_v43  ;;  %v1930_v57 = vpop.f32.mrb[59].mxu1 }
 0x313   : > { %2271 = vst [vmem:[%s4079_s7 + $0x1c8] sm:$0xff] %v2207_v11  ;;  %v2209_v20 = vadd.f32 %v4073_v58, %v1930_v57 }
 0x314   : > { %2272 = vst [vmem:[%s4079_s7 + $0x1d0] sm:$0xff] %v2208_v39 }
 0x315   : > { %2273 = vst [vmem:[%s4079_s7 + $0x1d8] sm:$0xff] %v2209_v20 }
 0x317   : > { %v1934_v31 = vpop.f32.mrb[60].mxu1 }
 0x318   : > { %v2210_v27 = vadd.f32 %v4069_v2, %v1934_v31  ;;  %v1936_v29 = vpop.f32.mrb[61].mxu1 }
 0x319   : > { %v2211_v44 = vadd.f32 %v4073_v58, %v1936_v29  ;;  %v1938_v55 = vpop.f32.mrb[62].mxu1 }
 0x31a   : > { %2274 = vst [vmem:[%s4079_s7 + $0x1e0] sm:$0xff] %v2210_v27  ;;  %v2212_v45 = vadd.f32 %v4069_v2, %v1938_v55  ;;  %v1940_v22 = vpop.f32.mrb[63].mxu1 }
 0x31b   : > { %2275 = vst [vmem:[%s4079_s7 + $0x1e8] sm:$0xff] %v2211_v44  ;;  %v2213_v37 = vadd.f32 %v4073_v58, %v1940_v22 }
 0x31c   : > { %2276 = vst [vmem:[%s4079_s7 + $0x1f0] sm:$0xff] %v2212_v45 }
 0x31d   : > { %2277 = vst [vmem:[%s4079_s7 + $0x1f8] sm:$0xff] %v2213_v37 }
 0x31e   : > { %2911 = shalt.err (!%p2908_p11)
}
 0x31f   : > { %s2912_s26 = scalar_lea.hbm %s4208_s13, 8192  ;;  %s2916_s24 = scalar_lea.hbm %s4268_s5, 16384 }
 0x320   : > { %p2913_p0 = scmp.ne.s32.totalorder %s4208_s13, %s2912_s26  ;;  %p2917_p6 = scmp.lt.u32.totalorder %s4208_s13, %s4268_s5 }
 0x321   : > { %p2918_p7 = scmp.lt.u32.totalorder %s2916_s24, %s2912_s26  ;;  %p2920_p8 = scmp.lt.u32.totalorder %s2912_s26, %s4208_s13 }
 0x322   : > { %p2914_p4 = pnand %p2913_p0, %p4287_p12 }
 0x323   : > { %p2919_p2 = por %p2918_p7, %p2917_p6 }
 0x324   : > { %p2915_p13 = pneg %p2914_p4 }
 0x325   : > { %p2921_p1 = por %p2920_p8, %p2919_p2 }
 0x327   : > { %p2922_p10 = pnand %p2921_p1, %p2915_p13 }
 0x329   : > { %2925 = shalt.err (!%p2922_p10)
}
 0x32a   : > { %s2994_s14 = smov 256   ;;  %s2995_s10 = smov 16  }
 0x32b   : > { %2509 = dma.vmem_to_hbm [thread:$0]  (%p4287_p12), %s4210_s11, 8192, %s4208_s13, %s2279_s21, %s2994_s14, %s2994_s14, %s2995_s10  }
 0x32c PF: > { %s2308_s25 = sand.u32 1, %s2964_s18   ;;  %p4288_p3 = scmp.ne.s32.totalorder %s4278_s29, 0 }
 0x32d   : > { %p4289_p5 = scmp.ge.s32.totalorder %s2984_s23, 2  ;;  %s2309_s17 = scalar_lea.sflag [#allocation5], %s2308_s25 }
 0x32f   : > { %p2523_p9 = pnand %p4289_p5, %p4288_p3 }
 0x331   : > { %2959 = dma.done.wait (!%p2523_p9), %s2309_s17, 8192  }
 0x332   : > { %2961 = vsyncadd (!%p2523_p9), %s2309_s17, 4294959104  ;;  %s22_s23 = sadd.s32 1, %s2984_s23   ;;  %s4290_s18 = smov %s2968_s19 }
 0x333   : > { %p19_p11 = scmp.ge.s32.totalorder %s22_s23, 4   ;;  %s4291_s19 = smov %s2972_s20 }
 0x334   : > { %s4292_s20 = smov %s3168_s6  ;;  %s4293_s21 = smov %s2980_s22 }
 0x335   : > { %s4294_s22 = smov %s4296_s12  ;;  %21 = sbr.rel (!%p19_p11) target bundleno = 7 (0x7), region = 106 }
 0x33c   :  { %2314 = vsyncpa [#allocation4], 1 }
 0x33d   :  { %2316 = vsyncpa [#allocation4 + $0x1], 1 }
 0x33e   :  { %2317 = vsyncpa [#allocation7], 1 }
 0x33f   :  { %2318 = vsyncpa [#allocation5], 1 }
 0x340   :  { %2320 = vsyncpa [#allocation5 + $0x1], 1 }

</bundles_post_ra>
